<compile_context>
chip_gen: v6e
topology: v6e:2x2x1
jax: 0.10.0
libtpu: 0.0.40
codegen_flags: <defaults>
</compile_context>

<pallas_src>
import jax
import jax.numpy as jnp
from jax import lax
from jax.experimental import pallas as pl
from jax.experimental.pallas import tpu as pltpu


# ---------------------------------------------------------------------------
# In-kernel helpers
# ---------------------------------------------------------------------------
def _layernorm(x, g, b, eps=1e-5):
    mu = jnp.mean(x, axis=-1, keepdims=True)
    var = jnp.mean((x - mu) ** 2, axis=-1, keepdims=True)
    return (x - mu) * lax.rsqrt(var + eps) * g + b


def _gelu(x):
    # exact (erf-based) GELU, matching torch.nn.GELU(approximate='none')
    return x * 0.5 * (1.0 + lax.erf(x * (1.0 / jnp.sqrt(2.0).astype(x.dtype))))


# ---------------------------------------------------------------------------
# Pallas kernel
# ---------------------------------------------------------------------------
def grounding_kernel(v_ref, qa_ref,
                     lnv_g_ref, lnv_b_ref, wv_ref, bv_ref,
                     lnq_g_ref, lnq_b_ref, wq_ref, bq_ref,
                     lng_g_ref, lng_b_ref, w1_ref, b1_ref, w2_ref,
                     scal_ref,
                     key_ref, gs_ref):
    Bb, T, D = v_ref.shape

    v = v_ref[...].reshape(Bb * T, D)                       # (Bb*T, D)
    qa = qa_ref[...]                                        # (Bb, D)

    # ---- v_proj / qa_proj: LayerNorm -> Linear -> GELU (batched MXU matmuls)
    v_p = _gelu(jnp.dot(_layernorm(v, lnv_g_ref[...], lnv_b_ref[...]),
                        wv_ref[...], preferred_element_type=jnp.float32)
                + bv_ref[...])                              # (Bb*T, D)
    qa_p = _gelu(jnp.dot(_layernorm(qa, lnq_g_ref[...], lnq_b_ref[...]),
                         wq_ref[...], preferred_element_type=jnp.float32)
                 + bq_ref[...])                             # (Bb, D)

    # ---- gate = tanh(<v_p[b,t,:], qa_p[b,:]>)
    v_p3 = v_p.reshape(Bb, T, D)
    gate = jnp.tanh(jnp.sum(v_p3 * qa_p[:, None, :], axis=-1, keepdims=True))
    x = (v_p3 * gate).reshape(Bb * T, D)                    # (Bb*T, D)

    # ---- grounding MLP: LayerNorm -> Linear(D, D/2) -> GELU -> Linear(D/2,1)
    h = _gelu(jnp.dot(_layernorm(x, lng_g_ref[...], lng_b_ref[...]),
                      w1_ref[...], preferred_element_type=jnp.float32)
              + b1_ref[...])                                # (Bb*T, D/2)
    b2 = scal_ref[1]
    # D/2 -> 1 head as a VPU multiply + lane reduction (avoids an N=1 MXU
    # matmul); result is lane-dense: (Bb, T) with T on the 128-lane axis.
    logits = jnp.sum(h.reshape(Bb, T, -1) * w2_ref[...], axis=-1) + b2

    # ---- softmax over frames (torch Softmax(dim=-2))
    m = jnp.max(logits, axis=-1, keepdims=True)
    e = jnp.exp(logits - m)
    p = e / jnp.sum(e, axis=-1, keepdims=True)              # (Bb, T)
    key_ref[...] = p.astype(key_ref.dtype)

    # ---- adaptive Gaussian smoothing: conv1d(k=5, pad=2, zero padding) with
    # a globally-normalized kernel, as a 5-tap weighted sum of lane shifts.
    sigma = scal_ref[0]
    sig_v = jnp.ones((1, 1), jnp.float32) * sigma
    g1 = jnp.exp(-0.5 / (sig_v * sig_v))                    # exp(-0.5 / s^2)
    g1sq = g1 * g1
    g2 = g1sq * g1sq                                        # exp(-2.0 / s^2)
    inv_norm = 1.0 / (1.0 + 2.0 * g1 + 2.0 * g2)            # 1 / kernel.sum()
    w0 = inv_norm
    wA = g1 * inv_norm
    wB = g2 * inv_norm

    col = lax.broadcasted_iota(jnp.int32, p.shape, 1)
    pm1 = jnp.where(col >= 1, pltpu.roll(p, shift=1, axis=1), 0.0)       # p[t-1]
    pm2 = jnp.where(col >= 2, pltpu.roll(p, shift=2, axis=1), 0.0)       # p[t-2]
    pp1 = jnp.where(col <= T - 2, pltpu.roll(p, shift=T - 1, axis=1), 0.0)  # p[t+1]
    pp2 = jnp.where(col <= T - 3, pltpu.roll(p, shift=T - 2, axis=1), 0.0)  # p[t+2]
    smoothed = w0 * p + wA * (pm1 + pp1) + wB * (pm2 + pp2)

    # ---- softmax over frames again
    m2 = jnp.max(smoothed, axis=-1, keepdims=True)
    e2 = jnp.exp(smoothed - m2)
    gs = e2 / jnp.sum(e2, axis=-1, keepdims=True)
    gs_ref[...] = gs.astype(gs_ref.dtype)


# ---------------------------------------------------------------------------
# Wrapper
# ---------------------------------------------------------------------------
_W_KEYS = ('lnv_g', 'lnv_b', 'wv', 'bv',
           'lnq_g', 'lnq_b', 'wq', 'bq',
           'lng_g', 'lng_b', 'w1', 'b1')


def _pick_block_b(B, T):
    # Whole batch per step when the MXU row count (B*T) is modest; otherwise
    # pick a divisor of B that is a multiple of 8 so the (Bb, T)/(Bb, D)
    # block shapes stay legal under the (8, 128) tiling rule.
    if B * T <= 4096:
        return B
    cands = [bb for bb in range(8, B, 8) if B % bb == 0 and bb * T <= 4096]
    return max(cands) if cands else B


def grounding_kernel_call(v, qa, params):
    B, T, D = v.shape
    Bb = _pick_block_b(B, T)
    nb = B // Bb

    # final Linear(D/2 -> 1) weight as a lane-dense row; sigma & b2 as SMEM scalars
    w2_row = params['w2'].reshape(1, 1, D // 2).astype(jnp.float32)
    scalars = jnp.concatenate([params['sigma'].reshape(1),
                               params['b2'].reshape(1)]).astype(jnp.float32)

    def full_spec(shape):
        return pl.BlockSpec(shape, lambda b, _n=len(shape): (0,) * _n)

    in_specs = ([pl.BlockSpec((Bb, T, D), lambda b: (b, 0, 0)),
                 pl.BlockSpec((Bb, D), lambda b: (b, 0))]
                + [full_spec(params[k].shape) for k in _W_KEYS]
                + [full_spec(w2_row.shape),
                   pl.BlockSpec(memory_space=pltpu.MemorySpace.SMEM)])

    key_p, gs_p = pl.pallas_call(
        grounding_kernel,
        out_shape=(jax.ShapeDtypeStruct((B, T), jnp.float32),
                   jax.ShapeDtypeStruct((B, T), jnp.float32)),
        grid=(nb,),
        in_specs=in_specs,
        out_specs=(pl.BlockSpec((Bb, T), lambda b: (b, 0)),
                   pl.BlockSpec((Bb, T), lambda b: (b, 0))),
        compiler_params=pltpu.CompilerParams(
            dimension_semantics=("parallel",)),   # batch steps are independent
    )(v, qa, *[params[k] for k in _W_KEYS], w2_row, scalars)

    return key_p, gs_p                            # (B, T), (B, T)


# ---------------------------------------------------------------------------
# Interval search glue (plain JAX, vectorized; matches PyTorch reference
# semantics including its strict-greater / first-candidate tie-breaking).
# TODO(synk): data-dependent scalar interval search has no clean Pallas
# equivalent; it is done as vectorized JAX on the kernel outputs.
# ---------------------------------------------------------------------------
def find_best_interval(keyframe_prob, window_sizes=(1, 3, 5)):
    bs, length = keyframe_prob.shape
    max_interval_size = length // 2
    max_positions = jnp.argmax(keyframe_prob, axis=1)                 # (bs,)
    csum = jnp.concatenate(
        [jnp.zeros((bs, 1), keyframe_prob.dtype),
         jnp.cumsum(keyframe_prob, axis=1)], axis=1)                  # (bs, L+1)

    cand_scores, cand_starts, cand_ends = [], [], []
    for w in window_sizes:
        if w > max_interval_size:
            continue
        starts = jnp.arange(length - w + 1, dtype=jnp.int32)
        ends = starts + w
        sliding = csum[:, w:] - csum[:, :length - w + 1]              # (bs, L-w+1)
        contains_max = ((max_positions[:, None] >= starts[None, :]) &
                        (max_positions[:, None] < ends[None, :]))
        scores = jnp.where(contains_max, sliding, -jnp.inf)
        cand_scores.append(scores)
        cand_starts.append(jnp.broadcast_to(starts[None, :], scores.shape))
        cand_ends.append(jnp.broadcast_to(ends[None, :], scores.shape))

    if not cand_scores:
        return jnp.zeros((bs, 2), dtype=jnp.int32)

    scores = jnp.concatenate(cand_scores, axis=1)
    starts = jnp.concatenate(cand_starts, axis=1)
    ends = jnp.concatenate(cand_ends, axis=1)
    # Reference only updates on strictly-greater scores while scanning windows
    # then starts in order; argmax (first maximum) reproduces that tie-break.
    best = jnp.argmax(scores, axis=1)
    best_start = jnp.take_along_axis(starts, best[:, None], axis=1)[:, 0]
    best_end = jnp.take_along_axis(ends, best[:, None], axis=1)[:, 0]
    return jnp.stack([best_start, best_end], axis=1).astype(jnp.int32)


def gen_grounding(keyframe_prob):
    bs, length = keyframe_prob.shape
    max_indices = find_best_interval(keyframe_prob)
    rng = jnp.arange(length, dtype=jnp.int32)[None, :]
    keyframe_mask = (rng >= max_indices[:, :1]) & (rng <= max_indices[:, 1:2])
    # NOTE: the reference hardcodes /31.0 (assumes 32 frames); kept verbatim.
    return {
        'key': keyframe_prob,
        'max_indices': max_indices,
        'start': max_indices[:, 0].astype(jnp.float32) / 31.0,
        'end': max_indices[:, 1].astype(jnp.float32) / 31.0,
        'mask': keyframe_mask,
    }


def grounding_module_forward(v, qa, params):
    keyframe_prob, keyframe_prob_gs = grounding_kernel_call(v, qa, params)
    time_param = gen_grounding(keyframe_prob_gs)
    time_param['ori_key'] = keyframe_prob
    return time_param


# ---------------------------------------------------------------------------
# Deterministic parameter init (synthetic; torch defaults for LN / sigma)
# ---------------------------------------------------------------------------
def init_params(key, d_model):
    ks = jax.random.split(key, 4)
    s = 0.05
    f32 = jnp.float32
    return {
        # v_proj
        'lnv_g': jnp.ones((1, d_model), f32),
        'lnv_b': jnp.zeros((1, d_model), f32),
        'wv': s * jax.random.normal(ks[0], (d_model, d_model), f32),
        'bv': jnp.zeros((1, d_model), f32),
        # qa_proj
        'lnq_g': jnp.ones((1, d_model), f32),
        'lnq_b': jnp.zeros((1, d_model), f32),
        'wq': s * jax.random.normal(ks[1], (d_model, d_model), f32),
        'bq': jnp.zeros((1, d_model), f32),
        # grounding MLP
        'lng_g': jnp.ones((1, d_model), f32),
        'lng_b': jnp.zeros((1, d_model), f32),
        'w1': s * jax.random.normal(ks[2], (d_model, d_model // 2), f32),
        'b1': jnp.zeros((1, d_model // 2), f32),
        'w2': s * jax.random.normal(ks[3], (d_model // 2, 1), f32),
        'b2': jnp.zeros((1, 1), f32),
        # adaptive gaussian filter sigma (initial_sigma = 1.0)
        'sigma': jnp.ones((1, 1), f32),
    }


if __name__ == "__main__":
    B, T, D = 2, 128, 128   # small but lane-aligned (T, D multiples of 128)
    key = jax.random.PRNGKey(0)
    k1, k2, k3 = jax.random.split(key, 3)
    v = jax.random.normal(k1, (B, T, D), jnp.float32)
    qa = jax.random.normal(k2, (B, D), jnp.float32)
    params = init_params(k3, D)

    fwd = jax.jit(grounding_module_forward)
    out = fwd(v, qa, params)
    jax.block_until_ready(out)
    print("KERNEL_OK")
</pallas_src>

<mosaic_0001>
module attributes {stable_mosaic.version = 11 : i64} {
  func.func @grounding_kernel(%arg0: i32, %arg1: memref<2x128x128xf32, #tpu.memory_space<vmem>>, %arg2: memref<2x128xf32, #tpu.memory_space<vmem>>, %arg3: memref<1x128xf32, #tpu.memory_space<vmem>>, %arg4: memref<1x128xf32, #tpu.memory_space<vmem>>, %arg5: memref<128x128xf32, #tpu.memory_space<vmem>>, %arg6: memref<1x128xf32, #tpu.memory_space<vmem>>, %arg7: memref<1x128xf32, #tpu.memory_space<vmem>>, %arg8: memref<1x128xf32, #tpu.memory_space<vmem>>, %arg9: memref<128x128xf32, #tpu.memory_space<vmem>>, %arg10: memref<1x128xf32, #tpu.memory_space<vmem>>, %arg11: memref<1x128xf32, #tpu.memory_space<vmem>>, %arg12: memref<1x128xf32, #tpu.memory_space<vmem>>, %arg13: memref<128x64xf32, #tpu.memory_space<vmem>>, %arg14: memref<1x64xf32, #tpu.memory_space<vmem>>, %arg15: memref<1x1x64xf32, #tpu.memory_space<vmem>>, %arg16: memref<2xf32, #tpu.memory_space<smem>>, %arg17: memref<2x128xf32, #tpu.memory_space<vmem>>, %arg18: memref<2x128xf32, #tpu.memory_space<vmem>>) attributes {dimension_semantics = [#tpu.dimension_semantics<parallel>], iteration_bounds = array<i64: 1>, scalar_prefetch = 0 : i64, scratch_operands = 0 : i64, tpu.core_type = #tpu.core_type<tc>, window_params = [{transform_indices = @transform_0, window_bounds = array<i64: 2, 128, 128>}, {transform_indices = @transform_1, window_bounds = array<i64: 2, 128>}, {pipeline_mode = #tpu.pipeline_mode<synchronous>, transform_indices = @transform_2, window_bounds = array<i64: 1, 128>}, {pipeline_mode = #tpu.pipeline_mode<synchronous>, transform_indices = @transform_3, window_bounds = array<i64: 1, 128>}, {pipeline_mode = #tpu.pipeline_mode<synchronous>, transform_indices = @transform_4, window_bounds = array<i64: 128, 128>}, {pipeline_mode = #tpu.pipeline_mode<synchronous>, transform_indices = @transform_5, window_bounds = array<i64: 1, 128>}, {pipeline_mode = #tpu.pipeline_mode<synchronous>, transform_indices = @transform_6, window_bounds = array<i64: 1, 128>}, {pipeline_mode = #tpu.pipeline_mode<synchronous>, transform_indices = @transform_7, window_bounds = array<i64: 1, 128>}, {pipeline_mode = #tpu.pipeline_mode<synchronous>, transform_indices = @transform_8, window_bounds = array<i64: 128, 128>}, {pipeline_mode = #tpu.pipeline_mode<synchronous>, transform_indices = @transform_9, window_bounds = array<i64: 1, 128>}, {pipeline_mode = #tpu.pipeline_mode<synchronous>, transform_indices = @transform_10, window_bounds = array<i64: 1, 128>}, {pipeline_mode = #tpu.pipeline_mode<synchronous>, transform_indices = @transform_11, window_bounds = array<i64: 1, 128>}, {pipeline_mode = #tpu.pipeline_mode<synchronous>, transform_indices = @transform_12, window_bounds = array<i64: 128, 64>}, {pipeline_mode = #tpu.pipeline_mode<synchronous>, transform_indices = @transform_13, window_bounds = array<i64: 1, 64>}, {pipeline_mode = #tpu.pipeline_mode<synchronous>, transform_indices = @transform_14, window_bounds = array<i64: 1, 1, 64>}, {transform_indices = @transform_15, window_bounds = array<i64: 2>}, {transform_indices = @transform_16, window_bounds = array<i64: 2, 128>}, {transform_indices = @transform_17, window_bounds = array<i64: 2, 128>}]} {
    %c0 = arith.constant 0 : index
    %c0_0 = arith.constant 0 : index
    %c0_1 = arith.constant 0 : index
    %0 = vector.load %arg1[%c0, %c0_0, %c0_1] : memref<2x128x128xf32, #tpu.memory_space<vmem>>, vector<2x128x128xf32>
    %1 = vector.shape_cast %0 : vector<2x128x128xf32> to vector<256x128xf32>
    %c0_2 = arith.constant 0 : index
    %c0_3 = arith.constant 0 : index
    %2 = vector.load %arg2[%c0_2, %c0_3] : memref<2x128xf32, #tpu.memory_space<vmem>>, vector<2x128xf32>
    %c0_4 = arith.constant 0 : index
    %c0_5 = arith.constant 0 : index
    %3 = vector.load %arg3[%c0_4, %c0_5] : memref<1x128xf32, #tpu.memory_space<vmem>>, vector<1x128xf32>
    %c0_6 = arith.constant 0 : index
    %c0_7 = arith.constant 0 : index
    %4 = vector.load %arg4[%c0_6, %c0_7] : memref<1x128xf32, #tpu.memory_space<vmem>>, vector<1x128xf32>
    %cst = arith.constant dense<0.000000e+00> : vector<256xf32>
    %5 = vector.multi_reduction <add>, %1, %cst [1] : vector<256x128xf32> to vector<256xf32>
    %6 = vector.shape_cast %5 : vector<256xf32> to vector<256x1xf32>
    %cst_8 = arith.constant 1.280000e+02 : f32
    %7 = vector.broadcast %cst_8 : f32 to vector<256x1xf32>
    %8 = arith.divf %6, %7 : vector<256x1xf32>
    %9 = vector.broadcast %8 : vector<256x1xf32> to vector<256x128xf32>
    %10 = arith.subf %1, %9 : vector<256x128xf32>
    %11 = arith.mulf %10, %10 : vector<256x128xf32>
    %cst_9 = arith.constant dense<0.000000e+00> : vector<256xf32>
    %12 = vector.multi_reduction <add>, %11, %cst_9 [1] : vector<256x128xf32> to vector<256xf32>
    %13 = vector.shape_cast %12 : vector<256xf32> to vector<256x1xf32>
    %cst_10 = arith.constant 1.280000e+02 : f32
    %14 = vector.broadcast %cst_10 : f32 to vector<256x1xf32>
    %15 = arith.divf %13, %14 : vector<256x1xf32>
    %16 = vector.broadcast %8 : vector<256x1xf32> to vector<256x128xf32>
    %17 = arith.subf %1, %16 : vector<256x128xf32>
    %cst_11 = arith.constant 9.99999974E-6 : f32
    %18 = vector.broadcast %cst_11 : f32 to vector<256x1xf32>
    %19 = arith.addf %15, %18 : vector<256x1xf32>
    %20 = math.rsqrt %19 : vector<256x1xf32>
    %21 = vector.broadcast %20 : vector<256x1xf32> to vector<256x128xf32>
    %22 = arith.mulf %17, %21 : vector<256x128xf32>
    %23 = vector.broadcast %3 : vector<1x128xf32> to vector<256x128xf32>
    %24 = arith.mulf %22, %23 : vector<256x128xf32>
    %25 = vector.broadcast %4 : vector<1x128xf32> to vector<256x128xf32>
    %26 = arith.addf %24, %25 : vector<256x128xf32>
    %c0_12 = arith.constant 0 : index
    %c0_13 = arith.constant 0 : index
    %27 = vector.load %arg5[%c0_12, %c0_13] : memref<128x128xf32, #tpu.memory_space<vmem>>, vector<128x128xf32>
    %cst_14 = arith.constant dense<0.000000e+00> : vector<256x128xf32>
    %28 = tpu.matmul %26, %27, %cst_14 {dimension_numbers = #tpu.dot_dimension_numbers<[1], [0], [0], [1], [0, 0, 1, 1], [], []>} : vector<256x128xf32>, vector<128x128xf32>, vector<256x128xf32> -> vector<256x128xf32>
    %c0_15 = arith.constant 0 : index
    %c0_16 = arith.constant 0 : index
    %29 = vector.load %arg6[%c0_15, %c0_16] : memref<1x128xf32, #tpu.memory_space<vmem>>, vector<1x128xf32>
    %30 = vector.broadcast %29 : vector<1x128xf32> to vector<256x128xf32>
    %31 = arith.addf %28, %30 : vector<256x128xf32>
    %cst_17 = arith.constant 5.000000e-01 : f32
    %32 = vector.broadcast %cst_17 : f32 to vector<256x128xf32>
    %33 = arith.mulf %31, %32 : vector<256x128xf32>
    %cst_18 = arith.constant 2.000000e+00 : f32
    %34 = math.sqrt %cst_18 : f32
    %cst_19 = arith.constant 1.000000e+00 : f32
    %35 = arith.divf %cst_19, %34 : f32
    %36 = vector.broadcast %35 : f32 to vector<256x128xf32>
    %37 = arith.mulf %31, %36 : vector<256x128xf32>
    %38 = math.erf %37 : vector<256x128xf32>
    %cst_20 = arith.constant 1.000000e+00 : f32
    %39 = vector.broadcast %cst_20 : f32 to vector<256x128xf32>
    %40 = arith.addf %39, %38 : vector<256x128xf32>
    %41 = arith.mulf %33, %40 : vector<256x128xf32>
    %c0_21 = arith.constant 0 : index
    %c0_22 = arith.constant 0 : index
    %42 = vector.load %arg7[%c0_21, %c0_22] : memref<1x128xf32, #tpu.memory_space<vmem>>, vector<1x128xf32>
    %c0_23 = arith.constant 0 : index
    %c0_24 = arith.constant 0 : index
    %43 = vector.load %arg8[%c0_23, %c0_24] : memref<1x128xf32, #tpu.memory_space<vmem>>, vector<1x128xf32>
    %cst_25 = arith.constant dense<0.000000e+00> : vector<2xf32>
    %44 = vector.multi_reduction <add>, %2, %cst_25 [1] : vector<2x128xf32> to vector<2xf32>
    %45 = vector.shape_cast %44 : vector<2xf32> to vector<2x1xf32>
    %cst_26 = arith.constant 1.280000e+02 : f32
    %46 = vector.broadcast %cst_26 : f32 to vector<2x1xf32>
    %47 = arith.divf %45, %46 : vector<2x1xf32>
    %48 = vector.broadcast %47 : vector<2x1xf32> to vector<2x128xf32>
    %49 = arith.subf %2, %48 : vector<2x128xf32>
    %50 = arith.mulf %49, %49 : vector<2x128xf32>
    %cst_27 = arith.constant dense<0.000000e+00> : vector<2xf32>
    %51 = vector.multi_reduction <add>, %50, %cst_27 [1] : vector<2x128xf32> to vector<2xf32>
    %52 = vector.shape_cast %51 : vector<2xf32> to vector<2x1xf32>
    %cst_28 = arith.constant 1.280000e+02 : f32
    %53 = vector.broadcast %cst_28 : f32 to vector<2x1xf32>
    %54 = arith.divf %52, %53 : vector<2x1xf32>
    %55 = vector.broadcast %47 : vector<2x1xf32> to vector<2x128xf32>
    %56 = arith.subf %2, %55 : vector<2x128xf32>
    %cst_29 = arith.constant 9.99999974E-6 : f32
    %57 = vector.broadcast %cst_29 : f32 to vector<2x1xf32>
    %58 = arith.addf %54, %57 : vector<2x1xf32>
    %59 = math.rsqrt %58 : vector<2x1xf32>
    %60 = vector.broadcast %59 : vector<2x1xf32> to vector<2x128xf32>
    %61 = arith.mulf %56, %60 : vector<2x128xf32>
    %62 = vector.broadcast %42 : vector<1x128xf32> to vector<2x128xf32>
    %63 = arith.mulf %61, %62 : vector<2x128xf32>
    %64 = vector.broadcast %43 : vector<1x128xf32> to vector<2x128xf32>
    %65 = arith.addf %63, %64 : vector<2x128xf32>
    %c0_30 = arith.constant 0 : index
    %c0_31 = arith.constant 0 : index
    %66 = vector.load %arg9[%c0_30, %c0_31] : memref<128x128xf32, #tpu.memory_space<vmem>>, vector<128x128xf32>
    %cst_32 = arith.constant dense<0.000000e+00> : vector<2x128xf32>
    %67 = tpu.matmul %65, %66, %cst_32 {dimension_numbers = #tpu.dot_dimension_numbers<[1], [0], [0], [1], [0, 0, 1, 1], [], []>} : vector<2x128xf32>, vector<128x128xf32>, vector<2x128xf32> -> vector<2x128xf32>
    %c0_33 = arith.constant 0 : index
    %c0_34 = arith.constant 0 : index
    %68 = vector.load %arg10[%c0_33, %c0_34] : memref<1x128xf32, #tpu.memory_space<vmem>>, vector<1x128xf32>
    %69 = vector.broadcast %68 : vector<1x128xf32> to vector<2x128xf32>
    %70 = arith.addf %67, %69 : vector<2x128xf32>
    %cst_35 = arith.constant 5.000000e-01 : f32
    %71 = vector.broadcast %cst_35 : f32 to vector<2x128xf32>
    %72 = arith.mulf %70, %71 : vector<2x128xf32>
    %cst_36 = arith.constant 2.000000e+00 : f32
    %73 = math.sqrt %cst_36 : f32
    %cst_37 = arith.constant 1.000000e+00 : f32
    %74 = arith.divf %cst_37, %73 : f32
    %75 = vector.broadcast %74 : f32 to vector<2x128xf32>
    %76 = arith.mulf %70, %75 : vector<2x128xf32>
    %77 = math.erf %76 : vector<2x128xf32>
    %cst_38 = arith.constant 1.000000e+00 : f32
    %78 = vector.broadcast %cst_38 : f32 to vector<2x128xf32>
    %79 = arith.addf %78, %77 : vector<2x128xf32>
    %80 = arith.mulf %72, %79 : vector<2x128xf32>
    %81 = vector.shape_cast %41 : vector<256x128xf32> to vector<2x128x128xf32>
    %82 = vector.shape_cast %80 : vector<2x128xf32> to vector<2x1x128xf32>
    %83 = vector.broadcast %82 : vector<2x1x128xf32> to vector<2x128x128xf32>
    %84 = arith.mulf %81, %83 : vector<2x128x128xf32>
    %cst_39 = arith.constant dense<0.000000e+00> : vector<2x128xf32>
    %85 = vector.multi_reduction <add>, %84, %cst_39 [2] : vector<2x128x128xf32> to vector<2x128xf32>
    %86 = vector.shape_cast %85 : vector<2x128xf32> to vector<2x128x1xf32>
    %87 = math.tanh %86 : vector<2x128x1xf32>
    %88 = vector.broadcast %87 : vector<2x128x1xf32> to vector<2x128x128xf32>
    %89 = arith.mulf %81, %88 : vector<2x128x128xf32>
    %90 = vector.shape_cast %89 : vector<2x128x128xf32> to vector<256x128xf32>
    %c0_40 = arith.constant 0 : index
    %c0_41 = arith.constant 0 : index
    %91 = vector.load %arg11[%c0_40, %c0_41] : memref<1x128xf32, #tpu.memory_space<vmem>>, vector<1x128xf32>
    %c0_42 = arith.constant 0 : index
    %c0_43 = arith.constant 0 : index
    %92 = vector.load %arg12[%c0_42, %c0_43] : memref<1x128xf32, #tpu.memory_space<vmem>>, vector<1x128xf32>
    %cst_44 = arith.constant dense<0.000000e+00> : vector<256xf32>
    %93 = vector.multi_reduction <add>, %90, %cst_44 [1] : vector<256x128xf32> to vector<256xf32>
    %94 = vector.shape_cast %93 : vector<256xf32> to vector<256x1xf32>
    %cst_45 = arith.constant 1.280000e+02 : f32
    %95 = vector.broadcast %cst_45 : f32 to vector<256x1xf32>
    %96 = arith.divf %94, %95 : vector<256x1xf32>
    %97 = vector.broadcast %96 : vector<256x1xf32> to vector<256x128xf32>
    %98 = arith.subf %90, %97 : vector<256x128xf32>
    %99 = arith.mulf %98, %98 : vector<256x128xf32>
    %cst_46 = arith.constant dense<0.000000e+00> : vector<256xf32>
    %100 = vector.multi_reduction <add>, %99, %cst_46 [1] : vector<256x128xf32> to vector<256xf32>
    %101 = vector.shape_cast %100 : vector<256xf32> to vector<256x1xf32>
    %cst_47 = arith.constant 1.280000e+02 : f32
    %102 = vector.broadcast %cst_47 : f32 to vector<256x1xf32>
    %103 = arith.divf %101, %102 : vector<256x1xf32>
    %104 = vector.broadcast %96 : vector<256x1xf32> to vector<256x128xf32>
    %105 = arith.subf %90, %104 : vector<256x128xf32>
    %cst_48 = arith.constant 9.99999974E-6 : f32
    %106 = vector.broadcast %cst_48 : f32 to vector<256x1xf32>
    %107 = arith.addf %103, %106 : vector<256x1xf32>
    %108 = math.rsqrt %107 : vector<256x1xf32>
    %109 = vector.broadcast %108 : vector<256x1xf32> to vector<256x128xf32>
    %110 = arith.mulf %105, %109 : vector<256x128xf32>
    %111 = vector.broadcast %91 : vector<1x128xf32> to vector<256x128xf32>
    %112 = arith.mulf %110, %111 : vector<256x128xf32>
    %113 = vector.broadcast %92 : vector<1x128xf32> to vector<256x128xf32>
    %114 = arith.addf %112, %113 : vector<256x128xf32>
    %c0_49 = arith.constant 0 : index
    %c0_50 = arith.constant 0 : index
    %115 = vector.load %arg13[%c0_49, %c0_50] : memref<128x64xf32, #tpu.memory_space<vmem>>, vector<128x64xf32>
    %cst_51 = arith.constant dense<0.000000e+00> : vector<256x64xf32>
    %116 = tpu.matmul %114, %115, %cst_51 {dimension_numbers = #tpu.dot_dimension_numbers<[1], [0], [0], [1], [0, 0, 1, 1], [], []>} : vector<256x128xf32>, vector<128x64xf32>, vector<256x64xf32> -> vector<256x64xf32>
    %c0_52 = arith.constant 0 : index
    %c0_53 = arith.constant 0 : index
    %117 = vector.load %arg14[%c0_52, %c0_53] : memref<1x64xf32, #tpu.memory_space<vmem>>, vector<1x64xf32>
    %118 = vector.broadcast %117 : vector<1x64xf32> to vector<256x64xf32>
    %119 = arith.addf %116, %118 : vector<256x64xf32>
    %cst_54 = arith.constant 5.000000e-01 : f32
    %120 = vector.broadcast %cst_54 : f32 to vector<256x64xf32>
    %121 = arith.mulf %119, %120 : vector<256x64xf32>
    %cst_55 = arith.constant 2.000000e+00 : f32
    %122 = math.sqrt %cst_55 : f32
    %cst_56 = arith.constant 1.000000e+00 : f32
    %123 = arith.divf %cst_56, %122 : f32
    %124 = vector.broadcast %123 : f32 to vector<256x64xf32>
    %125 = arith.mulf %119, %124 : vector<256x64xf32>
    %126 = math.erf %125 : vector<256x64xf32>
    %cst_57 = arith.constant 1.000000e+00 : f32
    %127 = vector.broadcast %cst_57 : f32 to vector<256x64xf32>
    %128 = arith.addf %127, %126 : vector<256x64xf32>
    %129 = arith.mulf %121, %128 : vector<256x64xf32>
    %c1 = arith.constant 1 : index
    %130 = memref.load %arg16[%c1] : memref<2xf32, #tpu.memory_space<smem>>
    %131 = vector.shape_cast %129 : vector<256x64xf32> to vector<2x128x64xf32>
    %c0_58 = arith.constant 0 : index
    %c0_59 = arith.constant 0 : index
    %c0_60 = arith.constant 0 : index
    %132 = vector.load %arg15[%c0_58, %c0_59, %c0_60] : memref<1x1x64xf32, #tpu.memory_space<vmem>>, vector<1x1x64xf32>
    %133 = vector.broadcast %132 : vector<1x1x64xf32> to vector<2x128x64xf32>
    %134 = arith.mulf %131, %133 : vector<2x128x64xf32>
    %cst_61 = arith.constant dense<0.000000e+00> : vector<2x128xf32>
    %135 = vector.multi_reduction <add>, %134, %cst_61 [2] : vector<2x128x64xf32> to vector<2x128xf32>
    %136 = vector.broadcast %130 : f32 to vector<2x128xf32>
    %137 = arith.addf %135, %136 : vector<2x128xf32>
    %cst_62 = arith.constant dense<0xFF800000> : vector<2xf32>
    %138 = vector.multi_reduction <maximumf>, %137, %cst_62 [1] : vector<2x128xf32> to vector<2xf32>
    %139 = vector.shape_cast %138 : vector<2xf32> to vector<2x1xf32>
    %140 = vector.broadcast %139 : vector<2x1xf32> to vector<2x128xf32>
    %141 = arith.subf %137, %140 : vector<2x128xf32>
    %142 = math.exp %141 : vector<2x128xf32>
    %cst_63 = arith.constant dense<0.000000e+00> : vector<2xf32>
    %143 = vector.multi_reduction <add>, %142, %cst_63 [1] : vector<2x128xf32> to vector<2xf32>
    %144 = vector.shape_cast %143 : vector<2xf32> to vector<2x1xf32>
    %145 = vector.broadcast %144 : vector<2x1xf32> to vector<2x128xf32>
    %146 = arith.divf %142, %145 : vector<2x128xf32>
    %c0_64 = arith.constant 0 : index
    %c0_65 = arith.constant 0 : index
    %147 = vector.load %arg17[%c0_64, %c0_65] : memref<2x128xf32, #tpu.memory_space<vmem>>, vector<2x128xf32>
    tpu.vector_store %arg17[%c0_64, %c0_65], %146 {strides = array<i32>} : memref<2x128xf32, #tpu.memory_space<vmem>>, vector<2x128xf32>,
    %c0_66 = arith.constant 0 : index
    %148 = memref.load %arg16[%c0_66] : memref<2xf32, #tpu.memory_space<smem>>
    %cst_67 = arith.constant 1.000000e+00 : f32
    %149 = vector.broadcast %cst_67 : f32 to vector<1x1xf32>
    %150 = vector.broadcast %148 : f32 to vector<1x1xf32>
    %151 = arith.mulf %149, %150 : vector<1x1xf32>
    %152 = arith.mulf %151, %151 : vector<1x1xf32>
    %cst_68 = arith.constant -5.000000e-01 : f32
    %153 = vector.broadcast %cst_68 : f32 to vector<1x1xf32>
    %154 = arith.divf %153, %152 : vector<1x1xf32>
    %155 = math.exp %154 : vector<1x1xf32>
    %156 = arith.mulf %155, %155 : vector<1x1xf32>
    %157 = arith.mulf %156, %156 : vector<1x1xf32>
    %cst_69 = arith.constant 2.000000e+00 : f32
    %158 = vector.broadcast %cst_69 : f32 to vector<1x1xf32>
    %159 = arith.mulf %158, %155 : vector<1x1xf32>
    %cst_70 = arith.constant 1.000000e+00 : f32
    %160 = vector.broadcast %cst_70 : f32 to vector<1x1xf32>
    %161 = arith.addf %160, %159 : vector<1x1xf32>
    %cst_71 = arith.constant 2.000000e+00 : f32
    %162 = vector.broadcast %cst_71 : f32 to vector<1x1xf32>
    %163 = arith.mulf %162, %157 : vector<1x1xf32>
    %164 = arith.addf %161, %163 : vector<1x1xf32>
    %cst_72 = arith.constant 1.000000e+00 : f32
    %165 = vector.broadcast %cst_72 : f32 to vector<1x1xf32>
    %166 = arith.divf %165, %164 : vector<1x1xf32>
    %167 = arith.mulf %155, %166 : vector<1x1xf32>
    %168 = arith.mulf %157, %166 : vector<1x1xf32>
    %169 = tpu.iota {dimensions = array<i32: 1>} : vector<2x128xi32>
    %c1_i32 = arith.constant 1 : i32
    %170 = vector.broadcast %c1_i32 : i32 to vector<2x128xi32>
    %171 = arith.cmpi sge, %169, %170 : vector<2x128xi32>
    %c1_i32_73 = arith.constant 1 : i32
    %172 = tpu.dynamic_rotate %146 by %c1_i32_73 dim 1 : vector<2x128xf32>, i32 -> vector<2x128xf32>
    %cst_74 = arith.constant 0.000000e+00 : f32
    %173 = vector.broadcast %cst_74 : f32 to vector<2x128xf32>
    %174 = arith.select %171, %172, %173 : vector<2x128xi1>, vector<2x128xf32>
    %c2_i32 = arith.constant 2 : i32
    %175 = vector.broadcast %c2_i32 : i32 to vector<2x128xi32>
    %176 = arith.cmpi sge, %169, %175 : vector<2x128xi32>
    %c2_i32_75 = arith.constant 2 : i32
    %177 = tpu.dynamic_rotate %146 by %c2_i32_75 dim 1 : vector<2x128xf32>, i32 -> vector<2x128xf32>
    %cst_76 = arith.constant 0.000000e+00 : f32
    %178 = vector.broadcast %cst_76 : f32 to vector<2x128xf32>
    %179 = arith.select %176, %177, %178 : vector<2x128xi1>, vector<2x128xf32>
    %c126_i32 = arith.constant 126 : i32
    %180 = vector.broadcast %c126_i32 : i32 to vector<2x128xi32>
    %181 = arith.cmpi sle, %169, %180 : vector<2x128xi32>
    %c127_i32 = arith.constant 127 : i32
    %182 = tpu.dynamic_rotate %146 by %c127_i32 dim 1 : vector<2x128xf32>, i32 -> vector<2x128xf32>
    %cst_77 = arith.constant 0.000000e+00 : f32
    %183 = vector.broadcast %cst_77 : f32 to vector<2x128xf32>
    %184 = arith.select %181, %182, %183 : vector<2x128xi1>, vector<2x128xf32>
    %c125_i32 = arith.constant 125 : i32
    %185 = vector.broadcast %c125_i32 : i32 to vector<2x128xi32>
    %186 = arith.cmpi sle, %169, %185 : vector<2x128xi32>
    %c126_i32_78 = arith.constant 126 : i32
    %187 = tpu.dynamic_rotate %146 by %c126_i32_78 dim 1 : vector<2x128xf32>, i32 -> vector<2x128xf32>
    %cst_79 = arith.constant 0.000000e+00 : f32
    %188 = vector.broadcast %cst_79 : f32 to vector<2x128xf32>
    %189 = arith.select %186, %187, %188 : vector<2x128xi1>, vector<2x128xf32>
    %190 = vector.broadcast %166 : vector<1x1xf32> to vector<2x128xf32>
    %191 = arith.mulf %190, %146 : vector<2x128xf32>
    %192 = arith.addf %174, %184 : vector<2x128xf32>
    %193 = vector.broadcast %167 : vector<1x1xf32> to vector<2x128xf32>
    %194 = arith.mulf %193, %192 : vector<2x128xf32>
    %195 = arith.addf %191, %194 : vector<2x128xf32>
    %196 = arith.addf %179, %189 : vector<2x128xf32>
    %197 = vector.broadcast %168 : vector<1x1xf32> to vector<2x128xf32>
    %198 = arith.mulf %197, %196 : vector<2x128xf32>
    %199 = arith.addf %195, %198 : vector<2x128xf32>
    %cst_80 = arith.constant dense<0xFF800000> : vector<2xf32>
    %200 = vector.multi_reduction <maximumf>, %199, %cst_80 [1] : vector<2x128xf32> to vector<2xf32>
    %201 = vector.shape_cast %200 : vector<2xf32> to vector<2x1xf32>
    %202 = vector.broadcast %201 : vector<2x1xf32> to vector<2x128xf32>
    %203 = arith.subf %199, %202 : vector<2x128xf32>
    %204 = math.exp %203 : vector<2x128xf32>
    %cst_81 = arith.constant dense<0.000000e+00> : vector<2xf32>
    %205 = vector.multi_reduction <add>, %204, %cst_81 [1] : vector<2x128xf32> to vector<2xf32>
    %206 = vector.shape_cast %205 : vector<2xf32> to vector<2x1xf32>
    %207 = vector.broadcast %206 : vector<2x1xf32> to vector<2x128xf32>
    %208 = arith.divf %204, %207 : vector<2x128xf32>
    %c0_82 = arith.constant 0 : index
    %c0_83 = arith.constant 0 : index
    %209 = vector.load %arg18[%c0_82, %c0_83] : memref<2x128xf32, #tpu.memory_space<vmem>>, vector<2x128xf32>
    tpu.vector_store %arg18[%c0_82, %c0_83], %208 {strides = array<i32>} : memref<2x128xf32, #tpu.memory_space<vmem>>, vector<2x128xf32>,
    return
  }
  func.func @transform_0(%arg0: i32) -> (i32, i32, i32) {
    %c0_i32 = arith.constant 0 : i32
    %c0_i32_0 = arith.constant 0 : i32
    %c0_i32_1 = arith.constant 0 : i32
    return %arg0, %c0_i32, %c0_i32_0 : i32, i32, i32
  }
  func.func @transform_1(%arg0: i32) -> (i32, i32) {
    %c0_i32 = arith.constant 0 : i32
    %c0_i32_0 = arith.constant 0 : i32
    return %arg0, %c0_i32 : i32, i32
  }
  func.func @transform_2(%arg0: i32) -> (i32, i32) {
    %c0_i32 = arith.constant 0 : i32
    %c0_i32_0 = arith.constant 0 : i32
    %c0_i32_1 = arith.constant 0 : i32
    return %c0_i32, %c0_i32_0 : i32, i32
  }
  func.func @transform_3(%arg0: i32) -> (i32, i32) {
    %c0_i32 = arith.constant 0 : i32
    %c0_i32_0 = arith.constant 0 : i32
    %c0_i32_1 = arith.constant 0 : i32
    return %c0_i32, %c0_i32_0 : i32, i32
  }
  func.func @transform_4(%arg0: i32) -> (i32, i32) {
    %c0_i32 = arith.constant 0 : i32
    %c0_i32_0 = arith.constant 0 : i32
    %c0_i32_1 = arith.constant 0 : i32
    return %c0_i32, %c0_i32_0 : i32, i32
  }
  func.func @transform_5(%arg0: i32) -> (i32, i32) {
    %c0_i32 = arith.constant 0 : i32
    %c0_i32_0 = arith.constant 0 : i32
    %c0_i32_1 = arith.constant 0 : i32
    return %c0_i32, %c0_i32_0 : i32, i32
  }
  func.func @transform_6(%arg0: i32) -> (i32, i32) {
    %c0_i32 = arith.constant 0 : i32
    %c0_i32_0 = arith.constant 0 : i32
    %c0_i32_1 = arith.constant 0 : i32
    return %c0_i32, %c0_i32_0 : i32, i32
  }
  func.func @transform_7(%arg0: i32) -> (i32, i32) {
    %c0_i32 = arith.constant 0 : i32
    %c0_i32_0 = arith.constant 0 : i32
    %c0_i32_1 = arith.constant 0 : i32
    return %c0_i32, %c0_i32_0 : i32, i32
  }
  func.func @transform_8(%arg0: i32) -> (i32, i32) {
    %c0_i32 = arith.constant 0 : i32
    %c0_i32_0 = arith.constant 0 : i32
    %c0_i32_1 = arith.constant 0 : i32
    return %c0_i32, %c0_i32_0 : i32, i32
  }
  func.func @transform_9(%arg0: i32) -> (i32, i32) {
    %c0_i32 = arith.constant 0 : i32
    %c0_i32_0 = arith.constant 0 : i32
    %c0_i32_1 = arith.constant 0 : i32
    return %c0_i32, %c0_i32_0 : i32, i32
  }
  func.func @transform_10(%arg0: i32) -> (i32, i32) {
    %c0_i32 = arith.constant 0 : i32
    %c0_i32_0 = arith.constant 0 : i32
    %c0_i32_1 = arith.constant 0 : i32
    return %c0_i32, %c0_i32_0 : i32, i32
  }
  func.func @transform_11(%arg0: i32) -> (i32, i32) {
    %c0_i32 = arith.constant 0 : i32
    %c0_i32_0 = arith.constant 0 : i32
    %c0_i32_1 = arith.constant 0 : i32
    return %c0_i32, %c0_i32_0 : i32, i32
  }
  func.func @transform_12(%arg0: i32) -> (i32, i32) {
    %c0_i32 = arith.constant 0 : i32
    %c0_i32_0 = arith.constant 0 : i32
    %c0_i32_1 = arith.constant 0 : i32
    return %c0_i32, %c0_i32_0 : i32, i32
  }
  func.func @transform_13(%arg0: i32) -> (i32, i32) {
    %c0_i32 = arith.constant 0 : i32
    %c0_i32_0 = arith.constant 0 : i32
    %c0_i32_1 = arith.constant 0 : i32
    return %c0_i32, %c0_i32_0 : i32, i32
  }
  func.func @transform_14(%arg0: i32) -> (i32, i32, i32) {
    %c0_i32 = arith.constant 0 : i32
    %c0_i32_0 = arith.constant 0 : i32
    %c0_i32_1 = arith.constant 0 : i32
    %c0_i32_2 = arith.constant 0 : i32
    return %c0_i32, %c0_i32_0, %c0_i32_1 : i32, i32, i32
  }
  func.func @transform_15(%arg0: i32) -> i32 {
    %c0_i32 = arith.constant 0 : i32
    %c0_i32_0 = arith.constant 0 : i32
    return %c0_i32 : i32
  }
  func.func @transform_16(%arg0: i32) -> (i32, i32) {
    %c0_i32 = arith.constant 0 : i32
    %c0_i32_0 = arith.constant 0 : i32
    return %arg0, %c0_i32 : i32, i32
  }
  func.func @transform_17(%arg0: i32) -> (i32, i32) {
    %c0_i32 = arith.constant 0 : i32
    %c0_i32_0 = arith.constant 0 : i32
    return %arg0, %c0_i32 : i32, i32
  }
}

</mosaic_0001>

<bundles_post_ra>
// kernel: grounding_module_forward.1
= control target key start
LH: loop header
LB: loop body
LE: loop exit
PB: predicated region body
PF: predicated region fallthrough
CT: control target
= control target key end

     0   :  { %s8697_s0 = inlined_call_operand.hbm [shape: f32[2,128,128], index: 0, kind: input, shape index: {}]   ;;  %s8698_s1 = inlined_call_operand.vmem [shape: f32[2,128], index: 1, kind: input, shape index: {}]   ;;  %s8699_s2 = inlined_call_operand.vmem [shape: f32[1,128], index: 2, kind: input, shape index: {}]   ;;  %s8700_s3 = inlined_call_operand.vmem [shape: f32[1,128], index: 3, kind: input, shape index: {}]   ;;  %s8701_s4 = inlined_call_operand.vmem [shape: f32[128,128], index: 4, kind: input, shape index: {}]   ;;  %s8702_s5 = inlined_call_operand.vmem [shape: f32[1,128], index: 5, kind: input, shape index: {}]   ;;  %s8703_s6 = inlined_call_operand.vmem [shape: f32[1,128], index: 6, kind: input, shape index: {}]   ;;  %s8704_s7 = inlined_call_operand.vmem [shape: f32[1,128], index: 7, kind: input, shape index: {}]   ;;  %s8705_s8 = inlined_call_operand.hbm [shape: f32[128,128], index: 8, kind: input, shape index: {}]   ;;  %s8706_s9 = inlined_call_operand.vmem [shape: f32[1,128], index: 9, kind: input, shape index: {}]   ;;  %s8707_s10 = inlined_call_operand.vmem [shape: f32[1,128], index: 10, kind: input, shape index: {}]   ;;  %s8708_s11 = inlined_call_operand.vmem [shape: f32[1,128], index: 11, kind: input, shape index: {}]   ;;  %s8709_s12 = inlined_call_operand.vmem [shape: f32[128,64], index: 12, kind: input, shape index: {}]   ;;  %s8710_s13 = inlined_call_operand.vmem [shape: f32[1,64], index: 13, kind: input, shape index: {}]   ;;  %s8711_s14 = inlined_call_operand.vmem [shape: f32[1,1,64], index: 14, kind: input, shape index: {}]   ;;  %s8712_s15 = inlined_call_operand.vmem [shape: f32[2], index: 15, kind: input, shape index: {}]   ;;  %s8713_s16 = inlined_call_operand.hbm [shape: f32[2,128], index: 16, kind: output, shape index: {0}]   ;;  %s8714_s17 = inlined_call_operand.vmem [shape: f32[2,128], index: 17, kind: output, shape index: {1}]  }
   0x1   :  { %8811 = sst [smem:[#allocation52_spill]] %s8697_s0 }
   0x2   :  { %8812 = sst [smem:[#allocation53_spill]] %s8698_s1 }
   0x3   :  { %23 = vsyncpa [#allocation3], 0 }
   0x4   :  { %24 = vsyncpa [#allocation7], 0 }
   0x5   :  { %25 = vsyncpa [#allocation5], 0 }
   0x6   :  { %26 = vsyncpa [#allocation4], 0  ;;  %s5650_s24 = smov [#allocation2]  }
   0x7   :  { %s32_s25 = sshll.u32 %s5650_s24, 4  ;;  %s33_s25 = int_to_ptr.vmem [resolvable:$true] %s32_s25 }
   0x8   :  { %s5578_s26 = scalar_lea.vmem %s33_s25, 4096  ;;  %p5583_p1 = scmp.lt.s32.totalorder %s33_s25, %s33_s25 }
   0x9   :  { %p5579_p0 = scmp.ne.s32.totalorder %s33_s25, %s5578_s26  ;;  %p5584_p2 = scmp.lt.s32.totalorder %s5578_s26, %s5578_s26 }
   0xb   :  { %p5585_p3 = por %p5584_p2, %p5583_p1 }
   0xd   :  { %p5586_p4 = pnand %p5585_p3, %p5579_p0 }
   0xf   :  { %5589 = shalt.err (!%p5586_p4)
}
  0x10   :  { %s5651_s27 = smov 128   ;;  %s5652_s28 = smov 8  }
  0x11   :  { %s8813_s30 = sld [smem:[#allocation52_spill]]  ;;  %s5653_s18 = smov [#allocation6]  }
  0x12   :  { %s58_s19 = sshll.u32 %s5653_s18, 4  ;;  %s83_s21 = sshll.u32 %s8712_s15, 4  ;;  %s59_s19 = int_to_ptr.vmem [resolvable:$true] %s58_s19  ;;  %s84_s21 = int_to_ptr.vmem [resolvable:$true] %s83_s21 }
  0x13   :  { %s5598_s22 = scalar_lea.vmem %s59_s19, 2048  ;;  %p5603_p6 = scmp.lt.s32.totalorder %s59_s19, %s59_s19 }
  0x14   :  { %p5599_p5 = scmp.ne.s32.totalorder %s59_s19, %s5598_s22  ;;  %p5604_p7 = scmp.lt.s32.totalorder %s5598_s22, %s5598_s22 }
  0x16   :  { %p5605_p8 = por %p5604_p7, %p5603_p6 }
  0x17   :  { %38 = dma.hbm_to_vmem [thread:$0]  %s8813_s30, 4096, %s33_s25, [#allocation3], %s5651_s27, %s5651_s27, %s5652_s28  }
  0x18   :  { %p5606_p9 = pnand %p5605_p8, %p5599_p5 }
  0x1a   :  { %5609 = shalt.err (!%p5606_p9)
}
  0x1b   :  { %64 = dma.hbm_to_vmem [thread:$0]  %s8705_s8, 2048, %s59_s19, [#allocation7], %s5651_s27, %s5651_s27, %s5652_s28  }
  0x1c   :  { %s5610_s25 = scalar_lea.vmem %s84_s21, 16  ;;  %p5615_p11 = scmp.lt.s32.totalorder %s84_s21, %s84_s21 }
  0x1d   :  { %p5611_p10 = scmp.ne.s32.totalorder %s84_s21, %s5610_s25  ;;  %p5616_p12 = scmp.lt.s32.totalorder %s5610_s25, %s5610_s25 }
  0x1f   :  { %p5617_p13 = por %p5616_p12, %p5615_p11 }
  0x21   :  { %p5618_p0 = pnand %p5617_p13, %p5611_p10 }
  0x23   :  { %5621 = shalt.err (!%p5618_p0)
}
  0x24   :  { %s5654_s15 = smov [#allocation8]  }
  0x25   :  { %86 = dma.vmem_to_smem %s84_s21, 16, %s5654_s15, [#allocation5]  }
  0x26   :  { %5642 = dma.done.wait [#allocation3], 4096  }
  0x27   :  { %5643 = vsyncadd [#allocation3], 4294963200 }
  0x28   :  { %5644 = dma.done.wait [#allocation7], 2048  }
  0x29   :  { %5645 = vsyncadd [#allocation7], 4294965248 }
  0x2a   :  { %5646 = dma.done.wait [#allocation5], 16  }
  0x2b   :  { %5647 = vsyncadd [#allocation5], 4294967280 }
  0x2c   :  { %96 = sfence }
  0x2d   :  { %v5763_v0 = vld [vmem:[#allocation2] sm:$0xff]  ;;  %v5765_v1 = vld [vmem:[#allocation2 + $0x10] sm:$0xff]  ;;  %v5769_v2 = vld [vmem:[#allocation2 + $0x8] sm:$0xff]  ;;  %s8814_s27 = sld [smem:[#allocation53_spill]]  ;;  %vm8761_vm0 = vcmask 1041408   ;;  %vm5656_vm1 = vmmov 0  }
  0x2e   :  { %132 = vadd.xlane.f32.xlu0 %v5763_v0  ;;  %136 = vadd.xlane.f32.xlu1 %v5765_v1  ;;  %v5771_v3 = vld [vmem:[#allocation2 + $0x18] sm:$0xff]  ;;  %v5775_v4 = vld [vmem:[#allocation2 + $0x20] sm:$0xff]  ;;  %v5777_v5 = vld [vmem:[#allocation2 + $0x28] sm:$0xff]  ;;  %vm2168_vm2 = vcmask 523264   ;;  %vm2341_vm3 = vcmask 130112   ;;  %vm2348_vm4 = vcmask 195712  }
  0x2f   :  { %v5781_v6 = vld [vmem:[#allocation2 + $0x30] sm:$0xff]  ;;  %v5783_v7 = vld [vmem:[#allocation2 + $0x38] sm:$0xff]  ;;  %v5787_v8 = vld [vmem:[#allocation2 + $0x40] sm:$0xff]  ;;  %vm2355_vm5 = vcmask 261312   ;;  %vm2362_vm6 = vcmask 326912   ;;  %vm2369_vm7 = vcmask 392512  }
  0x30   :  { %v5789_v9 = vld [vmem:[#allocation2 + $0x48] sm:$0xff]  ;;  %v5793_v10 = vld [vmem:[#allocation2 + $0x50] sm:$0xff]  ;;  %v5795_v11 = vld [vmem:[#allocation2 + $0x58] sm:$0xff]  ;;  %vm8794_vm8 = vcmask 458112   ;;  %vm8741_vm9 = vcmask 523712   ;;  %vm8740_vm10 = vcmask 589312  }
  0x31   :  { %v5799_v12 = vld [vmem:[#allocation2 + $0x60] sm:$0xff]  ;;  %v5801_v13 = vld [vmem:[#allocation2 + $0x68] sm:$0xff]  ;;  %v5805_v14 = vld [vmem:[#allocation2 + $0x70] sm:$0xff]  ;;  %vm2397_vm11 = vcmask 654912   ;;  %vm2404_vm12 = vcmask 720512   ;;  %vm8721_vm13 = vcmask 786112  }
  0x32   :  { %134 = vadd.xlane.f32.xlu0 %v5769_v2  ;;  %138 = vadd.xlane.f32.xlu1 %v5771_v3  ;;  %v5807_v15 = vld [vmem:[#allocation2 + $0x78] sm:$0xff]  ;;  %v5811_v16 = vld [vmem:[#allocation2 + $0x80] sm:$0xff]  ;;  %v5813_v17 = vld [vmem:[#allocation2 + $0x88] sm:$0xff]  ;;  %vm2418_vm14 = vcmask 851712   ;;  %vm2425_vm15 = vcmask 917312   ;;  %s5660_s26 = smov 1  }
  0x33   :  { %v5817_v18 = vld [vmem:[#allocation2 + $0x90] sm:$0xff]  ;;  %v5819_v19 = vld [vmem:[#allocation2 + $0x98] sm:$0xff]  ;;  %v5823_v20 = vld [vmem:[#allocation2 + $0xa0] sm:$0xff]  ;;  %s5662_s28 = smov 127  }
  0x34   :  { %v5825_v21 = vld [vmem:[#allocation2 + $0xa8] sm:$0xff]  ;;  %v5829_v22 = vld [vmem:[#allocation2 + $0xb0] sm:$0xff]  ;;  %v5831_v23 = vld [vmem:[#allocation2 + $0xb8] sm:$0xff] }
  0x35   :  { %v5835_v24 = vld [vmem:[#allocation2 + $0xc0] sm:$0xff]  ;;  %v5837_v25 = vld [vmem:[#allocation2 + $0xc8] sm:$0xff]  ;;  %v5841_v26 = vld [vmem:[#allocation2 + $0xd0] sm:$0xff] }
  0x36   :  { %140 = vadd.xlane.f32.xlu0 %v5775_v4  ;;  %142 = vadd.xlane.f32.xlu1 %v5777_v5  ;;  %v5843_v27 = vld [vmem:[#allocation2 + $0xd8] sm:$0xff]  ;;  %v5847_v28 = vld [vmem:[#allocation2 + $0xe0] sm:$0xff]  ;;  %v5849_v29 = vld [vmem:[#allocation2 + $0xe8] sm:$0xff] }
  0x37   :  { %v5853_v30 = vld [vmem:[#allocation2 + $0xf0] sm:$0xff]  ;;  %v5855_v31 = vld [vmem:[#allocation2 + $0xf8] sm:$0xff]  ;;  %v5860_v32 = vld [vmem:[%s8814_s27] sm:$0x3]  ;;  %s5661_s27 = smov 126  }
  0x38   :  { %v972_v33 = vsel %vm8761_vm0, %v5860_v32, 0.0  ;;  %v576_v34 = vld [vmem:[%s8701_s4 + $0x78] sm:$0xff]  ;;  %v575_v35 = vld [vmem:[%s8701_s4 + $0x70] sm:$0xff]  ;;  %v574_v36 = vld [vmem:[%s8701_s4 + $0x68] sm:$0xff] }
  0x39   :  { %4893 = vmatprep.subr.mxu0 %v576_v34 }
  0x3a   :  { %144 = vadd.xlane.f32.xlu0 %v5781_v6  ;;  %146 = vadd.xlane.f32.xlu1 %v5783_v7 }
  0x3b   :  { %4894 = vmatpush3.msra.mxu0 %v576_v34 }
  0x3c   :  { %4895 = vmatprep.subr.mxu0 %v575_v35 }
  0x3d   :  { %4896 = vmatpush3.msra.mxu0 %v575_v35  ;;  %v573_v35 = vld [vmem:[%s8701_s4 + $0x60] sm:$0xff] }
  0x3e   :  { %148 = vadd.xlane.f32.xlu0 %v5787_v8  ;;  %150 = vadd.xlane.f32.xlu1 %v5789_v9 }
  0x3f   :  { %4897 = vmatprep.subr.mxu0 %v574_v36 }
  0x40   :  { %4898 = vmatpush3.msra.mxu0 %v574_v36 }
  0x41   :  { %4899 = vmatprep.subr.mxu0 %v573_v35 }
  0x42   :  { %152 = vadd.xlane.f32.xlu0 %v5793_v10  ;;  %154 = vadd.xlane.f32.xlu1 %v5795_v11 }
  0x43   :  { %4900 = vmatpush3.msra.mxu0 %v573_v35 }
  0x46   :  { %156 = vadd.xlane.f32.xlu0 %v5799_v12  ;;  %158 = vadd.xlane.f32.xlu1 %v5801_v13 }
  0x4a   :  { %160 = vadd.xlane.f32.xlu0 %v5805_v14  ;;  %162 = vadd.xlane.f32.xlu1 %v5807_v15 }
  0x4e   :  { %164 = vadd.xlane.f32.xlu0 %v5811_v16  ;;  %166 = vadd.xlane.f32.xlu1 %v5813_v17 }
  0x52   :  { %168 = vadd.xlane.f32.xlu0 %v5817_v18  ;;  %170 = vadd.xlane.f32.xlu1 %v5819_v19 }
  0x56   :  { %172 = vadd.xlane.f32.xlu0 %v5823_v20  ;;  %174 = vadd.xlane.f32.xlu1 %v5825_v21 }
  0x5a   :  { %176 = vadd.xlane.f32.xlu0 %v5829_v22  ;;  %178 = vadd.xlane.f32.xlu1 %v5831_v23 }
  0x5e   :  { %180 = vadd.xlane.f32.xlu0 %v5835_v24  ;;  %182 = vadd.xlane.f32.xlu1 %v5837_v25 }
  0x62   :  { %184 = vadd.xlane.f32.xlu0 %v5841_v26  ;;  %186 = vadd.xlane.f32.xlu1 %v5843_v27 }
  0x66   :  { %188 = vadd.xlane.f32.xlu0 %v5847_v28  ;;  %190 = vadd.xlane.f32.xlu1 %v5849_v29 }
  0x6a   :  { %192 = vadd.xlane.f32.xlu0 %v5853_v30  ;;  %194 = vadd.xlane.f32.xlu1 %v5855_v31 }
  0x6e   :  { %973 = vadd.xlane.f32.xlu0 %v972_v33 }
  0xb7   :  { %v133_v37 = vpop.xlane.xlu0 %132  ;;  %v137_v38 = vpop.xlane.xlu1 %136 }
  0xb8   :  { %v197_v39 = vmul.f32 0.0078125, %v133_v37  ;;  %v199_v40 = vmul.f32 0.0078125, %v137_v38 }
  0xba   :  { %v5876_v41 = vsub.f32 %v5763_v0, %v197_v39  ;;  %v5879_v42 = vsub.f32 %v5765_v1, %v199_v40  ;;  %v572_v39 = vld [vmem:[%s8701_s4 + $0x58] sm:$0xff] }
  0xbb   :  { %v135_v43 = vpop.xlane.xlu0 %134  ;;  %v139_v44 = vpop.xlane.xlu1 %138  ;;  %4901 = vmatprep.subr.mxu0 %v572_v39 }
  0xbc   :  { %v198_v45 = vmul.f32 0.0078125, %v135_v43  ;;  %v261_v46 = vmul.f32 %v5876_v41, %v5876_v41  ;;  %v200_v47 = vmul.f32 0.0078125, %v139_v44  ;;  %v263_v48 = vmul.f32 %v5879_v42, %v5879_v42  ;;  %4902 = vmatpush3.msra.mxu0 %v572_v39 }
  0xbe   :  { %293 = vadd.xlane.f32.xlu1 %v261_v46  ;;  %v5886_v49 = vsub.f32 %v5769_v2, %v198_v45  ;;  %v5889_v50 = vsub.f32 %v5771_v3, %v200_v47  ;;  %v571_v46 = vld [vmem:[%s8701_s4 + $0x50] sm:$0xff] }
  0xbf   :  { %v141_v51 = vpop.xlane.xlu0 %140  ;;  %v143_v52 = vpop.xlane.xlu1 %142  ;;  %4903 = vmatprep.subr.mxu0 %v571_v46 }
  0xc0   :  { %v201_v53 = vmul.f32 0.0078125, %v141_v51  ;;  %v262_v54 = vmul.f32 %v5886_v49, %v5886_v49  ;;  %v202_v55 = vmul.f32 0.0078125, %v143_v52  ;;  %v264_v56 = vmul.f32 %v5889_v50, %v5889_v50  ;;  %4904 = vmatpush3.msra.mxu0 %v571_v46 }
  0xc2   :  { %297 = vadd.xlane.f32.xlu1 %v263_v48  ;;  %295 = vadd.xlane.f32.xlu0 %v262_v54  ;;  %v5896_v57 = vsub.f32 %v5775_v4, %v201_v53  ;;  %v5899_v58 = vsub.f32 %v5777_v5, %v202_v55 }
  0xc3   :  { %v145_v59 = vpop.xlane.xlu0 %144  ;;  %v147_v60 = vpop.xlane.xlu1 %146 }
  0xc4   :  { %v203_v61 = vmul.f32 0.0078125, %v145_v59  ;;  %v265_v62 = vmul.f32 %v5896_v57, %v5896_v57  ;;  %v204_v63 = vmul.f32 0.0078125, %v147_v60  ;;  %v266_v0 = vmul.f32 %v5899_v58, %v5899_v58 }
  0xc6   :  { %299 = vadd.xlane.f32.xlu0 %v264_v56  ;;  %301 = vadd.xlane.f32.xlu1 %v265_v62  ;;  %v5906_v1 = vsub.f32 %v5781_v6, %v203_v61  ;;  %v5909_v2 = vsub.f32 %v5783_v7, %v204_v63  ;;  %v569_v56 = vld [vmem:[%s8701_s4 + $0x40] sm:$0xff] }
  0xc7   :  { %v149_v3 = vpop.xlane.xlu0 %148  ;;  %v151_v4 = vpop.xlane.xlu1 %150 }
  0xc8   :  { %v205_v5 = vmul.f32 0.0078125, %v149_v3  ;;  %v267_v33 = vmul.f32 %v5906_v1, %v5906_v1  ;;  %v206_v34 = vmul.f32 0.0078125, %v151_v4  ;;  %v268_v6 = vmul.f32 %v5909_v2, %v5909_v2 }
  0xca   :  { %303 = vadd.xlane.f32.xlu0 %v266_v0  ;;  %305 = vadd.xlane.f32.xlu1 %v267_v33  ;;  %v5919_v36 = vsub.f32 %v5787_v8, %v205_v5  ;;  %v5922_v7 = vsub.f32 %v5789_v9, %v206_v34 }
  0xcb   :  { %v153_v37 = vpop.xlane.xlu0 %152  ;;  %v155_v38 = vpop.xlane.xlu1 %154 }
  0xcc   :  { %v207_v40 = vmul.f32 0.0078125, %v153_v37  ;;  %v269_v43 = vmul.f32 %v5919_v36, %v5919_v36  ;;  %v208_v44 = vmul.f32 0.0078125, %v155_v38  ;;  %v270_v8 = vmul.f32 %v5922_v7, %v5922_v7  ;;  %v566_v38 = vld [vmem:[%s8701_s4 + $0x28] sm:$0xff] }
  0xce   :  { %307 = vadd.xlane.f32.xlu0 %v268_v6  ;;  %309 = vadd.xlane.f32.xlu1 %v269_v43  ;;  %v5932_v9 = vsub.f32 %v5793_v10, %v207_v40  ;;  %v5935_v45 = vsub.f32 %v5795_v11, %v208_v44  ;;  %v570_v10 = vld [vmem:[%s8701_s4 + $0x48] sm:$0xff]  ;;  %v567_v6 = vld [vmem:[%s8701_s4 + $0x30] sm:$0xff] }
  0xcf   :  { %v157_v47 = vpop.xlane.xlu0 %156  ;;  %v159_v48 = vpop.xlane.xlu1 %158  ;;  %4905 = vmatprep.subr.mxu0 %v570_v10 }
  0xd0   :  { %v209_v51 = vmul.f32 0.0078125, %v157_v47  ;;  %v271_v52 = vmul.f32 %v5932_v9, %v5932_v9  ;;  %v210_v53 = vmul.f32 0.0078125, %v159_v48  ;;  %v272_v11 = vmul.f32 %v5935_v45, %v5935_v45  ;;  %4906 = vmatpush3.msra.mxu0 %v570_v10 }
  0xd1   :  { %4907 = vmatprep.subr.mxu0 %v569_v56 }
  0xd2   :  { %311 = vadd.xlane.f32.xlu0 %v270_v8  ;;  %313 = vadd.xlane.f32.xlu1 %v271_v52  ;;  %v5948_v54 = vsub.f32 %v5799_v12, %v209_v51  ;;  %v5951_v55 = vsub.f32 %v5801_v13, %v210_v53  ;;  %v568_v12 = vld [vmem:[%s8701_s4 + $0x38] sm:$0xff] }
  0xd3   :  { %v161_v59 = vpop.xlane.xlu0 %160  ;;  %v163_v60 = vpop.xlane.xlu1 %162  ;;  %4908 = vmatpush3.msra.mxu0 %v569_v56 }
  0xd4   :  { %v211_v61 = vmul.f32 0.0078125, %v161_v59  ;;  %v273_v62 = vmul.f32 %v5948_v54, %v5948_v54  ;;  %v212_v63 = vmul.f32 0.0078125, %v163_v60  ;;  %v274_v13 = vmul.f32 %v5951_v55, %v5951_v55  ;;  %4909 = vmatprep.subr.mxu0 %v568_v12  ;;  %v563_v59 = vld [vmem:[%s8701_s4 + $0x10] sm:$0xff] }
  0xd5   :  { %4910 = vmatpush3.msra.mxu0 %v568_v12 }
  0xd6   :  { %315 = vadd.xlane.f32.xlu0 %v272_v11  ;;  %317 = vadd.xlane.f32.xlu1 %v273_v62  ;;  %v5964_v0 = vsub.f32 %v5805_v14, %v211_v61  ;;  %v5967_v3 = vsub.f32 %v5807_v15, %v212_v63  ;;  %v564_v11 = vld [vmem:[%s8701_s4 + $0x18] sm:$0xff] }
  0xd7   :  { %v165_v4 = vpop.xlane.xlu0 %164  ;;  %v167_v5 = vpop.xlane.xlu1 %166  ;;  %4911 = vmatprep.subr.mxu0 %v567_v6 }
  0xd8   :  { %v213_v33 = vmul.f32 0.0078125, %v165_v4  ;;  %v275_v34 = vmul.f32 %v5964_v0, %v5964_v0  ;;  %v214_v35 = vmul.f32 0.0078125, %v167_v5  ;;  %v276_v14 = vmul.f32 %v5967_v3, %v5967_v3  ;;  %4912 = vmatpush3.msra.mxu0 %v567_v6 }
  0xd9   :  { %4913 = vmatprep.subr.mxu0 %v566_v38 }
  0xda   :  { %319 = vadd.xlane.f32.xlu0 %v274_v13  ;;  %321 = vadd.xlane.f32.xlu1 %v275_v34  ;;  %v5977_v15 = vsub.f32 %v5811_v16, %v213_v33  ;;  %v5980_v37 = vsub.f32 %v5813_v17, %v214_v35  ;;  %v565_v16 = vld [vmem:[%s8701_s4 + $0x20] sm:$0xff] }
  0xdb   :  { %v169_v39 = vpop.xlane.xlu0 %168  ;;  %v171_v40 = vpop.xlane.xlu1 %170  ;;  %4914 = vmatpush3.msra.mxu0 %v566_v38 }
  0xdc   :  { %v215_v43 = vmul.f32 0.0078125, %v169_v39  ;;  %v277_v44 = vmul.f32 %v5977_v15, %v5977_v15  ;;  %v216_v8 = vmul.f32 0.0078125, %v171_v40  ;;  %v278_v17 = vmul.f32 %v5980_v37, %v5980_v37  ;;  %4915 = vmatprep.subr.mxu0 %v565_v16 }
  0xdd   :  { %4916 = vmatpush3.msra.mxu0 %v565_v16  ;;  %v5655_v16 = vmov 0.0  }
  0xde   :  { %323 = vadd.xlane.f32.xlu0 %v276_v14  ;;  %325 = vadd.xlane.f32.xlu1 %v277_v44  ;;  %v5993_v46 = vsub.f32 %v5817_v18, %v215_v43  ;;  %v5996_v47 = vsub.f32 %v5819_v19, %v216_v8  ;;  %v561_v14 = vld [vmem:[%s8701_s4] sm:$0xff] }
  0xdf   :  { %v173_v48 = vpop.xlane.xlu0 %172  ;;  %v175_v51 = vpop.xlane.xlu1 %174  ;;  %4917 = vmatprep.subr.mxu0 %v564_v11 }
  0xe0   :  { %v217_v52 = vmul.f32 0.0078125, %v173_v48  ;;  %v279_v53 = vmul.f32 %v5993_v46, %v5993_v46  ;;  %v218_v10 = vmul.f32 0.0078125, %v175_v51  ;;  %v280_v18 = vmul.f32 %v5996_v47, %v5996_v47  ;;  %4918 = vmatpush3.msra.mxu0 %v564_v11 }
  0xe1   :  { %4919 = vmatprep.subr.mxu0 %v563_v59 }
  0xe2   :  { %327 = vadd.xlane.f32.xlu0 %v278_v17  ;;  %329 = vadd.xlane.f32.xlu1 %v279_v53  ;;  %v6006_v19 = vsub.f32 %v5823_v20, %v217_v52  ;;  %v6009_v56 = vsub.f32 %v5825_v21, %v218_v10  ;;  %v562_v20 = vld [vmem:[%s8701_s4 + $0x8] sm:$0xff]  ;;  %s5659_s4 = smov 2  }
  0xe3   :  { %v177_v60 = vpop.xlane.xlu0 %176  ;;  %v179_v61 = vpop.xlane.xlu1 %178  ;;  %4920 = vmatpush3.msra.mxu0 %v563_v59 }
  0xe4   :  { %v219_v62 = vmul.f32 0.0078125, %v177_v60  ;;  %v281_v63 = vmul.f32 %v6006_v19, %v6006_v19  ;;  %v220_v12 = vmul.f32 0.0078125, %v179_v61  ;;  %v282_v21 = vmul.f32 %v6009_v56, %v6009_v56  ;;  %4921 = vmatprep.subr.mxu0 %v562_v20 }
  0xe5   :  { %4922 = vmatpush3.msra.mxu0 %v562_v20 }
  0xe6   :  { %331 = vadd.xlane.f32.xlu0 %v280_v18  ;;  %333 = vadd.xlane.f32.xlu1 %v281_v63  ;;  %v6022_v13 = vsub.f32 %v5829_v22, %v219_v62  ;;  %v6025_v4 = vsub.f32 %v5831_v23, %v220_v12 }
  0xe7   :  { %v181_v5 = vpop.xlane.xlu0 %180  ;;  %v183_v33 = vpop.xlane.xlu1 %182  ;;  %4923 = vmatprep.subr.mxu0 %v561_v14 }
  0xe8   :  { %v221_v34 = vmul.f32 0.0078125, %v181_v5  ;;  %v283_v35 = vmul.f32 %v6022_v13, %v6022_v13  ;;  %v222_v6 = vmul.f32 0.0078125, %v183_v33  ;;  %v284_v22 = vmul.f32 %v6025_v4, %v6025_v4  ;;  %4924 = vmatpush3.msra.mxu0 %v561_v14 }
  0xe9   :  { %4973 = vmatprep.subr.mxu0 %v5655_v16 }
  0xea   :  { %335 = vadd.xlane.f32.xlu0 %v282_v21  ;;  %337 = vadd.xlane.f32.xlu1 %v283_v35  ;;  %v6035_v23 = vsub.f32 %v5835_v24, %v221_v34  ;;  %v6038_v38 = vsub.f32 %v5837_v25, %v222_v6 }
  0xeb   :  { %v185_v39 = vpop.xlane.xlu0 %184  ;;  %v187_v40 = vpop.xlane.xlu1 %186 }
  0xec   :  { %v223_v43 = vmul.f32 0.0078125, %v185_v39  ;;  %v285_v44 = vmul.f32 %v6035_v23, %v6035_v23  ;;  %v224_v8 = vmul.f32 0.0078125, %v187_v40  ;;  %v286_v24 = vmul.f32 %v6038_v38, %v6038_v38 }
  0xee   :  { %339 = vadd.xlane.f32.xlu0 %v284_v22  ;;  %341 = vadd.xlane.f32.xlu1 %v285_v44  ;;  %v6046_v25 = vsub.f32 %v5841_v26, %v223_v43  ;;  %v6049_v17 = vsub.f32 %v5843_v27, %v224_v8 }
  0xef   :  { %v189_v48 = vpop.xlane.xlu0 %188  ;;  %v191_v51 = vpop.xlane.xlu1 %190 }
  0xf0   :  { %v225_v52 = vmul.f32 0.0078125, %v189_v48  ;;  %v287_v53 = vmul.f32 %v6046_v25, %v6046_v25  ;;  %v226_v10 = vmul.f32 0.0078125, %v191_v51  ;;  %v288_v11 = vmul.f32 %v6049_v17, %v6049_v17 }
  0xf2   :  { %343 = vadd.xlane.f32.xlu0 %v286_v24  ;;  %345 = vadd.xlane.f32.xlu1 %v287_v53  ;;  %v6056_v18 = vsub.f32 %v5847_v28, %v225_v52  ;;  %v6059_v26 = vsub.f32 %v5849_v29, %v226_v10 }
  0xf3   :  { %v193_v27 = vpop.xlane.xlu0 %192  ;;  %v195_v59 = vpop.xlane.xlu1 %194 }
  0xf4   :  { %v227_v60 = vmul.f32 0.0078125, %v193_v27  ;;  %v289_v61 = vmul.f32 %v6056_v18, %v6056_v18  ;;  %v228_v62 = vmul.f32 0.0078125, %v195_v59  ;;  %v290_v63 = vmul.f32 %v6059_v26, %v6059_v26 }
  0xf6   :  { %347 = vadd.xlane.f32.xlu0 %v288_v11  ;;  %349 = vadd.xlane.f32.xlu1 %v289_v61  ;;  %v6066_v12 = vsub.f32 %v5853_v30, %v227_v60  ;;  %v6069_v28 = vsub.f32 %v5855_v31, %v228_v62 }
  0xf7   :  { %v974_v29 = vpop.xlane.xlu0 %973 }
  0xf8   :  { %v975_v20 = vmul.f32 0.0078125, %v974_v29  ;;  %v291_v21 = vmul.f32 %v6066_v12, %v6066_v12  ;;  %v292_v33 = vmul.f32 %v6069_v28, %v6069_v28 }
  0xfa   :  { %v6074_v5 = vsub.f32 %v5860_v32, %v975_v20  ;;  %351 = vadd.xlane.f32.xlu0 %v290_v63  ;;  %353 = vadd.xlane.f32.xlu1 %v291_v21  ;;  %v6084_v21 = vld [vmem:[%s8699_s2] ss:$0 sm:$0xff]  ;;  %s3258_s2 = sld [smem:[#allocation8]] }
  0xfc   :  { %v977_v30 = vmul.f32 %v6074_v5, %v6074_v5 }
  0xfe   :  { %355 = vadd.xlane.f32.xlu0 %v292_v33  ;;  %v978_v31 = vsel %vm8761_vm0, %v977_v30, 0.0 }
  0xff   :  { %979 = vadd.xlane.f32.xlu1 %v978_v31 }
 0x147   :  { %v294_v34 = vpop.xlane.xlu1 %293 }
 0x148   :  { %v357_v35 = vmul.f32 0.0078125, %v294_v34 }
 0x14a   :  { %v389_v6 = vadd.f32 1e-05, %v357_v35 }
 0x14b   :  { %v298_v14 = vpop.xlane.xlu1 %297  ;;  %v296_v22 = vpop.xlane.xlu0 %295 }
 0x14c   :  { %5104 = vrsqrt.f32 %v389_v6  ;;  %v359_v32 = vmul.f32 0.0078125, %v298_v14  ;;  %v358_v39 = vmul.f32 0.0078125, %v296_v22  ;;  %v6090_v6 = vld [vmem:[%s8700_s3] ss:$0 sm:$0xff]  ;;  %s5663_s3 = smov [#allocation9]  }
 0x14d   :  { %s4754_s29 = sshll.u32 %s5663_s3, 4  ;;  %s4755_s29 = int_to_ptr.vmem [resolvable:$true] %s4754_s29 }
 0x14e   :  { %v391_v40 = vadd.f32 1e-05, %v359_v32  ;;  %v390_v43 = vadd.f32 1e-05, %v358_v39  ;;  %s5622_s0 = scalar_lea.vmem %s4755_s29, 32  ;;  %p5627_p2 = scmp.lt.s32.totalorder %s4755_s29, %s4755_s29 }
 0x14f   :  { %v302_v44 = vpop.xlane.xlu1 %301  ;;  %v300_v8 = vpop.xlane.xlu0 %299  ;;  %p5623_p1 = scmp.ne.s32.totalorder %s4755_s29, %s5622_s0  ;;  %p5628_p3 = scmp.lt.s32.totalorder %s5622_s0, %s5622_s0 }
 0x150   :  { %5106 = vrsqrt.f32 %v391_v40  ;;  %v361_v24 = vmul.f32 0.0078125, %v302_v44  ;;  %v360_v48 = vmul.f32 0.0078125, %v300_v8 }
 0x151   :  { %5108 = vrsqrt.f32 %v390_v43  ;;  %p5629_p4 = por %p5628_p3, %p5627_p2 }
 0x152   :  { %v393_v51 = vadd.f32 1e-05, %v361_v24  ;;  %v392_v52 = vadd.f32 1e-05, %v360_v48 }
 0x153   :  { %v306_v53 = vpop.xlane.xlu1 %305  ;;  %v304_v10 = vpop.xlane.xlu0 %303  ;;  %p5630_p5 = pnand %p5629_p4, %p5623_p1 }
 0x154   :  { %5110 = vrsqrt.f32 %v393_v51  ;;  %v363_v11 = vmul.f32 0.0078125, %v306_v53  ;;  %v362_v27 = vmul.f32 0.0078125, %v304_v10 }
 0x155   :  { %5112 = vrsqrt.f32 %v392_v52 }
 0x156   :  { %v395_v59 = vadd.f32 1e-05, %v363_v11  ;;  %v394_v60 = vadd.f32 1e-05, %v362_v27 }
 0x157   :  { %v310_v61 = vpop.xlane.xlu1 %309  ;;  %v308_v62 = vpop.xlane.xlu0 %307 }
 0x158   :  { %5114 = vrsqrt.f32 %v395_v59  ;;  %v365_v63 = vmul.f32 0.0078125, %v310_v61  ;;  %v364_v29 = vmul.f32 0.0078125, %v308_v62 }
 0x159   :  { %v5105_v20 = vpop.eup %5104  ;;  %5116 = vrsqrt.f32 %v394_v60 }
 0x15a   :  { %v397_v33 = vadd.f32 1e-05, %v365_v63  ;;  %v396_v30 = vadd.f32 1e-05, %v364_v29  ;;  %v453_v31 = vmul.f32 %v5105_v20, %v5876_v41  ;;  %v1014_v20 = vld [vmem:[#allocation6 + $0x78] sm:$0xff] }
 0x15b   :  { %v314_v34 = vpop.xlane.xlu1 %313  ;;  %v312_v35 = vpop.xlane.xlu0 %311 }
 0x15c   :  { %5118 = vrsqrt.f32 %v397_v33  ;;  %v367_v14 = vmul.f32 0.0078125, %v314_v34  ;;  %v366_v22 = vmul.f32 0.0078125, %v312_v35  ;;  %v491_v32 = vmul.f32 %v6084_v21, %v453_v31 }
 0x15d   :  { %v5107_v39 = vpop.eup %5106  ;;  %5120 = vrsqrt.f32 %v396_v30 }
 0x15e   :  { %v5109_v40 = vpop.eup %5108  ;;  %v399_v43 = vadd.f32 1e-05, %v367_v14  ;;  %v398_v44 = vadd.f32 1e-05, %v366_v22  ;;  %v529_v8 = vadd.f32 %v6090_v6, %v491_v32  ;;  %v455_v41 = vmul.f32 %v5107_v39, %v5879_v42  ;;  %v1013_v22 = vld [vmem:[#allocation6 + $0x70] sm:$0xff] }
 0x15f   :  { %v318_v24 = vpop.xlane.xlu1 %317  ;;  %v316_v48 = vpop.xlane.xlu0 %315  ;;  %v454_v51 = vmul.f32 %v5109_v40, %v5886_v49 }
 0x160   :  { %5122 = vrsqrt.f32 %v399_v43  ;;  %v369_v52 = vmul.f32 0.0078125, %v318_v24  ;;  %v368_v53 = vmul.f32 0.0078125, %v316_v48  ;;  %4925 = vmatprep.mubr.f32.mxu0 %v529_v8  ;;  %v493_v10 = vmul.f32 %v6084_v21, %v455_v41  ;;  %v1012_v24 = vld [vmem:[#allocation6 + $0x68] sm:$0xff] }
 0x161   :  { %v5111_v11 = vpop.eup %5110  ;;  %5124 = vrsqrt.f32 %v398_v44  ;;  %v492_v27 = vmul.f32 %v6084_v21, %v454_v51 }
 0x162   :  { %v5113_v59 = vpop.eup %5112  ;;  %v401_v60 = vadd.f32 1e-05, %v369_v52  ;;  %v400_v61 = vadd.f32 1e-05, %v368_v53  ;;  %v531_v62 = vadd.f32 %v6090_v6, %v493_v10  ;;  %v457_v42 = vmul.f32 %v5111_v11, %v5896_v57  ;;  %v1011_v10 = vld [vmem:[#allocation6 + $0x60] sm:$0xff] }
 0x163   :  { %v322_v63 = vpop.xlane.xlu1 %321  ;;  %v320_v29 = vpop.xlane.xlu0 %319  ;;  %v530_v49 = vadd.f32 %v6090_v6, %v492_v27  ;;  %v456_v33 = vmul.f32 %v5113_v59, %v5889_v50 }
 0x164   :  { %5126 = vrsqrt.f32 %v401_v60  ;;  %v371_v30 = vmul.f32 0.0078125, %v322_v63  ;;  %v370_v31 = vmul.f32 0.0078125, %v320_v29  ;;  %v495_v34 = vmul.f32 %v6084_v21, %v457_v42  ;;  %v1010_v29 = vld [vmem:[#allocation6 + $0x58] sm:$0xff] }
 0x165   :  { %v5115_v35 = vpop.eup %5114  ;;  %5128 = vrsqrt.f32 %v400_v61  ;;  %4926 = vmatmul.mubr.f32.vlgmr.msra.gmra.mxu0 %v530_v49  ;;  %v494_v14 = vmul.f32 %v6084_v21, %v456_v33 }
 0x166   :  { %v5117_v32 = vpop.eup %5116  ;;  %v403_v57 = vadd.f32 1e-05, %v371_v30  ;;  %v402_v39 = vadd.f32 1e-05, %v370_v31  ;;  %4974 = vmatpush3.msra.mxu0 %v1014_v20  ;;  %4928 = vmatprep.mubr.f32.mxu0 %v531_v62  ;;  %v533_v40 = vadd.f32 %v6090_v6, %v495_v34  ;;  %v459_v50 = vmul.f32 %v5115_v35, %v5906_v1  ;;  %v1009_v31 = vld [vmem:[#allocation6 + $0x50] sm:$0xff] }
 0x167   :  { %v326_v43 = vpop.xlane.xlu1 %325  ;;  %4975 = vmatprep.subr.mxu0 %v5655_v16  ;;  %v324_v44 = vpop.xlane.xlu0 %323  ;;  %v532_v8 = vadd.f32 %v6090_v6, %v494_v14  ;;  %v458_v41 = vmul.f32 %v5117_v32, %v5899_v58 }
 0x168   :  { %5130 = vrsqrt.f32 %v403_v57  ;;  %v373_v48 = vmul.f32 0.0078125, %v326_v43  ;;  %v372_v51 = vmul.f32 0.0078125, %v324_v44  ;;  %4976 = vmatpush3.msra.mxu0 %v1013_v22  ;;  %v497_v52 = vmul.f32 %v6084_v21, %v459_v50  ;;  %v1008_v50 = vld [vmem:[#allocation6 + $0x48] sm:$0xff] }
 0x169   :  { %v5119_v53 = vpop.eup %5118  ;;  %5132 = vrsqrt.f32 %v402_v39  ;;  %4929 = vmatmul.mubr.f32.gmra.mxu0 %v532_v8  ;;  %4977 = vmatprep.subr.mxu0 %v5655_v16  ;;  %v496_v1 = vmul.f32 %v6084_v21, %v458_v41 }
 0x16a   :  { %v5121_v11 = vpop.eup %5120  ;;  %v405_v27 = vadd.f32 1e-05, %v373_v48  ;;  %v404_v59 = vadd.f32 1e-05, %v372_v51  ;;  %4931 = vmatprep.mubr.f32.mxu0 %v533_v40  ;;  %4978 = vmatpush3.msra.mxu0 %v1012_v24  ;;  %v535_v58 = vadd.f32 %v6090_v6, %v497_v52  ;;  %v461_v60 = vmul.f32 %v5119_v53, %v5919_v36  ;;  %v1007_v24 = vld [vmem:[#allocation6 + $0x40] sm:$0xff] }
 0x16b   :  { %v330_v61 = vpop.xlane.xlu1 %329  ;;  %v328_v62 = vpop.xlane.xlu0 %327  ;;  %v534_v42 = vadd.f32 %v6090_v6, %v496_v1  ;;  %4979 = vmatprep.subr.mxu0 %v5655_v16  ;;  %v460_v63 = vmul.f32 %v5121_v11, %v5909_v2 }
 0x16c   :  { %5134 = vrsqrt.f32 %v405_v27  ;;  %v375_v49 = vmul.f32 0.0078125, %v330_v61  ;;  %v374_v20 = vmul.f32 0.0078125, %v328_v62  ;;  %4980 = vmatpush3.msra.mxu0 %v1011_v10  ;;  %v499_v33 = vmul.f32 %v6084_v21, %v461_v60 }
 0x16d   :  { %v5123_v30 = vpop.eup %5122  ;;  %5136 = vrsqrt.f32 %v404_v59  ;;  %4932 = vmatmul.mubr.f32.gmra.mxu0 %v534_v42  ;;  %v498_v36 = vmul.f32 %v6084_v21, %v460_v63  ;;  %4981 = vmatprep.subr.mxu0 %v5655_v16  ;;  %v1006_v59 = vld [vmem:[#allocation6 + $0x38] sm:$0xff]  ;;  %v1005_v42 = vld [vmem:[#allocation6 + $0x30] sm:$0xff] }
 0x16e   :  { %v5125_v34 = vpop.eup %5124  ;;  %v407_v35 = vadd.f32 1e-05, %v375_v49  ;;  %v406_v14 = vadd.f32 1e-05, %v374_v20  ;;  %4934 = vmatprep.mubr.f32.mxu0 %v535_v58  ;;  %v537_v2 = vadd.f32 %v6090_v6, %v499_v33  ;;  %4982 = vmatpush3.msra.mxu0 %v1010_v29  ;;  %v463_v22 = vmul.f32 %v5123_v30, %v5932_v9 }
 0x16f   :  { %v334_v32 = vpop.xlane.xlu1 %333  ;;  %v332_v57 = vpop.xlane.xlu0 %331  ;;  %v536_v39 = vadd.f32 %v6090_v6, %v498_v36  ;;  %v462_v40 = vmul.f32 %v5125_v34, %v5922_v7  ;;  %4983 = vmatprep.subr.mxu0 %v5655_v16  ;;  %v1004_v34 = vld [vmem:[#allocation6 + $0x28] sm:$0xff] }
 0x170   :  { %5138 = vrsqrt.f32 %v407_v35  ;;  %v377_v43 = vmul.f32 0.0078125, %v334_v32  ;;  %v376_v44 = vmul.f32 0.0078125, %v332_v57  ;;  %v501_v8 = vmul.f32 %v6084_v21, %v463_v22  ;;  %4984 = vmatpush3.msra.mxu0 %v1009_v31  ;;  %v1003_v32 = vld [vmem:[#allocation6 + $0x20] sm:$0xff] }
 0x171   :  { %v5127_v41 = vpop.eup %5126  ;;  %5140 = vrsqrt.f32 %v406_v14  ;;  %4935 = vmatmul.mubr.f32.gmra.mxu0 %v536_v39  ;;  %v500_v9 = vmul.f32 %v6084_v21, %v462_v40  ;;  %4985 = vmatprep.subr.mxu0 %v5655_v16 }
 0x172   :  { %v5129_v48 = vpop.eup %5128  ;;  %v409_v51 = vadd.f32 1e-05, %v377_v43  ;;  %v408_v7 = vadd.f32 1e-05, %v376_v44  ;;  %4937 = vmatprep.mubr.f32.mxu0 %v537_v2  ;;  %v539_v52 = vadd.f32 %v6090_v6, %v501_v8  ;;  %v465_v53 = vmul.f32 %v5127_v41, %v5948_v54  ;;  %4986 = vmatpush3.msra.mxu0 %v1008_v50 }
 0x173   :  { %v338_v1 = vpop.xlane.xlu1 %337  ;;  %v336_v10 = vpop.xlane.xlu0 %335  ;;  %v538_v11 = vadd.f32 %v6090_v6, %v500_v9  ;;  %v464_v27 = vmul.f32 %v5129_v48, %v5935_v45  ;;  %4987 = vmatprep.subr.mxu0 %v5655_v16  ;;  %v1002_v9 = vld [vmem:[#allocation6 + $0x18] sm:$0xff] }
 0x174   :  { %5142 = vrsqrt.f32 %v409_v51  ;;  %v379_v58 = vmul.f32 0.0078125, %v338_v1  ;;  %v378_v60 = vmul.f32 0.0078125, %v336_v10  ;;  %v503_v61 = vmul.f32 %v6084_v21, %v465_v53  ;;  %4988 = vmatpush3.msra.mxu0 %v1007_v24 }
 0x175   :  { %v5131_v62 = vpop.eup %5130  ;;  %5144 = vrsqrt.f32 %v408_v7  ;;  %4938 = vmatmul.mubr.f32.gmra.mxu0 %v538_v11  ;;  %v502_v54 = vmul.f32 %v6084_v21, %v464_v27  ;;  %4989 = vmatprep.subr.mxu0 %v5655_v16 }
 0x176   :  { %v5133_v63 = vpop.eup %5132  ;;  %v411_v29 = vadd.f32 1e-05, %v379_v58  ;;  %v410_v45 = vadd.f32 1e-05, %v378_v60  ;;  %4940 = vmatprep.mubr.f32.mxu0 %v539_v52  ;;  %v541_v49 = vadd.f32 %v6090_v6, %v503_v61  ;;  %v467_v20 = vmul.f32 %v5131_v62, %v5964_v0  ;;  %4990 = vmatpush3.msra.mxu0 %v1006_v59  ;;  %v1001_v52 = vld [vmem:[#allocation6 + $0x10] sm:$0xff]  ;;  %v1000_v61 = vld [vmem:[#allocation6 + $0x8] sm:$0xff] }
 0x177   :  { %v342_v33 = vpop.xlane.xlu1 %341  ;;  %v340_v30 = vpop.xlane.xlu0 %339  ;;  %v540_v36 = vadd.f32 %v6090_v6, %v502_v54  ;;  %v466_v31 = vmul.f32 %v5133_v63, %v5951_v55  ;;  %4991 = vmatprep.subr.mxu0 %v5655_v16 }
 0x178   :  { %5146 = vrsqrt.f32 %v411_v29  ;;  %v381_v35 = vmul.f32 0.0078125, %v342_v33  ;;  %v380_v14 = vmul.f32 0.0078125, %v340_v30  ;;  %v505_v2 = vmul.f32 %v6084_v21, %v467_v20  ;;  %4992 = vmatpush3.msra.mxu0 %v1005_v42  ;;  %v999_v29 = vld [vmem:[#allocation6] sm:$0xff] }
 0x179   :  { %v5135_v22 = vpop.eup %5134  ;;  %5148 = vrsqrt.f32 %v410_v45  ;;  %4941 = vmatmul.mubr.f32.gmra.mxu0 %v540_v36  ;;  %v504_v0 = vmul.f32 %v6084_v21, %v466_v31  ;;  %4993 = vmatprep.subr.mxu0 %v5655_v16 }
 0x17a   :  { %v5137_v57 = vpop.eup %5136  ;;  %v413_v39 = vadd.f32 1e-05, %v381_v35  ;;  %v412_v55 = vadd.f32 1e-05, %v380_v14  ;;  %4943 = vmatprep.mubr.f32.mxu0 %v541_v49  ;;  %v543_v40 = vadd.f32 %v6090_v6, %v505_v2  ;;  %v469_v50 = vmul.f32 %v5135_v22, %v5977_v15  ;;  %4994 = vmatpush3.msra.mxu0 %v1004_v34 }
 0x17b   :  { %v346_v43 = vpop.xlane.xlu1 %345  ;;  %v344_v44 = vpop.xlane.xlu0 %343  ;;  %v542_v8 = vadd.f32 %v6090_v6, %v504_v0  ;;  %v468_v41 = vmul.f32 %v5137_v57, %v5967_v3  ;;  %4995 = vmatprep.subr.mxu0 %v5655_v16 }
 0x17c   :  { %5150 = vrsqrt.f32 %v413_v39  ;;  %v383_v24 = vmul.f32 0.0078125, %v346_v43  ;;  %v382_v48 = vmul.f32 0.0078125, %v344_v44  ;;  %v507_v51 = vmul.f32 %v6084_v21, %v469_v50  ;;  %4996 = vmatpush3.msra.mxu0 %v1003_v32 }
 0x17d   :  { %v5139_v7 = vpop.eup %5138  ;;  %5152 = vrsqrt.f32 %v412_v55  ;;  %4944 = vmatmul.mubr.f32.gmra.mxu0 %v542_v8  ;;  %v506_v15 = vmul.f32 %v6084_v21, %v468_v41  ;;  %4997 = vmatprep.subr.mxu0 %v5655_v16 }
 0x17e   :  { %v5141_v53 = vpop.eup %5140  ;;  %v415_v1 = vadd.f32 1e-05, %v383_v24  ;;  %v414_v3 = vadd.f32 1e-05, %v382_v48  ;;  %4946 = vmatprep.mubr.f32.mxu0 %v543_v40  ;;  %v545_v10 = vadd.f32 %v6090_v6, %v507_v51  ;;  %v471_v11 = vmul.f32 %v5139_v7, %v5993_v46  ;;  %4998 = vmatpush3.msra.mxu0 %v1002_v9 }
 0x17f   :  { %v350_v27 = vpop.xlane.xlu1 %349  ;;  %v348_v59 = vpop.xlane.xlu0 %347  ;;  %v544_v58 = vadd.f32 %v6090_v6, %v506_v15  ;;  %v470_v60 = vmul.f32 %v5141_v53, %v5980_v37  ;;  %4999 = vmatprep.subr.mxu0 %v5655_v16 }
 0x180   :  { %5154 = vrsqrt.f32 %v415_v1  ;;  %v385_v62 = vmul.f32 0.0078125, %v350_v27  ;;  %v384_v54 = vmul.f32 0.0078125, %v348_v59  ;;  %v509_v42 = vmul.f32 %v6084_v21, %v471_v11  ;;  %5000 = vmatpush3.msra.mxu0 %v1001_v52 }
 0x181   :  { %v5143_v63 = vpop.eup %5142  ;;  %5156 = vrsqrt.f32 %v414_v3  ;;  %4947 = vmatmul.mubr.f32.gmra.mxu0 %v544_v58  ;;  %v508_v46 = vmul.f32 %v6084_v21, %v470_v60  ;;  %5001 = vmatprep.subr.mxu0 %v5655_v16 }
 0x182   :  { %v5145_v45 = vpop.eup %5144  ;;  %v417_v49 = vadd.f32 1e-05, %v385_v62  ;;  %v416_v37 = vadd.f32 1e-05, %v384_v54  ;;  %4949 = vmatprep.mubr.f32.mxu0 %v545_v10  ;;  %v547_v20 = vadd.f32 %v6090_v6, %v509_v42  ;;  %v473_v33 = vmul.f32 %v5143_v63, %v6006_v19  ;;  %5002 = vmatpush3.msra.mxu0 %v1000_v61 }
 0x183   :  { %v354_v30 = vpop.xlane.xlu1 %353  ;;  %v352_v36 = vpop.xlane.xlu0 %351  ;;  %v546_v31 = vadd.f32 %v6090_v6, %v508_v46  ;;  %v472_v34 = vmul.f32 %v5145_v45, %v5996_v47  ;;  %5003 = vmatprep.subr.mxu0 %v5655_v16 }
 0x184   :  { %5158 = vrsqrt.f32 %v417_v49  ;;  %v387_v35 = vmul.f32 0.0078125, %v354_v30  ;;  %v386_v14 = vmul.f32 0.0078125, %v352_v36  ;;  %v511_v2 = vmul.f32 %v6084_v21, %v473_v33  ;;  %5004 = vmatpush3.msra.mxu0 %v999_v29 }
 0x185   :  { %v5147_v22 = vpop.eup %5146  ;;  %5160 = vrsqrt.f32 %v416_v37  ;;  %4950 = vmatmul.mubr.f32.gmra.mxu0 %v546_v31  ;;  %v510_v19 = vmul.f32 %v6084_v21, %v472_v34 }
 0x186   :  { %v5149_v0 = vpop.eup %5148  ;;  %v419_v32 = vadd.f32 1e-05, %v387_v35  ;;  %v418_v57 = vadd.f32 1e-05, %v386_v14  ;;  %4952 = vmatprep.mubr.f32.mxu0 %v547_v20  ;;  %v549_v39 = vadd.f32 %v6090_v6, %v511_v2  ;;  %v475_v47 = vmul.f32 %v5147_v22, %v6022_v13  ;;  %v4773_v22 = vld [vmem:[%s8704_s7] ss:$0 sm:$0xff] }
 0x187   :  { %v356_v55 = vpop.xlane.xlu0 %355  ;;  %v548_v40 = vadd.f32 %v6090_v6, %v510_v19  ;;  %v474_v50 = vmul.f32 %v5149_v0, %v6009_v56 }
 0x188   :  { %5162 = vrsqrt.f32 %v419_v32  ;;  %v388_v43 = vmul.f32 0.0078125, %v356_v55  ;;  %v980_v44 = vpop.xlane.xlu1 %979  ;;  %v513_v8 = vmul.f32 %v6084_v21, %v475_v47 }
 0x189   :  { %v5151_v41 = vpop.eup %5150  ;;  %5164 = vrsqrt.f32 %v418_v57  ;;  %v981_v9 = vmul.f32 0.0078125, %v980_v44  ;;  %4953 = vmatmul.mubr.f32.gmra.mxu0 %v548_v40  ;;  %v512_v24 = vmul.f32 %v6084_v21, %v474_v50 }
 0x18a   :  { %v5153_v48 = vpop.eup %5152  ;;  %v420_v51 = vadd.f32 1e-05, %v388_v43  ;;  %4955 = vmatprep.mubr.f32.mxu0 %v549_v39  ;;  %v551_v13 = vadd.f32 %v6090_v6, %v513_v8  ;;  %v477_v7 = vmul.f32 %v5151_v41, %v6035_v23 }
 0x18b   :  { %v982_v15 = vadd.f32 1e-05, %v981_v9  ;;  %v550_v56 = vadd.f32 %v6090_v6, %v512_v24  ;;  %v476_v52 = vmul.f32 %v5153_v48, %v6025_v4 }
 0x18c   :  { %5166 = vrsqrt.f32 %v420_v51  ;;  %v515_v53 = vmul.f32 %v6084_v21, %v477_v7 }
 0x18d   :  { %v5155_v1 = vpop.eup %5154  ;;  %5168 = vrsqrt.f32 %v982_v15  ;;  %4956 = vmatmul.mubr.f32.gmra.mxu0 %v550_v56  ;;  %v514_v3 = vmul.f32 %v6084_v21, %v476_v52 }
 0x18e   :  { %v5157_v10 = vpop.eup %5156  ;;  %4958 = vmatprep.mubr.f32.mxu0 %v551_v13  ;;  %v553_v11 = vadd.f32 %v6090_v6, %v515_v53  ;;  %v479_v27 = vmul.f32 %v5155_v1, %v6046_v25 }
 0x18f   :  { %v552_v23 = vadd.f32 %v6090_v6, %v514_v3  ;;  %v478_v59 = vmul.f32 %v5157_v10, %v6038_v38  ;;  %v6251_v10 = vld [vmem:[%s8702_s5] ss:$0 sm:$0xff] }
 0x190   :  { %v517_v4 = vmul.f32 %v6084_v21, %v479_v27 }
 0x191   :  { %v5159_v58 = vpop.eup %5158  ;;  %4959 = vmatmul.mubr.f32.gmra.mxu0 %v552_v23  ;;  %v516_v60 = vmul.f32 %v6084_v21, %v478_v59 }
 0x192   :  { %v5161_v61 = vpop.eup %5160  ;;  %4961 = vmatprep.mubr.f32.mxu0 %v553_v11  ;;  %v555_v62 = vadd.f32 %v6090_v6, %v517_v4  ;;  %v481_v54 = vmul.f32 %v5159_v58, %v6056_v18  ;;  %v4774_v58 = vld [vmem:[%s8706_s9] ss:$0 sm:$0xff] }
 0x193   :  { %v554_v42 = vadd.f32 %v6090_v6, %v516_v60  ;;  %v480_v25 = vmul.f32 %v5161_v61, %v6049_v17 }
 0x194   :  { %v519_v63 = vmul.f32 %v6084_v21, %v481_v54 }
 0x195   :  { %v5163_v46 = vpop.eup %5162  ;;  %4962 = vmatmul.mubr.f32.gmra.mxu0 %v554_v42  ;;  %v518_v38 = vmul.f32 %v6084_v21, %v480_v25 }
 0x196   :  { %v5165_v29 = vpop.eup %5164  ;;  %4964 = vmatprep.mubr.f32.mxu0 %v555_v62  ;;  %v557_v45 = vadd.f32 %v6090_v6, %v519_v63  ;;  %v483_v49 = vmul.f32 %v5163_v46, %v6066_v12 }
 0x197   :  { %v556_v37 = vadd.f32 %v6090_v6, %v518_v38  ;;  %v482_v18 = vmul.f32 %v5165_v29, %v6059_v26  ;;  %v4772_v26 = vld [vmem:[%s8703_s6] ss:$0 sm:$0xff] }
 0x198   :  { %v521_v20 = vmul.f32 %v6084_v21, %v483_v49 }
 0x199   :  { %v5167_v33 = vpop.eup %5166  ;;  %4965 = vmatmul.mubr.f32.gmra.mxu0 %v556_v37  ;;  %v520_v17 = vmul.f32 %v6084_v21, %v482_v18  ;;  %v5657_v18 = vmov 1966171168  }
 0x19a   :  { %v5169_v30 = vpop.eup %5168  ;;  %4967 = vmatprep.mubr.f32.mxu0 %v557_v45  ;;  %v559_v36 = vadd.f32 %v6090_v6, %v521_v20  ;;  %v484_v31 = vmul.f32 %v5167_v33, %v6069_v28  ;;  %v1099_v20 = vunpack.c.l.s4 %v5657_v18 }
 0x19b   :  { %v558_v34 = vadd.f32 %v6090_v6, %v520_v17  ;;  %v984_v12 = vmul.f32 %v5169_v30, %v6074_v5  ;;  %v1101_v30 = vlaneseq }
 0x19c   :  { %v522_v35 = vmul.f32 %v6084_v21, %v484_v31 }
 0x19d   :  { %4968 = vmatmul.mubr.f32.gmra.mxu0 %v558_v34  ;;  %v991_v2 = vmul.f32 %v4772_v26, %v984_v12  ;;  %v6294_v26 = vshrl.u32 %v1101_v30, 7 }
 0x19e   :  { %4970 = vmatprep.mubr.f32.mxu0 %v559_v36  ;;  %v560_v14 = vadd.f32 %v6090_v6, %v522_v35  ;;  %v1100_v35 = vunpack.c.0.s8 %v1099_v20 }
 0x19f   :  { %v998_v28 = vadd.f32 %v4773_v22, %v991_v2 }
 0x1a1   :  { %4971 = vmatmul.mubr.f32.gmra.mxu0 %v560_v14 }
 0x1a2   :  { %5005 = vmatprep.mubr.msk.f32.mxu0 %vm5656_vm1, %v5655_v16  ;;  %vm2432_vm1 = vcmask 982912  }
 0x1a5   :  { %5006 = vmatmul.mubr.f32.vlgmr.msra.gmra.mxu0 %v998_v28 }
 0x225   :  { %v4927_v5 = vpop.f32.mrf.mxu0 }
 0x226   :  { %v656_v27 = vadd.f32 %v4927_v5, %v6251_v10 }
 0x227   :  { %v650_v21 = vpop.f32.mrf.mxu0 }
 0x228   :  { %v651_v59 = vadd.f32 %v6251_v10, %v650_v21  ;;  %v842_v60 = vmul.f32 0.70710677, %v656_v27 }
 0x229   :  { %v4930_v19 = vpop.f32.mrf.mxu0 }
 0x22a   :  { %v841_v54 = vmul.f32 0.70710677, %v651_v59  ;;  %v6265_v42 = vadd.f32 %v4930_v19, %v6251_v10  ;;  %5170 = verf.f32 %v842_v60  ;;  %v6304_v19 = vsub.s32 %v1100_v35, %v6294_v26 }
 0x22b   :  { %v660_v0 = vpop.f32.mrf.mxu0 }
 0x22c   :  { %v6268_v63 = vadd.f32 %v6251_v10, %v660_v0  ;;  %v844_v29 = vmul.f32 0.70710677, %v6265_v42 }
 0x22d   :  { %v4933_v32 = vpop.f32.mrf.mxu0 }
 0x22e   :  { %v6271_v38 = vadd.f32 %v4933_v32, %v6251_v10  ;;  %v843_v49 = vmul.f32 0.70710677, %v6268_v63 }
 0x22f   :  { %v670_v57 = vpop.f32.mrf.mxu0 }
 0x230   :  { %v6275_v45 = vadd.f32 %v6251_v10, %v670_v57  ;;  %v846_v37 = vmul.f32 0.70710677, %v6271_v38 }
 0x231   :  { %v4936_v39 = vpop.f32.mrf.mxu0 }
 0x232   :  { %v845_v33 = vmul.f32 0.70710677, %v6275_v45  ;;  %v6281_v17 = vadd.f32 %v4936_v39, %v6251_v10 }
 0x233   :  { %v680_v47 = vpop.f32.mrf.mxu0 }
 0x234   :  { %v6284_v36 = vadd.f32 %v6251_v10, %v680_v47  ;;  %v848_v12 = vmul.f32 0.70710677, %v6281_v17 }
 0x235   :  { %v4939_v6 = vpop.f32.mrf.mxu0 }
 0x236   :  { %v6287_v31 = vadd.f32 %v4939_v6, %v6251_v10  ;;  %v847_v14 = vmul.f32 0.70710677, %v6284_v36 }
 0x237   :  { %v690_v55 = vpop.f32.mrf.mxu0  ;;  %v5171_v22 = vpop.eup %5170 }
 0x238   :  { %v6290_v34 = vadd.f32 %v6251_v10, %v690_v55  ;;  %v850_v2 = vmul.f32 0.70710677, %v6287_v31 }
 0x239   :  { %v6210_v40 = vpop.f32.mrf.mxu0 }
 0x23a   :  { %v849_v28 = vmul.f32 0.70710677, %v6290_v34  ;;  %v6301_v21 = vadd.f32 %v6210_v40, %v6251_v10  ;;  %v906_v40 = vadd.f32 1.0, %v5171_v22  ;;  %v811_v22 = vmul.f32 0.5, %v6268_v63 }
 0x23b   :  { %v6212_v50 = vpop.f32.mrf.mxu0 }
 0x23c   :  { %v6308_v32 = vadd.f32 %v6251_v10, %v6212_v50  ;;  %v810_v50 = vmul.f32 0.5, %v656_v27 }
 0x23d   :  { %v6214_v43 = vpop.f32.mrf.mxu0 }
 0x23e   :  { %v6312_v47 = vadd.f32 %v6214_v43, %v6251_v10  ;;  %v6324_v43 = vsub.s32 0, %v6294_v26 }
 0x23f   :  { %v6216_v44 = vpop.f32.mrf.mxu0 }
 0x240   :  { %v6316_v6 = vadd.f32 %v6251_v10, %v6216_v44  ;;  %8815 = vst [vmem:[#allocation14_spill] sm:$0xff] %v6324_v43  ;;  %v854_v44 = vmul.f32 0.70710677, %v6312_v47 }
 0x241   :  { %v6218_v16 = vpop.f32.mrf.mxu0 }
 0x242   :  { %v6334_v18 = vadd.f32 %v6218_v16, %v6251_v10 }
 0x243   :  { %v6220_v8 = vpop.f32.mrf.mxu0 }
 0x245   :  { %v6222_v41 = vpop.f32.mrf.mxu0 }
 0x246   :  { %v6349_v16 = vadd.f32 %v6222_v41, %v6251_v10 }
 0x247   :  { %v6224_v9 = vpop.f32.mrf.mxu0 }
 0x249   :  { %v6226_v24 = vpop.f32.mrf.mxu0 }
 0x24b   :  { %v6228_v48 = vpop.f32.mrf.mxu0 }
 0x24d   :  { %v6230_v51 = vpop.f32.mrf.mxu0 }
 0x24f   :  { %v6232_v13 = vpop.f32.mrf.mxu0 }
 0x251   :  { %v6234_v7 = vpop.f32.mrf.mxu0 }
 0x253   :  { %v6236_v15 = vpop.f32.mrf.mxu0 }
 0x255   :  { %v6238_v56 = vpop.f32.mrf.mxu0 }
 0x257   :  { %v6240_v52 = vpop.f32.mrf.mxu0 }
 0x259   :  { %v6242_v53 = vpop.f32.mrf.mxu0 }
 0x25b   :  { %v6244_v1 = vpop.f32.mrf.mxu0 }
 0x25d   :  { %v6246_v3 = vpop.f32.mrf.mxu0 }
 0x25f   :  { %v6253_v11 = vpop.f32.mrf.mxu0 }
 0x261   :  { %v6256_v23 = vpop.f32.mrf.mxu0 }
 0x263   :  { %v6259_v4 = vpop.f32.mrf.mxu0 }
 0x265   :  { %v1088_v61 = vpop.f32.mrf.mxu0 }
 0x266   :  { %v1089_v62 = vadd.f32 %v4774_v58, %v1088_v61  ;;  %v852_v58 = vmul.f32 0.70710677, %v6301_v21 }
 0x267   :  { %v5007_v25 = vpop.f32.mrf.mxu0 }
 0x268   :  { %v1093_v46 = vmul.f32 0.70710677, %v1089_v62  ;;  %v1092_v57 = vmul.f32 0.5, %v1089_v62  ;;  %v851_v62 = vmul.f32 0.70710677, %v6308_v32 }
 0x26a   :  { %5172 = verf.f32 %v1093_v46  ;;  %v809_v46 = vmul.f32 0.5, %v651_v59  ;;  %v6340_v59 = vadd.f32 %v6251_v10, %v6220_v8 }
 0x26b   :  { %5174 = verf.f32 %v841_v54 }
 0x26c   :  { %5176 = verf.f32 %v844_v29  ;;  %v853_v29 = vmul.f32 0.70710677, %v6316_v6 }
 0x26d   :  { %5178 = verf.f32 %v843_v49 }
 0x26e   :  { %5180 = verf.f32 %v846_v37  ;;  %v6330_v37 = vmul.f32 %v906_v40, %v810_v50  ;;  %v814_v40 = vmul.f32 0.5, %v6271_v38 }
 0x26f   :  { %5182 = verf.f32 %v845_v33 }
 0x270   :  { %5184 = verf.f32 %v848_v12 }
 0x271   :  { %5186 = verf.f32 %v847_v14 }
 0x272   :  { %5188 = verf.f32 %v850_v2  ;;  %v812_v2 = vmul.f32 0.5, %v6265_v42  ;;  %v856_v42 = vmul.f32 0.70710677, %v6334_v18 }
 0x273   :  { %5190 = verf.f32 %v849_v28  ;;  %v6353_v28 = vadd.f32 %v6251_v10, %v6224_v9 }
 0x274   :  { %5192 = verf.f32 %v852_v58  ;;  %v813_v58 = vmul.f32 0.5, %v6275_v45 }
 0x275   :  { %5194 = verf.f32 %v851_v62  ;;  %v857_v50 = vmul.f32 0.70710677, %v6353_v28 }
 0x276   :  { %5196 = verf.f32 %v854_v44  ;;  %v6375_v44 = vadd.f32 %v6226_v24, %v6251_v10 }
 0x277   :  { %v5173_v5 = vpop.eup %5172  ;;  %5198 = verf.f32 %v853_v29  ;;  %v6383_v29 = vadd.f32 %v6251_v10, %v6228_v48  ;;  %v818_v48 = vmul.f32 0.5, %v6287_v31 }
 0x278   :  { %v5175_v0 = vpop.eup %5174  ;;  %v1095_v39 = vadd.f32 1.0, %v5173_v5  ;;  %5200 = verf.f32 %v856_v42 }
 0x279   :  { %v905_v60 = vadd.f32 1.0, %v5175_v0  ;;  %v5177_v61 = vpop.eup %5176  ;;  %v859_v42 = vmul.f32 0.70710677, %v6383_v29 }
 0x27a   :  { %v1096_v55 = vmul.f32 %v1095_v39, %v1092_v57  ;;  %v5179_v25 = vpop.eup %5178  ;;  %v908_v33 = vadd.f32 1.0, %v5177_v61  ;;  %v855_v39 = vmul.f32 0.70710677, %v6340_v59 }
 0x27b   :  { %v5181_v27 = vpop.eup %5180  ;;  %v6336_v20 = vmul.f32 %v905_v60, %v809_v46  ;;  %v907_v14 = vadd.f32 1.0, %v5179_v25  ;;  %v858_v60 = vmul.f32 0.70710677, %v6349_v16 }
 0x27c   :  { %v6321_v54 = vrot.slane %v1096_v55, %v6304_v19  ;;  %v5183_v12 = vpop.eup %5182  ;;  %v910_v0 = vadd.f32 1.0, %v5181_v27  ;;  %v6361_v41 = vmul.f32 %v908_v33, %v812_v2  ;;  %5202 = verf.f32 %v855_v39 }
 0x27d   :  { %v909_v63 = vadd.f32 1.0, %v5183_v12  ;;  %v5185_v57 = vpop.eup %5184  ;;  %v6363_v55 = vmul.f32 %v907_v14, %v811_v22  ;;  %v816_v33 = vmul.f32 0.5, %v6281_v17  ;;  %v815_v12 = vmul.f32 0.5, %v6284_v36 }
 0x27e   :  { %v1112_v49 = vrot.slane %v6321_v54, %v6304_v19  ;;  %v5187_v9 = vpop.eup %5186  ;;  %v6377_v38 = vmul.f32 %v910_v0, %v814_v40  ;;  %5204 = verf.f32 %v858_v60  ;;  %v6396_v17 = vadd.f32 %v6230_v51, %v6251_v10 }
 0x27f   :  { %v5189_v61 = vpop.eup %5188  ;;  %v6379_v45 = vmul.f32 %v909_v63, %v813_v58  ;;  %v911_v27 = vadd.f32 1.0, %v5187_v9  ;;  %5206 = verf.f32 %v857_v50  ;;  %v6401_v0 = vadd.f32 %v6251_v10, %v6232_v13 }
 0x280   :  { %v6343_v35 = vrot.slane %v1112_v49, %v6324_v43  ;;  %v5191_v46 = vpop.eup %5190  ;;  %v912_v49 = vadd.f32 1.0, %v5185_v57  ;;  %v914_v24 = vadd.f32 1.0, %v5189_v61  ;;  %v862_v58 = vmul.f32 0.70710677, %v6396_v17 }
 0x281   :  { %v913_v22 = vadd.f32 1.0, %v5191_v46  ;;  %v5193_v36 = vpop.eup %5192  ;;  %v6405_v31 = vmul.f32 %v911_v27, %v815_v12  ;;  %v6418_v60 = vadd.f32 %v6234_v7, %v6251_v10  ;;  %v861_v50 = vmul.f32 0.70710677, %v6401_v0 }
 0x282   :  { %v1131_v8 = vmul.f32 %v6343_v35, %v6330_v37  ;;  %v1130_v5 = vmul.f32 %v6343_v35, %v6336_v20  ;;  %v1133_v62 = vmul.f32 %v6343_v35, %v6361_v41  ;;  %v1132_v25 = vmul.f32 %v6343_v35, %v6363_v55 }
 0x283   :  { %v1135_v14 = vmul.f32 %v6343_v35, %v6377_v38  ;;  %v1134_v2 = vmul.f32 %v6343_v35, %v6379_v45  ;;  %v6403_v63 = vmul.f32 %v912_v49, %v816_v33  ;;  %v1136_v51 = vmul.f32 %v6343_v35, %v6405_v31 }
 0x284   :  { %1164 = vadd.xlane.f32.xlu1 %v1131_v8  ;;  %1162 = vadd.xlane.f32.xlu0 %v1130_v5  ;;  %v817_v8 = vmul.f32 0.5, %v6290_v34  ;;  %v860_v5 = vmul.f32 0.70710677, %v6375_v44  ;;  %v5195_v34 = vpop.eup %5194  ;;  %v6411_v9 = vmul.f32 %v914_v24, %v818_v48  ;;  %v916_v61 = vadd.f32 1.0, %v5193_v36 }
 0x285   :  { %v5197_v57 = vpop.eup %5196  ;;  %v1137_v39 = vmul.f32 %v6343_v35, %v6403_v63  ;;  %v820_v46 = vmul.f32 0.5, %v6301_v21  ;;  %v819_v49 = vmul.f32 0.5, %v6308_v32  ;;  %v822_v27 = vmul.f32 0.5, %v6312_v47 }
 0x286   :  { %v6413_v40 = vmul.f32 %v913_v22, %v817_v8  ;;  %v5199_v13 = vpop.eup %5198  ;;  %5208 = verf.f32 %v860_v5  ;;  %v918_v33 = vadd.f32 1.0, %v5197_v57  ;;  %v821_v7 = vmul.f32 0.5, %v6316_v6 }
 0x287   :  { %5210 = verf.f32 %v859_v42  ;;  %v1139_v12 = vmul.f32 %v6343_v35, %v6411_v9  ;;  %v6436_v21 = vadd.f32 %v6238_v56, %v6251_v10  ;;  %v6438_v32 = vmul.f32 %v916_v61, %v820_v46  ;;  %v5201_v47 = vpop.eup %5200 }
 0x288   :  { %1168 = vadd.xlane.f32.xlu1 %v1133_v62  ;;  %1166 = vadd.xlane.f32.xlu0 %v1132_v25  ;;  %v6423_v62 = vadd.f32 %v6251_v10, %v6236_v15  ;;  %v915_v25 = vadd.f32 1.0, %v5195_v34  ;;  %v1138_v24 = vmul.f32 %v6343_v35, %v6413_v40  ;;  %v917_v15 = vadd.f32 1.0, %v5199_v13 }
 0x289   :  { %5212 = verf.f32 %v862_v58  ;;  %v5203_v48 = vpop.eup %5202  ;;  %v824_v8 = vmul.f32 0.5, %v6334_v18  ;;  %v6448_v5 = vmul.f32 %v918_v33, %v822_v27  ;;  %v1105_v36 = vcombine.high %v6321_v54, %v6321_v54 }
 0x28a   :  { %5214 = verf.f32 %v861_v50  ;;  %v863_v6 = vmul.f32 0.70710677, %v6423_v62  ;;  %v6445_v22 = vmul.f32 %v915_v25, %v819_v49  ;;  %v1141_v42 = vmul.f32 %v6343_v35, %v6438_v32 }
 0x28b   :  { %v5205_v56 = vpop.eup %5204  ;;  %v6456_v34 = vmul.f32 %v917_v15, %v821_v7  ;;  %v6461_v18 = vadd.f32 %v6242_v53, %v6251_v10  ;;  %v6466_v13 = vadd.f32 %v6251_v10, %v6244_v1  ;;  %v919_v58 = vadd.f32 1.0, %v5203_v48 }
 0x28c   :  { %1172 = vadd.xlane.f32.xlu1 %v1135_v14  ;;  %1170 = vadd.xlane.f32.xlu0 %v1134_v2  ;;  %v864_v14 = vmul.f32 0.70710677, %v6418_v60  ;;  %v6443_v2 = vadd.f32 %v6251_v10, %v6240_v52  ;;  %v1140_v52 = vmul.f32 %v6343_v35, %v6445_v22  ;;  %v5207_v57 = vpop.eup %5206  ;;  %v823_v61 = vmul.f32 0.5, %v6340_v59 }
 0x28d   :  { %v826_v50 = vmul.f32 0.5, %v6349_v16  ;;  %v825_v25 = vmul.f32 0.5, %v6353_v28  ;;  %v922_v46 = vadd.f32 1.0, %v5205_v56  ;;  %v1119_v53 = vrot.slane %v1105_v36, %v6304_v19 }
 0x28e   :  { %5216 = verf.f32 %v864_v14  ;;  %v865_v54 = vmul.f32 0.70710677, %v6443_v2  ;;  %v1143_v49 = vmul.f32 %v6343_v35, %v6448_v5  ;;  %v1142_v27 = vmul.f32 %v6343_v35, %v6456_v34 }
 0x28f   :  { %5218 = verf.f32 %v863_v6  ;;  %v921_v1 = vadd.f32 1.0, %v5207_v57  ;;  %v868_v33 = vmul.f32 0.70710677, %v6461_v18  ;;  %v6479_v59 = vadd.f32 %v6246_v3, %v6251_v10 }
 0x290   :  { %1176 = vadd.xlane.f32.xlu1 %v1137_v39  ;;  %1174 = vadd.xlane.f32.xlu0 %v1136_v51  ;;  %v866_v39 = vmul.f32 0.70710677, %v6436_v21  ;;  %v920_v51 = vadd.f32 1.0, %v5201_v47  ;;  %v867_v19 = vmul.f32 0.70710677, %v6466_v13  ;;  %v6486_v7 = vadd.f32 %v6251_v10, %v6253_v11 }
 0x291   :  { %v6490_v15 = vmul.f32 %v922_v46, %v826_v50  ;;  %v6493_v3 = vrot.slane %v1119_v53, %v6324_v43  ;;  %v6499_v6 = vmul.f32 %v921_v1, %v825_v25  ;;  %v870_v11 = vmul.f32 0.70710677, %v6479_v59 }
 0x292   :  { %5220 = verf.f32 %v866_v39  ;;  %v6481_v16 = vmul.f32 %v920_v51, %v824_v8  ;;  %v6504_v48 = vadd.f32 %v6256_v23, %v6251_v10  ;;  %v869_v36 = vmul.f32 0.70710677, %v6486_v7 }
 0x293   :  { %v5209_v28 = vpop.eup %5208  ;;  %5222 = verf.f32 %v865_v54  ;;  %v828_v57 = vmul.f32 0.5, %v6375_v44  ;;  %v827_v39 = vmul.f32 0.5, %v6383_v29  ;;  %v1147_v23 = vmul.f32 %v6493_v3, %v6490_v15 }
 0x294   :  { %1180 = vadd.xlane.f32.xlu1 %v1139_v12  ;;  %1178 = vadd.xlane.f32.xlu0 %v1138_v24  ;;  %v6488_v12 = vmul.f32 %v919_v58, %v823_v61  ;;  %v5211_v24 = vpop.eup %5210  ;;  %v1145_v14 = vmul.f32 %v6343_v35, %v6481_v16  ;;  %5224 = verf.f32 %v868_v33  ;;  %v924_v8 = vadd.f32 1.0, %v5209_v28 }
 0x295   :  { %5226 = verf.f32 %v867_v19  ;;  %v1146_v51 = vmul.f32 %v6493_v3, %v6499_v6  ;;  %v872_v54 = vmul.f32 0.70710677, %v6504_v48  ;;  %v830_v25 = vmul.f32 0.5, %v6396_v17 }
 0x296   :  { %v1144_v47 = vmul.f32 %v6343_v35, %v6488_v12  ;;  %v5213_v56 = vpop.eup %5212  ;;  %v923_v35 = vadd.f32 1.0, %v5211_v24  ;;  %5228 = verf.f32 %v870_v11  ;;  %v6518_v58 = vmul.f32 %v924_v8, %v828_v57 }
 0x297   :  { %5230 = verf.f32 %v869_v36  ;;  %v829_v46 = vmul.f32 0.5, %v6401_v0  ;;  %v832_v0 = vmul.f32 0.5, %v6418_v60  ;;  %v831_v24 = vmul.f32 0.5, %v6423_v62 }
 0x298   :  { %1184 = vadd.xlane.f32.xlu1 %v1141_v42  ;;  %1182 = vadd.xlane.f32.xlu0 %v1140_v52  ;;  %v6509_v42 = vadd.f32 %v6251_v10, %v6259_v4  ;;  %v5215_v52 = vpop.eup %5214  ;;  %v926_v10 = vadd.f32 1.0, %v5213_v56  ;;  %v6521_v44 = vmul.f32 %v923_v35, %v827_v39  ;;  %v1149_v53 = vmul.f32 %v6493_v3, %v6518_v58 }
 0x299   :  { %v925_v29 = vadd.f32 1.0, %v5215_v52  ;;  %5232 = verf.f32 %v872_v54  ;;  %v834_v60 = vmul.f32 0.5, %v6436_v21  ;;  %v833_v62 = vmul.f32 0.5, %v6443_v2 }
 0x29a   :  { %v871_v61 = vmul.f32 0.70710677, %v6509_v42  ;;  %v836_v21 = vmul.f32 0.5, %v6461_v18  ;;  %v835_v2 = vmul.f32 0.5, %v6466_v13  ;;  %v838_v18 = vmul.f32 0.5, %v6479_v59 }
 0x29b   :  { %v5217_v4 = vpop.eup %5216  ;;  %v6531_v33 = vmul.f32 %v925_v29, %v829_v46  ;;  %v837_v13 = vmul.f32 0.5, %v6486_v7  ;;  %v839_v59 = vmul.f32 0.5, %v6509_v42 }
 0x29c   :  { %1188 = vadd.xlane.f32.xlu1 %v1143_v49  ;;  %1186 = vadd.xlane.f32.xlu0 %v1142_v27  ;;  %v5219_v50 = vpop.eup %5218  ;;  %v1148_v49 = vmul.f32 %v6493_v3, %v6521_v44  ;;  %v6529_v27 = vmul.f32 %v926_v10, %v830_v25  ;;  %5234 = verf.f32 %v871_v61  ;;  %v928_v28 = vadd.f32 1.0, %v5217_v4 }
 0x29d   :  { %v927_v19 = vadd.f32 1.0, %v5219_v50 }
 0x29e   :  { %v6539_v8 = vmul.f32 %v928_v28, %v832_v0 }
 0x29f   :  { %v5221_v1 = vpop.eup %5220  ;;  %v6541_v56 = vmul.f32 %v927_v19, %v831_v24 }
 0x2a0   :  { %1192 = vadd.xlane.f32.xlu1 %v1145_v14  ;;  %1190 = vadd.xlane.f32.xlu0 %v1144_v47  ;;  %v5223_v17 = vpop.eup %5222  ;;  %v1151_v14 = vmul.f32 %v6493_v3, %v6529_v27  ;;  %v1150_v47 = vmul.f32 %v6493_v3, %v6531_v33  ;;  %v930_v36 = vadd.f32 1.0, %v5221_v1  ;;  %v1153_v57 = vmul.f32 %v6493_v3, %v6539_v8 }
 0x2a1   :  { %v5225_v11 = vpop.eup %5224  ;;  %v929_v35 = vadd.f32 1.0, %v5223_v17  ;;  %v1152_v39 = vmul.f32 %v6493_v3, %v6541_v56 }
 0x2a2   :  { %v5227_v52 = vpop.eup %5226  ;;  %v932_v10 = vadd.f32 1.0, %v5225_v11  ;;  %v840_v11 = vmul.f32 0.5, %v6504_v48 }
 0x2a3   :  { %v6551_v54 = vmul.f32 %v929_v35, %v833_v62  ;;  %v931_v4 = vadd.f32 1.0, %v5227_v52 }
 0x2a4   :  { %1196 = vadd.xlane.f32.xlu1 %v1147_v23  ;;  %1194 = vadd.xlane.f32.xlu0 %v1146_v51  ;;  %v5229_v23 = vpop.eup %5228  ;;  %v6549_v51 = vmul.f32 %v930_v36, %v834_v60  ;;  %v6559_v46 = vmul.f32 %v932_v10, %v836_v21 }
 0x2a5   :  { %v5231_v61 = vpop.eup %5230  ;;  %v1154_v50 = vmul.f32 %v6493_v3, %v6551_v54 }
 0x2a6   :  { %v1155_v29 = vmul.f32 %v6493_v3, %v6549_v51  ;;  %v5233_v25 = vpop.eup %5232  ;;  %v933_v1 = vadd.f32 1.0, %v5231_v61  ;;  %v1157_v19 = vmul.f32 %v6493_v3, %v6559_v46 }
 0x2a8   :  { %1200 = vadd.xlane.f32.xlu1 %v1149_v53  ;;  %1198 = vadd.xlane.f32.xlu0 %v1148_v49  ;;  %v6561_v53 = vmul.f32 %v931_v4, %v835_v2  ;;  %v934_v49 = vadd.f32 1.0, %v5229_v23  ;;  %v6571_v24 = vmul.f32 %v933_v1, %v837_v13 }
 0x2a9   :  { %v5235_v28 = vpop.eup %5234 }
 0x2aa   :  { %v1156_v17 = vmul.f32 %v6493_v3, %v6561_v53  ;;  %v6569_v0 = vmul.f32 %v934_v49, %v838_v18  ;;  %v1158_v36 = vmul.f32 %v6493_v3, %v6571_v24 }
 0x2ac   :  { %1204 = vadd.xlane.f32.xlu1 %v1151_v14  ;;  %1202 = vadd.xlane.f32.xlu0 %v1150_v47  ;;  %v936_v14 = vadd.f32 1.0, %v5233_v25  ;;  %v935_v47 = vadd.f32 1.0, %v5235_v28  ;;  %v1159_v7 = vmul.f32 %v6493_v3, %v6569_v0 }
 0x2ae   :  { %v6579_v35 = vmul.f32 %v936_v14, %v840_v11  ;;  %v6581_v52 = vmul.f32 %v935_v47, %v839_v59 }
 0x2b0   :  { %1208 = vadd.xlane.f32.xlu1 %v1153_v57  ;;  %1206 = vadd.xlane.f32.xlu0 %v1152_v39  ;;  %v1161_v60 = vmul.f32 %v6493_v3, %v6579_v35  ;;  %v1160_v48 = vmul.f32 %v6493_v3, %v6581_v52 }
 0x2b4   :  { %1212 = vadd.xlane.f32.xlu1 %v1155_v29  ;;  %1210 = vadd.xlane.f32.xlu0 %v1154_v50 }
 0x2b8   :  { %1216 = vadd.xlane.f32.xlu1 %v1157_v19  ;;  %1214 = vadd.xlane.f32.xlu0 %v1156_v17 }
 0x2bc   :  { %1220 = vadd.xlane.f32.xlu1 %v1159_v7  ;;  %1218 = vadd.xlane.f32.xlu0 %v1158_v36 }
 0x2c0   :  { %1224 = vadd.xlane.f32.xlu1 %v1161_v60  ;;  %1222 = vadd.xlane.f32.xlu0 %v1160_v48 }
 0x30d   :  { %v1165_v42 = vpop.xlane.xlu1 %1164  ;;  %v1163_v62 = vpop.xlane.xlu0 %1162 }
 0x30e   :  { %5236 = vtanh.f32 %v1165_v42 }
 0x30f   :  { %5238 = vtanh.f32 %v1163_v62 }
 0x311   :  { %v1169_v57 = vpop.xlane.xlu1 %1168  ;;  %v1167_v39 = vpop.xlane.xlu0 %1166 }
 0x312   :  { %5240 = vtanh.f32 %v1169_v57 }
 0x313   :  { %5242 = vtanh.f32 %v1167_v39 }
 0x315   :  { %v1173_v23 = vpop.xlane.xlu1 %1172  ;;  %v1171_v10 = vpop.xlane.xlu0 %1170 }
 0x316   :  { %5244 = vtanh.f32 %v1173_v23 }
 0x317   :  { %5246 = vtanh.f32 %v1171_v10 }
 0x319   :  { %v1177_v4 = vpop.xlane.xlu1 %1176  ;;  %v1175_v61 = vpop.xlane.xlu0 %1174 }
 0x31a   :  { %5248 = vtanh.f32 %v1177_v4 }
 0x31b   :  { %v5237_v21 = vpop.eup %5236  ;;  %5250 = vtanh.f32 %v1175_v61 }
 0x31c   :  { %v5239_v3 = vpop.eup %5238  ;;  %v6588_v2 = vmul.f32 %v5237_v21, %v6330_v37 }
 0x31d   :  { %v1181_v29 = vpop.xlane.xlu1 %1180  ;;  %v1179_v50 = vpop.xlane.xlu0 %1178  ;;  %v6591_v25 = vmul.f32 %v5239_v3, %v6336_v20 }
 0x31e   :  { %5252 = vtanh.f32 %v1181_v29  ;;  %1294 = vadd.xlane.f32.xlu1 %v6588_v2 }
 0x31f   :  { %v5241_v49 = vpop.eup %5240  ;;  %5254 = vtanh.f32 %v1179_v50  ;;  %1292 = vadd.xlane.f32.xlu0 %v6591_v25 }
 0x320   :  { %v5243_v1 = vpop.eup %5242  ;;  %v6596_v28 = vmul.f32 %v5241_v49, %v6361_v41 }
 0x321   :  { %v1185_v18 = vpop.xlane.xlu1 %1184  ;;  %v1183_v13 = vpop.xlane.xlu0 %1182  ;;  %v6599_v37 = vmul.f32 %v5243_v1, %v6363_v55 }
 0x322   :  { %5256 = vtanh.f32 %v1185_v18  ;;  %1298 = vadd.xlane.f32.xlu1 %v6596_v28 }
 0x323   :  { %v5245_v20 = vpop.eup %5244  ;;  %5258 = vtanh.f32 %v1183_v13  ;;  %1296 = vadd.xlane.f32.xlu0 %v6599_v37 }
 0x324   :  { %v5247_v19 = vpop.eup %5246  ;;  %v6604_v17 = vmul.f32 %v5245_v20, %v6377_v38 }
 0x325   :  { %v1189_v14 = vpop.xlane.xlu1 %1188  ;;  %v1187_v47 = vpop.xlane.xlu0 %1186  ;;  %v6607_v41 = vmul.f32 %v5247_v19, %v6379_v45 }
 0x326   :  { %5260 = vtanh.f32 %v1189_v14  ;;  %1302 = vadd.xlane.f32.xlu1 %v6604_v17 }
 0x327   :  { %v5249_v55 = vpop.eup %5248  ;;  %5262 = vtanh.f32 %v1187_v47  ;;  %1300 = vadd.xlane.f32.xlu0 %v6607_v41 }
 0x328   :  { %v5251_v11 = vpop.eup %5250  ;;  %v6612_v59 = vmul.f32 %v5249_v55, %v6403_v63 }
 0x329   :  { %v1193_v7 = vpop.xlane.xlu1 %1192  ;;  %v1191_v36 = vpop.xlane.xlu0 %1190  ;;  %v6615_v38 = vmul.f32 %v5251_v11, %v6405_v31 }
 0x32a   :  { %5264 = vtanh.f32 %v1193_v7  ;;  %1306 = vadd.xlane.f32.xlu1 %v6612_v59 }
 0x32b   :  { %v5253_v45 = vpop.eup %5252  ;;  %5266 = vtanh.f32 %v1191_v36  ;;  %1304 = vadd.xlane.f32.xlu0 %v6615_v38 }
 0x32c   :  { %v5255_v60 = vpop.eup %5254  ;;  %v6620_v48 = vmul.f32 %v5253_v45, %v6411_v9 }
 0x32d   :  { %v1197_v42 = vpop.xlane.xlu1 %1196  ;;  %v1195_v62 = vpop.xlane.xlu0 %1194  ;;  %v6623_v63 = vmul.f32 %v5255_v60, %v6413_v40 }
 0x32e   :  { %5268 = vtanh.f32 %v1197_v42  ;;  %1310 = vadd.xlane.f32.xlu1 %v6620_v48 }
 0x32f   :  { %v5257_v31 = vpop.eup %5256  ;;  %5270 = vtanh.f32 %v1195_v62  ;;  %1308 = vadd.xlane.f32.xlu0 %v6623_v63 }
 0x330   :  { %v5259_v57 = vpop.eup %5258  ;;  %v6628_v39 = vmul.f32 %v5257_v31, %v6438_v32 }
 0x331   :  { %v1201_v23 = vpop.xlane.xlu1 %1200  ;;  %v1199_v10 = vpop.xlane.xlu0 %1198  ;;  %v6631_v9 = vmul.f32 %v5259_v57, %v6445_v22 }
 0x332   :  { %5272 = vtanh.f32 %v1201_v23  ;;  %1314 = vadd.xlane.f32.xlu1 %v6628_v39 }
 0x333   :  { %v5261_v40 = vpop.eup %5260  ;;  %5274 = vtanh.f32 %v1199_v10  ;;  %1312 = vadd.xlane.f32.xlu0 %v6631_v9 }
 0x334   :  { %v5263_v4 = vpop.eup %5262  ;;  %v6636_v61 = vmul.f32 %v5261_v40, %v6448_v5 }
 0x335   :  { %v1205_v21 = vpop.xlane.xlu1 %1204  ;;  %v1203_v3 = vpop.xlane.xlu0 %1202  ;;  %v6639_v32 = vmul.f32 %v5263_v4, %v6456_v34 }
 0x336   :  { %5276 = vtanh.f32 %v1205_v21  ;;  %1318 = vadd.xlane.f32.xlu1 %v6636_v61 }
 0x337   :  { %v5265_v22 = vpop.eup %5264  ;;  %5278 = vtanh.f32 %v1203_v3  ;;  %1316 = vadd.xlane.f32.xlu0 %v6639_v32 }
 0x338   :  { %v5267_v29 = vpop.eup %5266  ;;  %v6644_v50 = vmul.f32 %v5265_v22, %v6481_v16 }
 0x339   :  { %v1209_v49 = vpop.xlane.xlu1 %1208  ;;  %v1207_v1 = vpop.xlane.xlu0 %1206  ;;  %v6647_v5 = vmul.f32 %v5267_v29, %v6488_v12 }
 0x33a   :  { %5280 = vtanh.f32 %v1209_v49  ;;  %1322 = vadd.xlane.f32.xlu1 %v6644_v50 }
 0x33b   :  { %v5269_v34 = vpop.eup %5268  ;;  %5282 = vtanh.f32 %v1207_v1  ;;  %1320 = vadd.xlane.f32.xlu0 %v6647_v5 }
 0x33c   :  { %v5271_v18 = vpop.eup %5270  ;;  %v6652_v13 = vmul.f32 %v5269_v34, %v6490_v15 }
 0x33d   :  { %v1213_v20 = vpop.xlane.xlu1 %1212  ;;  %v1211_v19 = vpop.xlane.xlu0 %1210  ;;  %v6655_v16 = vmul.f32 %v5271_v18, %v6499_v6 }
 0x33e   :  { %5284 = vtanh.f32 %v1213_v20  ;;  %1326 = vadd.xlane.f32.xlu1 %v6652_v13 }
 0x33f   :  { %v5273_v12 = vpop.eup %5272  ;;  %5286 = vtanh.f32 %v1211_v19  ;;  %1324 = vadd.xlane.f32.xlu0 %v6655_v16 }
 0x340   :  { %v5275_v14 = vpop.eup %5274  ;;  %v6660_v47 = vmul.f32 %v5273_v12, %v6518_v58 }
 0x341   :  { %v1217_v55 = vpop.xlane.xlu1 %1216  ;;  %v1215_v11 = vpop.xlane.xlu0 %1214  ;;  %v6663_v15 = vmul.f32 %v5275_v14, %v6521_v44 }
 0x342   :  { %5288 = vtanh.f32 %v1217_v55  ;;  %1330 = vadd.xlane.f32.xlu1 %v6660_v47 }
 0x343   :  { %v5277_v6 = vpop.eup %5276  ;;  %5290 = vtanh.f32 %v1215_v11  ;;  %1328 = vadd.xlane.f32.xlu0 %v6663_v15 }
 0x344   :  { %v5279_v7 = vpop.eup %5278  ;;  %v6668_v36 = vmul.f32 %v5277_v6, %v6529_v27 }
 0x345   :  { %v1221_v45 = vpop.xlane.xlu1 %1220  ;;  %v1219_v60 = vpop.xlane.xlu0 %1218  ;;  %v6671_v58 = vmul.f32 %v5279_v7, %v6531_v33 }
 0x346   :  { %5292 = vtanh.f32 %v1221_v45  ;;  %1334 = vadd.xlane.f32.xlu1 %v6668_v36 }
 0x347   :  { %v5281_v44 = vpop.eup %5280  ;;  %5294 = vtanh.f32 %v1219_v60  ;;  %1332 = vadd.xlane.f32.xlu0 %v6671_v58 }
 0x348   :  { %v5283_v42 = vpop.eup %5282  ;;  %v6676_v62 = vmul.f32 %v5281_v44, %v6539_v8 }
 0x349   :  { %v1225_v31 = vpop.xlane.xlu1 %1224  ;;  %v1223_v57 = vpop.xlane.xlu0 %1222  ;;  %v6679_v27 = vmul.f32 %v5283_v42, %v6541_v56 }
 0x34a   :  { %5296 = vtanh.f32 %v1225_v31  ;;  %1338 = vadd.xlane.f32.xlu1 %v6676_v62 }
 0x34b   :  { %v5285_v33 = vpop.eup %5284  ;;  %5298 = vtanh.f32 %v1223_v57  ;;  %1336 = vadd.xlane.f32.xlu0 %v6679_v27 }
 0x34c   :  { %v5287_v23 = vpop.eup %5286  ;;  %v6684_v10 = vmul.f32 %v5285_v33, %v6549_v51 }
 0x34d   :  { %v6687_v40 = vmul.f32 %v5287_v23, %v6551_v54 }
 0x34e   :  { %1342 = vadd.xlane.f32.xlu1 %v6684_v10 }
 0x34f   :  { %v5289_v8 = vpop.eup %5288  ;;  %1340 = vadd.xlane.f32.xlu0 %v6687_v40 }
 0x350   :  { %v5291_v56 = vpop.eup %5290  ;;  %v6692_v4 = vmul.f32 %v5289_v8, %v6559_v46 }
 0x351   :  { %v6695_v21 = vmul.f32 %v5291_v56, %v6561_v53 }
 0x352   :  { %1346 = vadd.xlane.f32.xlu1 %v6692_v4 }
 0x353   :  { %v5293_v3 = vpop.eup %5292  ;;  %1344 = vadd.xlane.f32.xlu0 %v6695_v21 }
 0x354   :  { %v5295_v51 = vpop.eup %5294  ;;  %v6700_v54 = vmul.f32 %v5293_v3, %v6569_v0  ;;  %v1735_v0 = vld [vmem:[%s8709_s12 + $0x78] sm:$0xff] }
 0x355   :  { %v6703_v22 = vmul.f32 %v5295_v51, %v6571_v24  ;;  %v1734_v24 = vld [vmem:[%s8709_s12 + $0x70] sm:$0xff]  ;;  %5008 = vmatprep.subr.mxu1 %v1735_v0 }
 0x356   :  { %1350 = vadd.xlane.f32.xlu1 %v6700_v54  ;;  %5009 = vmatpush3.msra.mxu1 %v1735_v0 }
 0x357   :  { %v5297_v29 = vpop.eup %5296  ;;  %1348 = vadd.xlane.f32.xlu0 %v6703_v22  ;;  %5010 = vmatprep.subr.mxu1 %v1734_v24 }
 0x358   :  { %v5299_v46 = vpop.eup %5298  ;;  %v6708_v53 = vmul.f32 %v5297_v29, %v6579_v35  ;;  %v1733_v35 = vld [vmem:[%s8709_s12 + $0x68] sm:$0xff]  ;;  %5011 = vmatpush3.msra.mxu1 %v1734_v24 }
 0x359   :  { %v6711_v49 = vmul.f32 %v5299_v46, %v6581_v52  ;;  %v1732_v52 = vld [vmem:[%s8709_s12 + $0x60] sm:$0xff]  ;;  %5012 = vmatprep.subr.mxu1 %v1733_v35 }
 0x35a   :  { %1354 = vadd.xlane.f32.xlu1 %v6708_v53  ;;  %5013 = vmatpush3.msra.mxu1 %v1733_v35 }
 0x35b   :  { %1352 = vadd.xlane.f32.xlu0 %v6711_v49  ;;  %5014 = vmatprep.subr.mxu1 %v1732_v52 }
 0x35c   :  { %5015 = vmatpush3.msra.mxu1 %v1732_v52 }
 0x3a7   :  { %v1295_v1 = vpop.xlane.xlu1 %1294 }
 0x3a8   :  { %v1357_v34 = vmul.f32 0.0078125, %v1295_v1  ;;  %v1293_v18 = vpop.xlane.xlu0 %1292 }
 0x3a9   :  { %v1356_v20 = vmul.f32 0.0078125, %v1293_v18 }
 0x3aa   :  { %v6728_v19 = vsub.f32 %v6588_v2, %v1357_v34 }
 0x3ab   :  { %v6731_v12 = vsub.f32 %v6591_v25, %v1356_v20  ;;  %v1299_v14 = vpop.xlane.xlu1 %1298 }
 0x3ac   :  { %v1359_v55 = vmul.f32 0.0078125, %v1299_v14  ;;  %v1297_v11 = vpop.xlane.xlu0 %1296  ;;  %v1421_v6 = vmul.f32 %v6728_v19, %v6728_v19 }
 0x3ad   :  { %v1358_v7 = vmul.f32 0.0078125, %v1297_v11  ;;  %v1420_v45 = vmul.f32 %v6731_v12, %v6731_v12 }
 0x3ae   :  { %v6738_v60 = vsub.f32 %v6596_v28, %v1359_v55  ;;  %1454 = vadd.xlane.f32.xlu1 %v1421_v6 }
 0x3af   :  { %v6741_v2 = vsub.f32 %v6599_v37, %v1358_v7  ;;  %1452 = vadd.xlane.f32.xlu0 %v1420_v45  ;;  %v1303_v25 = vpop.xlane.xlu1 %1302 }
 0x3b0   :  { %v1361_v44 = vmul.f32 0.0078125, %v1303_v25  ;;  %v1301_v42 = vpop.xlane.xlu0 %1300  ;;  %v1423_v31 = vmul.f32 %v6738_v60, %v6738_v60 }
 0x3b1   :  { %v1360_v57 = vmul.f32 0.0078125, %v1301_v42  ;;  %v1422_v33 = vmul.f32 %v6741_v2, %v6741_v2 }
 0x3b2   :  { %v6748_v23 = vsub.f32 %v6604_v17, %v1361_v44  ;;  %1458 = vadd.xlane.f32.xlu1 %v1423_v31 }
 0x3b3   :  { %v6751_v28 = vsub.f32 %v6607_v41, %v1360_v57  ;;  %1456 = vadd.xlane.f32.xlu0 %v1422_v33  ;;  %v1307_v37 = vpop.xlane.xlu1 %1306 }
 0x3b4   :  { %v1363_v8 = vmul.f32 0.0078125, %v1307_v37  ;;  %v1305_v56 = vpop.xlane.xlu0 %1304  ;;  %v1425_v3 = vmul.f32 %v6748_v23, %v6748_v23 }
 0x3b5   :  { %v1362_v51 = vmul.f32 0.0078125, %v1305_v56  ;;  %v1424_v29 = vmul.f32 %v6751_v28, %v6751_v28 }
 0x3b6   :  { %v6758_v46 = vsub.f32 %v6612_v59, %v1363_v8  ;;  %1462 = vadd.xlane.f32.xlu1 %v1425_v3 }
 0x3b7   :  { %v6761_v17 = vsub.f32 %v6615_v38, %v1362_v51  ;;  %1460 = vadd.xlane.f32.xlu0 %v1424_v29  ;;  %v1311_v41 = vpop.xlane.xlu1 %1310 }
 0x3b8   :  { %v1365_v0 = vmul.f32 0.0078125, %v1311_v41  ;;  %v1309_v24 = vpop.xlane.xlu0 %1308  ;;  %v1427_v35 = vmul.f32 %v6758_v46, %v6758_v46 }
 0x3b9   :  { %v1364_v52 = vmul.f32 0.0078125, %v1309_v24  ;;  %v1426_v1 = vmul.f32 %v6761_v17, %v6761_v17 }
 0x3ba   :  { %v6768_v34 = vsub.f32 %v6620_v48, %v1365_v0  ;;  %1466 = vadd.xlane.f32.xlu1 %v1427_v35  ;;  %v1731_v48 = vld [vmem:[%s8709_s12 + $0x58] sm:$0xff] }
 0x3bb   :  { %v6771_v59 = vsub.f32 %v6623_v63, %v1364_v52  ;;  %1464 = vadd.xlane.f32.xlu0 %v1426_v1  ;;  %v1315_v38 = vpop.xlane.xlu1 %1314  ;;  %v1730_v63 = vld [vmem:[%s8709_s12 + $0x50] sm:$0xff]  ;;  %5016 = vmatprep.subr.mxu1 %v1731_v48 }
 0x3bc   :  { %v1367_v18 = vmul.f32 0.0078125, %v1315_v38  ;;  %v1313_v20 = vpop.xlane.xlu0 %1312  ;;  %v1429_v14 = vmul.f32 %v6768_v34, %v6768_v34  ;;  %5017 = vmatpush3.msra.mxu1 %v1731_v48 }
 0x3bd   :  { %v1366_v55 = vmul.f32 0.0078125, %v1313_v20  ;;  %v1428_v11 = vmul.f32 %v6771_v59, %v6771_v59  ;;  %5018 = vmatprep.subr.mxu1 %v1730_v63 }
 0x3be   :  { %v6784_v6 = vsub.f32 %v6628_v39, %v1367_v18  ;;  %1470 = vadd.xlane.f32.xlu1 %v1429_v14  ;;  %5019 = vmatpush3.msra.mxu1 %v1730_v63  ;;  %v1729_v39 = vld [vmem:[%s8709_s12 + $0x48] sm:$0xff] }
 0x3bf   :  { %v6787_v7 = vsub.f32 %v6631_v9, %v1366_v55  ;;  %1468 = vadd.xlane.f32.xlu0 %v1428_v11  ;;  %v1319_v45 = vpop.xlane.xlu1 %1318  ;;  %v1728_v9 = vld [vmem:[%s8709_s12 + $0x40] sm:$0xff]  ;;  %5020 = vmatprep.subr.mxu1 %v1729_v39 }
 0x3c0   :  { %v1369_v25 = vmul.f32 0.0078125, %v1319_v45  ;;  %v1317_v44 = vpop.xlane.xlu0 %1316  ;;  %v1431_v42 = vmul.f32 %v6784_v6, %v6784_v6  ;;  %5021 = vmatpush3.msra.mxu1 %v1729_v39 }
 0x3c1   :  { %v1368_v31 = vmul.f32 0.0078125, %v1317_v44  ;;  %v1430_v57 = vmul.f32 %v6787_v7, %v6787_v7  ;;  %5022 = vmatprep.subr.mxu1 %v1728_v9 }
 0x3c2   :  { %v6800_v33 = vsub.f32 %v6636_v61, %v1369_v25  ;;  %1474 = vadd.xlane.f32.xlu1 %v1431_v42  ;;  %5023 = vmatpush3.msra.mxu1 %v1728_v9  ;;  %v1727_v61 = vld [vmem:[%s8709_s12 + $0x38] sm:$0xff] }
 0x3c3   :  { %v6803_v37 = vsub.f32 %v6639_v32, %v1368_v31  ;;  %1472 = vadd.xlane.f32.xlu0 %v1430_v57  ;;  %v1323_v8 = vpop.xlane.xlu1 %1322  ;;  %v1726_v32 = vld [vmem:[%s8709_s12 + $0x30] sm:$0xff]  ;;  %5024 = vmatprep.subr.mxu1 %v1727_v61 }
 0x3c4   :  { %v1371_v56 = vmul.f32 0.0078125, %v1323_v8  ;;  %v1321_v3 = vpop.xlane.xlu0 %1320  ;;  %v1433_v51 = vmul.f32 %v6800_v33, %v6800_v33  ;;  %5025 = vmatpush3.msra.mxu1 %v1727_v61 }
 0x3c5   :  { %v1370_v29 = vmul.f32 0.0078125, %v1321_v3  ;;  %v1432_v41 = vmul.f32 %v6803_v37, %v6803_v37  ;;  %5026 = vmatprep.subr.mxu1 %v1726_v32 }
 0x3c6   :  { %v6816_v0 = vsub.f32 %v6644_v50, %v1371_v56  ;;  %1478 = vadd.xlane.f32.xlu1 %v1433_v51  ;;  %5027 = vmatpush3.msra.mxu1 %v1726_v32  ;;  %v1725_v50 = vld [vmem:[%s8709_s12 + $0x28] sm:$0xff] }
 0x3c7   :  { %v6819_v24 = vsub.f32 %v6647_v5, %v1370_v29  ;;  %1476 = vadd.xlane.f32.xlu0 %v1432_v41  ;;  %v1327_v35 = vpop.xlane.xlu1 %1326  ;;  %v1724_v5 = vld [vmem:[%s8709_s12 + $0x20] sm:$0xff]  ;;  %5028 = vmatprep.subr.mxu1 %v1725_v50 }
 0x3c8   :  { %v1373_v52 = vmul.f32 0.0078125, %v1327_v35  ;;  %v1325_v1 = vpop.xlane.xlu0 %1324  ;;  %v1435_v38 = vmul.f32 %v6816_v0, %v6816_v0  ;;  %5029 = vmatpush3.msra.mxu1 %v1725_v50 }
 0x3c9   :  { %v1372_v18 = vmul.f32 0.0078125, %v1325_v1  ;;  %v1434_v20 = vmul.f32 %v6819_v24, %v6819_v24  ;;  %5030 = vmatprep.subr.mxu1 %v1724_v5 }
 0x3ca   :  { %v6832_v14 = vsub.f32 %v6652_v13, %v1373_v52  ;;  %1482 = vadd.xlane.f32.xlu1 %v1435_v38  ;;  %5031 = vmatpush3.msra.mxu1 %v1724_v5  ;;  %v1723_v13 = vld [vmem:[%s8709_s12 + $0x18] sm:$0xff] }
 0x3cb   :  { %v6835_v55 = vsub.f32 %v6655_v16, %v1372_v18  ;;  %1480 = vadd.xlane.f32.xlu0 %v1434_v20  ;;  %v1331_v11 = vpop.xlane.xlu1 %1330  ;;  %v1722_v16 = vld [vmem:[%s8709_s12 + $0x10] sm:$0xff]  ;;  %5032 = vmatprep.subr.mxu1 %v1723_v13 }
 0x3cc   :  { %v1375_v48 = vmul.f32 0.0078125, %v1331_v11  ;;  %v1329_v63 = vpop.xlane.xlu0 %1328  ;;  %v1437_v45 = vmul.f32 %v6832_v14, %v6832_v14  ;;  %5033 = vmatpush3.msra.mxu1 %v1723_v13 }
 0x3cd   :  { %v1374_v25 = vmul.f32 0.0078125, %v1329_v63  ;;  %v1436_v44 = vmul.f32 %v6835_v55, %v6835_v55  ;;  %5034 = vmatprep.subr.mxu1 %v1722_v16 }
 0x3ce   :  { %v6848_v42 = vsub.f32 %v6660_v47, %v1375_v48  ;;  %1486 = vadd.xlane.f32.xlu1 %v1437_v45  ;;  %5035 = vmatpush3.msra.mxu1 %v1722_v16  ;;  %v1721_v47 = vld [vmem:[%s8709_s12 + $0x8] sm:$0xff] }
 0x3cf   :  { %v6851_v31 = vsub.f32 %v6663_v15, %v1374_v25  ;;  %1484 = vadd.xlane.f32.xlu0 %v1436_v44  ;;  %v1335_v57 = vpop.xlane.xlu1 %1334  ;;  %v1720_v15 = vld [vmem:[%s8709_s12] sm:$0xff]  ;;  %5036 = vmatprep.subr.mxu1 %v1721_v47 }
 0x3d0   :  { %v1377_v39 = vmul.f32 0.0078125, %v1335_v57  ;;  %v1333_v9 = vpop.xlane.xlu0 %1332  ;;  %v1439_v8 = vmul.f32 %v6848_v42, %v6848_v42  ;;  %5037 = vmatpush3.msra.mxu1 %v1721_v47 }
 0x3d1   :  { %v1376_v56 = vmul.f32 0.0078125, %v1333_v9  ;;  %v1438_v3 = vmul.f32 %v6851_v31, %v6851_v31  ;;  %5038 = vmatprep.subr.mxu1 %v1720_v15 }
 0x3d2   :  { %v6864_v51 = vsub.f32 %v6668_v36, %v1377_v39  ;;  %1490 = vadd.xlane.f32.xlu1 %v1439_v8  ;;  %5039 = vmatpush3.msra.mxu1 %v1720_v15 }
 0x3d3   :  { %v6867_v29 = vsub.f32 %v6671_v58, %v1376_v56  ;;  %1488 = vadd.xlane.f32.xlu0 %v1438_v3  ;;  %v1339_v41 = vpop.xlane.xlu1 %1338 }
 0x3d4   :  { %v1379_v61 = vmul.f32 0.0078125, %v1339_v41  ;;  %v1337_v32 = vpop.xlane.xlu0 %1336  ;;  %v1441_v35 = vmul.f32 %v6864_v51, %v6864_v51 }
 0x3d5   :  { %v1378_v52 = vmul.f32 0.0078125, %v1337_v32  ;;  %v1440_v1 = vmul.f32 %v6867_v29, %v6867_v29 }
 0x3d6   :  { %v6874_v36 = vsub.f32 %v6676_v62, %v1379_v61  ;;  %1494 = vadd.xlane.f32.xlu1 %v1441_v35 }
 0x3d7   :  { %v6877_v58 = vsub.f32 %v6679_v27, %v1378_v52  ;;  %1492 = vadd.xlane.f32.xlu0 %v1440_v1  ;;  %v1343_v38 = vpop.xlane.xlu1 %1342 }
 0x3d8   :  { %v1381_v18 = vmul.f32 0.0078125, %v1343_v38  ;;  %v1341_v20 = vpop.xlane.xlu0 %1340  ;;  %v1443_v50 = vmul.f32 %v6874_v36, %v6874_v36 }
 0x3d9   :  { %v1380_v5 = vmul.f32 0.0078125, %v1341_v20  ;;  %v1442_v11 = vmul.f32 %v6877_v58, %v6877_v58 }
 0x3da   :  { %v6884_v48 = vsub.f32 %v6684_v10, %v1381_v18  ;;  %1498 = vadd.xlane.f32.xlu1 %v1443_v50 }
 0x3db   :  { %v6887_v62 = vsub.f32 %v6687_v40, %v1380_v5  ;;  %1496 = vadd.xlane.f32.xlu0 %v1442_v11  ;;  %v1347_v27 = vpop.xlane.xlu1 %1346 }
 0x3dc   :  { %v1383_v63 = vmul.f32 0.0078125, %v1347_v27  ;;  %v1345_v45 = vpop.xlane.xlu0 %1344  ;;  %v1445_v25 = vmul.f32 %v6884_v48, %v6884_v48 }
 0x3dd   :  { %v1382_v44 = vmul.f32 0.0078125, %v1345_v45  ;;  %v1444_v13 = vmul.f32 %v6887_v62, %v6887_v62 }
 0x3de   :  { %v6894_v16 = vsub.f32 %v6692_v4, %v1383_v63  ;;  %1502 = vadd.xlane.f32.xlu1 %v1445_v25 }
 0x3df   :  { %v6897_v10 = vsub.f32 %v6695_v21, %v1382_v44  ;;  %1500 = vadd.xlane.f32.xlu0 %v1444_v13  ;;  %v1351_v40 = vpop.xlane.xlu1 %1350 }
 0x3e0   :  { %v1385_v57 = vmul.f32 0.0078125, %v1351_v40  ;;  %v1349_v39 = vpop.xlane.xlu0 %1348  ;;  %v1447_v9 = vmul.f32 %v6894_v16, %v6894_v16 }
 0x3e1   :  { %v1384_v8 = vmul.f32 0.0078125, %v1349_v39  ;;  %v1446_v56 = vmul.f32 %v6897_v10, %v6897_v10 }
 0x3e2   :  { %v6904_v3 = vsub.f32 %v6700_v54, %v1385_v57  ;;  %1506 = vadd.xlane.f32.xlu1 %v1447_v9 }
 0x3e3   :  { %v6907_v4 = vsub.f32 %v6703_v22, %v1384_v8  ;;  %1504 = vadd.xlane.f32.xlu0 %v1446_v56  ;;  %v1355_v21 = vpop.xlane.xlu1 %1354 }
 0x3e4   :  { %v1387_v47 = vmul.f32 0.0078125, %v1355_v21  ;;  %v1353_v15 = vpop.xlane.xlu0 %1352  ;;  %v1449_v41 = vmul.f32 %v6904_v3, %v6904_v3 }
 0x3e5   :  { %v1386_v61 = vmul.f32 0.0078125, %v1353_v15  ;;  %v1448_v32 = vmul.f32 %v6907_v4, %v6907_v4 }
 0x3e6   :  { %v6914_v35 = vsub.f32 %v6708_v53, %v1387_v47  ;;  %1510 = vadd.xlane.f32.xlu1 %v1449_v41 }
 0x3e7   :  { %v6917_v54 = vsub.f32 %v6711_v49, %v1386_v61  ;;  %1508 = vadd.xlane.f32.xlu0 %v1448_v32 }
 0x3e8   :  { %v1451_v22 = vmul.f32 %v6914_v35, %v6914_v35 }
 0x3e9   :  { %v1450_v52 = vmul.f32 %v6917_v54, %v6917_v54 }
 0x3ea   :  { %1514 = vadd.xlane.f32.xlu1 %v1451_v22 }
 0x3eb   :  { %1512 = vadd.xlane.f32.xlu0 %v1450_v52 }
 0x437   :  { %v1455_v1 = vpop.xlane.xlu1 %1454 }
 0x438   :  { %v1517_v38 = vmul.f32 0.0078125, %v1455_v1  ;;  %v1453_v18 = vpop.xlane.xlu0 %1452  ;;  %v6926_v1 = vld [vmem:[%s8707_s10] ss:$0 sm:$0xff] }
 0x439   :  { %v1516_v20 = vmul.f32 0.0078125, %v1453_v18 }
 0x43a   :  { %v1549_v50 = vadd.f32 1e-05, %v1517_v38 }
 0x43b   :  { %v1548_v53 = vadd.f32 1e-05, %v1516_v20  ;;  %v1459_v5 = vpop.xlane.xlu1 %1458 }
 0x43c   :  { %5300 = vrsqrt.f32 %v1549_v50  ;;  %v1519_v11 = vmul.f32 0.0078125, %v1459_v5  ;;  %v1457_v49 = vpop.xlane.xlu0 %1456  ;;  %v6932_v5 = vld [vmem:[%s8708_s11] ss:$0 sm:$0xff] }
 0x43d   :  { %5302 = vrsqrt.f32 %v1548_v53  ;;  %v1518_v27 = vmul.f32 0.0078125, %v1457_v49 }
 0x43e   :  { %v1551_v63 = vadd.f32 1e-05, %v1519_v11 }
 0x43f   :  { %v1550_v45 = vadd.f32 1e-05, %v1518_v27  ;;  %v1463_v25 = vpop.xlane.xlu1 %1462 }
 0x440   :  { %5304 = vrsqrt.f32 %v1551_v63  ;;  %v1521_v44 = vmul.f32 0.0078125, %v1463_v25  ;;  %v1461_v13 = vpop.xlane.xlu0 %1460 }
 0x441   :  { %5306 = vrsqrt.f32 %v1550_v45  ;;  %v1520_v40 = vmul.f32 0.0078125, %v1461_v13 }
 0x442   :  { %v1553_v57 = vadd.f32 1e-05, %v1521_v44 }
 0x443   :  { %v1552_v39 = vadd.f32 1e-05, %v1520_v40  ;;  %v1467_v9 = vpop.xlane.xlu1 %1466 }
 0x444   :  { %5308 = vrsqrt.f32 %v1553_v57  ;;  %v1523_v8 = vmul.f32 0.0078125, %v1467_v9  ;;  %v1465_v56 = vpop.xlane.xlu0 %1464 }
 0x445   :  { %5310 = vrsqrt.f32 %v1552_v39  ;;  %v1522_v21 = vmul.f32 0.0078125, %v1465_v56 }
 0x446   :  { %v1555_v47 = vadd.f32 1e-05, %v1523_v8 }
 0x447   :  { %v1554_v15 = vadd.f32 1e-05, %v1522_v21  ;;  %v1471_v41 = vpop.xlane.xlu1 %1470 }
 0x448   :  { %5312 = vrsqrt.f32 %v1555_v47  ;;  %v1525_v61 = vmul.f32 0.0078125, %v1471_v41  ;;  %v1469_v32 = vpop.xlane.xlu0 %1468 }
 0x449   :  { %v5301_v22 = vpop.eup %5300  ;;  %5314 = vrsqrt.f32 %v1554_v15  ;;  %v1524_v52 = vmul.f32 0.0078125, %v1469_v32 }
 0x44a   :  { %v5303_v38 = vpop.eup %5302  ;;  %v1557_v18 = vadd.f32 1e-05, %v1525_v61  ;;  %v1613_v20 = vmul.f32 %v5301_v22, %v6728_v19 }
 0x44b   :  { %v1556_v50 = vadd.f32 1e-05, %v1524_v52  ;;  %v1475_v53 = vpop.xlane.xlu1 %1474  ;;  %v1612_v11 = vmul.f32 %v5303_v38, %v6731_v12 }
 0x44c   :  { %5316 = vrsqrt.f32 %v1557_v18  ;;  %v1527_v49 = vmul.f32 0.0078125, %v1475_v53  ;;  %v1473_v27 = vpop.xlane.xlu0 %1472  ;;  %v1651_v63 = vmul.f32 %v6926_v1, %v1613_v20 }
 0x44d   :  { %v5305_v45 = vpop.eup %5304  ;;  %5318 = vrsqrt.f32 %v1556_v50  ;;  %v1526_v25 = vmul.f32 0.0078125, %v1473_v27  ;;  %v1650_v44 = vmul.f32 %v6926_v1, %v1612_v11 }
 0x44e   :  { %v5307_v19 = vpop.eup %5306  ;;  %v1559_v13 = vadd.f32 1e-05, %v1527_v49  ;;  %v1689_v40 = vadd.f32 %v6932_v5, %v1651_v63  ;;  %v1615_v57 = vmul.f32 %v5305_v45, %v6738_v60 }
 0x44f   :  { %v1558_v39 = vadd.f32 1e-05, %v1526_v25  ;;  %v1479_v9 = vpop.xlane.xlu1 %1478  ;;  %v1688_v12 = vadd.f32 %v6932_v5, %v1650_v44  ;;  %v1614_v8 = vmul.f32 %v5307_v19, %v6741_v2 }
 0x450   :  { %5320 = vrsqrt.f32 %v1559_v13  ;;  %v1529_v56 = vmul.f32 0.0078125, %v1479_v9  ;;  %v1477_v21 = vpop.xlane.xlu0 %1476  ;;  %v1653_v47 = vmul.f32 %v6926_v1, %v1615_v57 }
 0x451   :  { %v5309_v15 = vpop.eup %5308  ;;  %5322 = vrsqrt.f32 %v1558_v39  ;;  %v1528_v41 = vmul.f32 0.0078125, %v1477_v21  ;;  %5040 = vmatprep.mubr.f32.mxu1 %v1688_v12  ;;  %v1652_v61 = vmul.f32 %v6926_v1, %v1614_v8 }
 0x452   :  { %v5311_v32 = vpop.eup %5310  ;;  %v1561_v22 = vadd.f32 1e-05, %v1529_v56  ;;  %5041 = vmatmul.mubr.f32.vlgmr.msra.gmra.mxu1 %v1689_v40  ;;  %v1691_v60 = vadd.f32 %v6932_v5, %v1653_v47  ;;  %v1617_v52 = vmul.f32 %v5309_v15, %v6748_v23 }
 0x453   :  { %v1560_v38 = vadd.f32 1e-05, %v1528_v41  ;;  %v1483_v2 = vpop.xlane.xlu1 %1482  ;;  %v1690_v18 = vadd.f32 %v6932_v5, %v1652_v61  ;;  %v1616_v20 = vmul.f32 %v5311_v32, %v6751_v28 }
 0x454   :  { %5324 = vrsqrt.f32 %v1561_v22  ;;  %v1531_v50 = vmul.f32 0.0078125, %v1483_v2  ;;  %v1481_v53 = vpop.xlane.xlu0 %1480  ;;  %v1655_v11 = vmul.f32 %v6926_v1, %v1617_v52 }
 0x455   :  { %v5313_v49 = vpop.eup %5312  ;;  %5326 = vrsqrt.f32 %v1560_v38  ;;  %v1530_v27 = vmul.f32 0.0078125, %v1481_v53  ;;  %5043 = vmatprep.mubr.f32.mxu1 %v1690_v18  ;;  %v1654_v63 = vmul.f32 %v6926_v1, %v1616_v20 }
 0x456   :  { %v5315_v45 = vpop.eup %5314  ;;  %v1563_v25 = vadd.f32 1e-05, %v1531_v50  ;;  %5044 = vmatmul.mubr.f32.gmra.mxu1 %v1691_v60  ;;  %v1693_v23 = vadd.f32 %v6932_v5, %v1655_v11  ;;  %v1619_v44 = vmul.f32 %v5313_v49, %v6758_v46 }
 0x457   :  { %v1562_v19 = vadd.f32 1e-05, %v1530_v27  ;;  %v1487_v28 = vpop.xlane.xlu1 %1486  ;;  %v1692_v13 = vadd.f32 %v6932_v5, %v1654_v63  ;;  %v1618_v40 = vmul.f32 %v5315_v45, %v6761_v17 }
 0x458   :  { %5328 = vrsqrt.f32 %v1563_v25  ;;  %v1533_v57 = vmul.f32 0.0078125, %v1487_v28  ;;  %v1485_v39 = vpop.xlane.xlu0 %1484  ;;  %v1657_v9 = vmul.f32 %v6926_v1, %v1619_v44 }
 0x459   :  { %v5317_v12 = vpop.eup %5316  ;;  %5330 = vrsqrt.f32 %v1562_v19  ;;  %v1532_v8 = vmul.f32 0.0078125, %v1485_v39  ;;  %5046 = vmatprep.mubr.f32.mxu1 %v1692_v13  ;;  %v1656_v56 = vmul.f32 %v6926_v1, %v1618_v40 }
 0x45a   :  { %v5319_v21 = vpop.eup %5318  ;;  %v1565_v47 = vadd.f32 1e-05, %v1533_v57  ;;  %5047 = vmatmul.mubr.f32.gmra.mxu1 %v1693_v23  ;;  %v1695_v46 = vadd.f32 %v6932_v5, %v1657_v9  ;;  %v1621_v15 = vmul.f32 %v5317_v12, %v6768_v34 }
 0x45b   :  { %v1564_v41 = vadd.f32 1e-05, %v1532_v8  ;;  %v1491_v17 = vpop.xlane.xlu1 %1490  ;;  %v1694_v61 = vadd.f32 %v6932_v5, %v1656_v56  ;;  %v1620_v32 = vmul.f32 %v5319_v21, %v6771_v59 }
 0x45c   :  { %5332 = vrsqrt.f32 %v1565_v47  ;;  %v1535_v22 = vmul.f32 0.0078125, %v1491_v17  ;;  %v1489_v60 = vpop.xlane.xlu0 %1488  ;;  %v1659_v52 = vmul.f32 %v6926_v1, %v1621_v15 }
 0x45d   :  { %v5321_v38 = vpop.eup %5320  ;;  %5334 = vrsqrt.f32 %v1564_v41  ;;  %v1534_v2 = vmul.f32 0.0078125, %v1489_v60  ;;  %5049 = vmatprep.mubr.f32.mxu1 %v1694_v61  ;;  %v1658_v18 = vmul.f32 %v6926_v1, %v1620_v32 }
 0x45e   :  { %v5323_v20 = vpop.eup %5322  ;;  %v1567_v50 = vadd.f32 1e-05, %v1535_v22  ;;  %5050 = vmatmul.mubr.f32.gmra.mxu1 %v1695_v46  ;;  %v1697_v34 = vadd.f32 %v6932_v5, %v1659_v52  ;;  %v1623_v53 = vmul.f32 %v5321_v38, %v6784_v6 }
 0x45f   :  { %v1566_v11 = vadd.f32 1e-05, %v1534_v2  ;;  %v1495_v59 = vpop.xlane.xlu1 %1494  ;;  %v1696_v49 = vadd.f32 %v6932_v5, %v1658_v18  ;;  %v1622_v27 = vmul.f32 %v5323_v20, %v6787_v7 }
 0x460   :  { %5336 = vrsqrt.f32 %v1567_v50  ;;  %v1537_v63 = vmul.f32 0.0078125, %v1495_v59  ;;  %v1493_v45 = vpop.xlane.xlu0 %1492  ;;  %v1661_v25 = vmul.f32 %v6926_v1, %v1623_v53 }
 0x461   :  { %v5325_v23 = vpop.eup %5324  ;;  %5338 = vrsqrt.f32 %v1566_v11  ;;  %v1536_v44 = vmul.f32 0.0078125, %v1493_v45  ;;  %5052 = vmatprep.mubr.f32.mxu1 %v1696_v49  ;;  %v1660_v19 = vmul.f32 %v6926_v1, %v1622_v27 }
 0x462   :  { %v5327_v28 = vpop.eup %5326  ;;  %v1569_v13 = vadd.f32 1e-05, %v1537_v63  ;;  %5053 = vmatmul.mubr.f32.gmra.mxu1 %v1697_v34  ;;  %v1699_v6 = vadd.f32 %v6932_v5, %v1661_v25  ;;  %v1625_v40 = vmul.f32 %v5325_v23, %v6800_v33 }
 0x463   :  { %v1568_v57 = vadd.f32 1e-05, %v1536_v44  ;;  %v1499_v7 = vpop.xlane.xlu1 %1498  ;;  %v1698_v39 = vadd.f32 %v6932_v5, %v1660_v19  ;;  %v1624_v9 = vmul.f32 %v5327_v28, %v6803_v37 }
 0x464   :  { %5340 = vrsqrt.f32 %v1569_v13  ;;  %v1539_v12 = vmul.f32 0.0078125, %v1499_v7  ;;  %v1497_v8 = vpop.xlane.xlu0 %1496  ;;  %v1663_v56 = vmul.f32 %v6926_v1, %v1625_v40 }
 0x465   :  { %v5329_v21 = vpop.eup %5328  ;;  %5342 = vrsqrt.f32 %v1568_v57  ;;  %v1538_v47 = vmul.f32 0.0078125, %v1497_v8  ;;  %5055 = vmatprep.mubr.f32.mxu1 %v1698_v39  ;;  %v1662_v46 = vmul.f32 %v6926_v1, %v1624_v9 }
 0x466   :  { %v5331_v15 = vpop.eup %5330  ;;  %v1571_v41 = vadd.f32 1e-05, %v1539_v12  ;;  %5056 = vmatmul.mubr.f32.gmra.mxu1 %v1699_v6  ;;  %v1701_v33 = vadd.f32 %v6932_v5, %v1663_v56  ;;  %v1627_v17 = vmul.f32 %v5329_v21, %v6816_v0 }
 0x467   :  { %v1570_v61 = vadd.f32 1e-05, %v1538_v47  ;;  %v1503_v37 = vpop.xlane.xlu1 %1502  ;;  %v1700_v32 = vadd.f32 %v6932_v5, %v1662_v46  ;;  %v1626_v22 = vmul.f32 %v5331_v15, %v6819_v24 }
 0x468   :  { %5344 = vrsqrt.f32 %v1571_v41  ;;  %v1541_v60 = vmul.f32 0.0078125, %v1503_v37  ;;  %v1501_v52 = vpop.xlane.xlu0 %1500  ;;  %v1665_v38 = vmul.f32 %v6926_v1, %v1627_v17 }
 0x469   :  { %v5333_v2 = vpop.eup %5332  ;;  %5346 = vrsqrt.f32 %v1570_v61  ;;  %v1540_v18 = vmul.f32 0.0078125, %v1501_v52  ;;  %5058 = vmatprep.mubr.f32.mxu1 %v1700_v32  ;;  %v1664_v20 = vmul.f32 %v6926_v1, %v1626_v22 }
 0x46a   :  { %v5335_v50 = vpop.eup %5334  ;;  %v1573_v34 = vadd.f32 1e-05, %v1541_v60  ;;  %5059 = vmatmul.mubr.f32.gmra.mxu1 %v1701_v33  ;;  %v1703_v0 = vadd.f32 %v6932_v5, %v1665_v38  ;;  %v1629_v53 = vmul.f32 %v5333_v2, %v6832_v14 }
 0x46b   :  { %v1572_v11 = vadd.f32 1e-05, %v1540_v18  ;;  %v1507_v24 = vpop.xlane.xlu1 %1506  ;;  %v1702_v59 = vadd.f32 %v6932_v5, %v1664_v20  ;;  %v1628_v49 = vmul.f32 %v5335_v50, %v6835_v55 }
 0x46c   :  { %5348 = vrsqrt.f32 %v1573_v34  ;;  %v1543_v27 = vmul.f32 0.0078125, %v1507_v24  ;;  %v1505_v63 = vpop.xlane.xlu0 %1504  ;;  %v1667_v45 = vmul.f32 %v6926_v1, %v1629_v53 }
 0x46d   :  { %v5337_v25 = vpop.eup %5336  ;;  %5350 = vrsqrt.f32 %v1572_v11  ;;  %v1542_v23 = vmul.f32 0.0078125, %v1505_v63  ;;  %5061 = vmatprep.mubr.f32.mxu1 %v1702_v59  ;;  %v1666_v44 = vmul.f32 %v6926_v1, %v1628_v49 }
 0x46e   :  { %v5339_v19 = vpop.eup %5338  ;;  %v1575_v28 = vadd.f32 1e-05, %v1543_v27  ;;  %5062 = vmatmul.mubr.f32.gmra.mxu1 %v1703_v0  ;;  %v1705_v14 = vadd.f32 %v6932_v5, %v1667_v45  ;;  %v1631_v13 = vmul.f32 %v5337_v25, %v6848_v42 }
 0x46f   :  { %v1574_v6 = vadd.f32 1e-05, %v1542_v23  ;;  %v1511_v55 = vpop.xlane.xlu1 %1510  ;;  %v1704_v40 = vadd.f32 %v6932_v5, %v1666_v44  ;;  %v1630_v57 = vmul.f32 %v5339_v19, %v6851_v31 }
 0x470   :  { %5352 = vrsqrt.f32 %v1575_v28  ;;  %v1545_v7 = vmul.f32 0.0078125, %v1511_v55  ;;  %v1509_v39 = vpop.xlane.xlu0 %1508  ;;  %v1669_v9 = vmul.f32 %v6926_v1, %v1631_v13 }
 0x471   :  { %v5341_v12 = vpop.eup %5340  ;;  %5354 = vrsqrt.f32 %v1574_v6  ;;  %v1544_v8 = vmul.f32 0.0078125, %v1509_v39  ;;  %5064 = vmatprep.mubr.f32.mxu1 %v1704_v40  ;;  %v1668_v56 = vmul.f32 %v6926_v1, %v1630_v57 }
 0x472   :  { %v5343_v21 = vpop.eup %5342  ;;  %v1577_v47 = vadd.f32 1e-05, %v1545_v7  ;;  %5065 = vmatmul.mubr.f32.gmra.mxu1 %v1705_v14  ;;  %v1707_v42 = vadd.f32 %v6932_v5, %v1669_v9  ;;  %v1633_v46 = vmul.f32 %v5341_v12, %v6864_v51 }
 0x473   :  { %v1576_v15 = vadd.f32 1e-05, %v1544_v8  ;;  %v1515_v31 = vpop.xlane.xlu1 %1514  ;;  %v1706_v41 = vadd.f32 %v6932_v5, %v1668_v56  ;;  %v1632_v33 = vmul.f32 %v5343_v21, %v6867_v29 }
 0x474   :  { %5356 = vrsqrt.f32 %v1577_v47  ;;  %v1547_v17 = vmul.f32 0.0078125, %v1515_v31  ;;  %v1513_v61 = vpop.xlane.xlu0 %1512  ;;  %v1671_v37 = vmul.f32 %v6926_v1, %v1633_v46 }
 0x475   :  { %v5345_v32 = vpop.eup %5344  ;;  %5358 = vrsqrt.f32 %v1576_v15  ;;  %v1546_v22 = vmul.f32 0.0078125, %v1513_v61  ;;  %5067 = vmatprep.mubr.f32.mxu1 %v1706_v41  ;;  %v1670_v60 = vmul.f32 %v6926_v1, %v1632_v33 }
 0x476   :  { %v5347_v52 = vpop.eup %5346  ;;  %v1579_v38 = vadd.f32 1e-05, %v1547_v17  ;;  %5068 = vmatmul.mubr.f32.gmra.mxu1 %v1707_v42  ;;  %v1709_v51 = vadd.f32 %v6932_v5, %v1671_v37  ;;  %v1635_v2 = vmul.f32 %v5345_v32, %v6874_v36 }
 0x477   :  { %v1578_v18 = vadd.f32 1e-05, %v1546_v22  ;;  %v1708_v29 = vadd.f32 %v6932_v5, %v1670_v60  ;;  %v1634_v20 = vmul.f32 %v5347_v52, %v6877_v58 }
 0x478   :  { %5360 = vrsqrt.f32 %v1579_v38  ;;  %v1673_v50 = vmul.f32 %v6926_v1, %v1635_v2 }
 0x479   :  { %v5349_v34 = vpop.eup %5348  ;;  %5362 = vrsqrt.f32 %v1578_v18  ;;  %5070 = vmatprep.mubr.f32.mxu1 %v1708_v29  ;;  %v1672_v0 = vmul.f32 %v6926_v1, %v1634_v20 }
 0x47a   :  { %v5351_v53 = vpop.eup %5350  ;;  %5071 = vmatmul.mubr.f32.gmra.mxu1 %v1709_v51  ;;  %v1711_v11 = vadd.f32 %v6932_v5, %v1673_v50  ;;  %v1637_v24 = vmul.f32 %v5349_v34, %v6884_v48 }
 0x47b   :  { %v1710_v36 = vadd.f32 %v6932_v5, %v1672_v0  ;;  %v1636_v59 = vmul.f32 %v5351_v53, %v6887_v62 }
 0x47c   :  { %v1675_v58 = vmul.f32 %v6926_v1, %v1637_v24 }
 0x47d   :  { %v5353_v49 = vpop.eup %5352  ;;  %5073 = vmatprep.mubr.f32.mxu1 %v1710_v36  ;;  %v1674_v27 = vmul.f32 %v6926_v1, %v1636_v59 }
 0x47e   :  { %v5355_v63 = vpop.eup %5354  ;;  %5074 = vmatmul.mubr.f32.gmra.mxu1 %v1711_v11  ;;  %v1713_v45 = vadd.f32 %v6932_v5, %v1675_v58  ;;  %v1639_v25 = vmul.f32 %v5353_v49, %v6894_v16 }
 0x47f   :  { %v1712_v23 = vadd.f32 %v6932_v5, %v1674_v27  ;;  %v1638_v48 = vmul.f32 %v5355_v63, %v6897_v10  ;;  %v7057_v63 = vld [vmem:[%s8711_s14] ss:$0 sm:$0xff]  ;;  %s4778_s14 = sld [smem:[#allocation8 + $0x1]] }
 0x480   :  { %v1677_v44 = vmul.f32 %v6926_v1, %v1639_v25 }
 0x481   :  { %v5357_v19 = vpop.eup %5356  ;;  %5076 = vmatprep.mubr.f32.mxu1 %v1712_v23  ;;  %v1676_v62 = vmul.f32 %v6926_v1, %v1638_v48 }
 0x482   :  { %v5359_v28 = vpop.eup %5358  ;;  %5077 = vmatmul.mubr.f32.gmra.mxu1 %v1713_v45  ;;  %v1715_v14 = vadd.f32 %v6932_v5, %v1677_v44  ;;  %v1641_v13 = vmul.f32 %v5357_v19, %v6904_v3 }
 0x483   :  { %v1714_v6 = vadd.f32 %v6932_v5, %v1676_v62  ;;  %v1640_v16 = vmul.f32 %v5359_v28, %v6907_v4 }
 0x484   :  { %v1679_v55 = vmul.f32 %v6926_v1, %v1641_v13 }
 0x485   :  { %v5361_v40 = vpop.eup %5360  ;;  %5079 = vmatprep.mubr.f32.mxu1 %v1714_v6  ;;  %v1678_v10 = vmul.f32 %v6926_v1, %v1640_v16 }
 0x486   :  { %v5363_v57 = vpop.eup %5362  ;;  %5080 = vmatmul.mubr.f32.gmra.mxu1 %v1715_v14  ;;  %v1717_v7 = vadd.f32 %v6932_v5, %v1679_v55  ;;  %v1643_v39 = vmul.f32 %v5361_v40, %v6914_v35  ;;  %v7032_v35 = vld [vmem:[%s8710_s13] ss:$0 sm:$0xff] }
 0x487   :  { %v1716_v9 = vadd.f32 %v6932_v5, %v1678_v10  ;;  %v1642_v3 = vmul.f32 %v5363_v57, %v6917_v54 }
 0x488   :  { %v1681_v12 = vmul.f32 %v6926_v1, %v1643_v39 }
 0x489   :  { %5082 = vmatprep.mubr.f32.mxu1 %v1716_v9  ;;  %v1680_v4 = vmul.f32 %v6926_v1, %v1642_v3 }
 0x48a   :  { %5083 = vmatmul.mubr.f32.gmra.mxu1 %v1717_v7  ;;  %v1719_v8 = vadd.f32 %v6932_v5, %v1681_v12 }
 0x48b   :  { %v1718_v56 = vadd.f32 %v6932_v5, %v1680_v4 }
 0x48d   :  { %5085 = vmatprep.mubr.f32.mxu1 %v1718_v56 }
 0x48e   :  { %5086 = vmatmul.mubr.f32.gmra.mxu1 %v1719_v8 }
 0x512   :  { %v5042_v21 = vpop.f32.mrf.mxu1 }
 0x513   :  { %v1815_v54 = vadd.f32 %v5042_v21, %v7032_v35 }
 0x514   :  { %v1809_v47 = vpop.f32.mrf.mxu1 }
 0x515   :  { %v2001_v42 = vmul.f32 0.70710677, %v1815_v54  ;;  %v1810_v46 = vadd.f32 %v7032_v35, %v1809_v47  ;;  %v1969_v11 = vmul.f32 0.5, %v1815_v54 }
 0x516   :  { %v5045_v1 = vpop.f32.mrf.mxu1 }
 0x517   :  { %5364 = verf.f32 %v2001_v42  ;;  %v2000_v15 = vmul.f32 0.70710677, %v1810_v46  ;;  %v1825_v31 = vadd.f32 %v5045_v1, %v7032_v35  ;;  %v1968_v49 = vmul.f32 0.5, %v1810_v46 }
 0x518   :  { %v1819_v5 = vpop.f32.mrf.mxu1 }
 0x519   :  { %5366 = verf.f32 %v2000_v15  ;;  %v2003_v41 = vmul.f32 0.70710677, %v1825_v31  ;;  %v1820_v33 = vadd.f32 %v7032_v35, %v1819_v5  ;;  %v1971_v25 = vmul.f32 0.5, %v1825_v31 }
 0x51a   :  { %v5048_v17 = vpop.f32.mrf.mxu1 }
 0x51b   :  { %5368 = verf.f32 %v2003_v41  ;;  %v2002_v61 = vmul.f32 0.70710677, %v1820_v33  ;;  %v1835_v37 = vadd.f32 %v5048_v17, %v7032_v35  ;;  %v1970_v10 = vmul.f32 0.5, %v1820_v33 }
 0x51c   :  { %v1829_v32 = vpop.f32.mrf.mxu1 }
 0x51d   :  { %5370 = verf.f32 %v2002_v61  ;;  %v2005_v22 = vmul.f32 0.70710677, %v1835_v37  ;;  %v7040_v60 = vadd.f32 %v7032_v35, %v1829_v32  ;;  %v1973_v42 = vmul.f32 0.5, %v1835_v37 }
 0x51e   :  { %v5051_v52 = vpop.f32.mrf.mxu1 }
 0x51f   :  { %5372 = verf.f32 %v2005_v22  ;;  %v2004_v38 = vmul.f32 0.70710677, %v7040_v60  ;;  %v7044_v51 = vadd.f32 %v5051_v52, %v7032_v35  ;;  %v1972_v61 = vmul.f32 0.5, %v7040_v60 }
 0x520   :  { %v1839_v2 = vpop.f32.mrf.mxu1 }
 0x521   :  { %5374 = verf.f32 %v2004_v38  ;;  %v7047_v18 = vadd.f32 %v7032_v35, %v1839_v2  ;;  %v2007_v29 = vmul.f32 0.70710677, %v7044_v51 }
 0x522   :  { %v5054_v20 = vpop.f32.mrf.mxu1 }
 0x523   :  { %v2006_v34 = vmul.f32 0.70710677, %v7047_v18  ;;  %v7052_v0 = vadd.f32 %v5054_v20, %v7032_v35  ;;  %5376 = verf.f32 %v2007_v29 }
 0x524   :  { %v5365_v50 = vpop.eup %5364  ;;  %v1849_v53 = vpop.f32.mrf.mxu1 }
 0x525   :  { %v2065_v24 = vadd.f32 1.0, %v5365_v50  ;;  %5378 = verf.f32 %v2006_v34  ;;  %v2009_v23 = vmul.f32 0.70710677, %v7052_v0  ;;  %v7061_v62 = vadd.f32 %v7032_v35, %v1849_v53 }
 0x526   :  { %v5367_v36 = vpop.eup %5366  ;;  %v5057_v59 = vpop.f32.mrf.mxu1 }
 0x527   :  { %v2097_v58 = vmul.f32 %v2065_v24, %v1969_v11  ;;  %v2064_v27 = vadd.f32 1.0, %v5367_v36  ;;  %v7064_v28 = vadd.f32 %v5057_v59, %v7032_v35  ;;  %5380 = verf.f32 %v2009_v23 }
 0x528   :  { %v5369_v45 = vpop.eup %5368  ;;  %v1859_v48 = vpop.f32.mrf.mxu1  ;;  %v2008_v9 = vmul.f32 0.70710677, %v7061_v62  ;;  %v1975_v24 = vmul.f32 0.5, %v7044_v51 }
 0x529   :  { %v2096_v44 = vmul.f32 %v2064_v27, %v1968_v49  ;;  %v2067_v19 = vadd.f32 1.0, %v5369_v45  ;;  %v2137_v6 = vmul.f32 %v7057_v63, %v2097_v58  ;;  %v2011_v3 = vmul.f32 0.70710677, %v7064_v28 }
 0x52a   :  { %v5371_v14 = vpop.eup %5370  ;;  %v5060_v13 = vpop.f32.mrf.mxu1  ;;  %v7072_v12 = vadd.f32 %v7032_v35, %v1859_v48  ;;  %5382 = verf.f32 %v2008_v9  ;;  %v1974_v49 = vmul.f32 0.5, %v7047_v18 }
 0x52b   :  { %v2099_v16 = vmul.f32 %v2067_v19, %v1971_v25  ;;  %v2066_v55 = vadd.f32 1.0, %v5371_v14  ;;  %v2172_v57 = vsel %vm2168_vm2, %v2137_v6, 0.0  ;;  %v2136_v39 = vmul.f32 %v7057_v63, %v2096_v44 }
 0x52c   :  { %v5373_v40 = vpop.eup %5372  ;;  %v1869_v7 = vpop.f32.mrf.mxu1  ;;  %2173 = vadd.xlane.f32.xlu1 %v2172_v57  ;;  %v2010_v15 = vmul.f32 0.70710677, %v7072_v12  ;;  %5384 = verf.f32 %v2011_v3  ;;  %v7084_v37 = vadd.f32 %v5060_v13, %v7032_v35  ;;  %v1977_v14 = vmul.f32 0.5, %v7052_v0 }
 0x52d   :  { %v2098_v8 = vmul.f32 %v2066_v55, %v1970_v10  ;;  %v2069_v56 = vadd.f32 1.0, %v5373_v40  ;;  %v2169_v21 = vsel %vm2168_vm2, %v2136_v39, 0.0  ;;  %v2139_v47 = vmul.f32 %v7057_v63, %v2099_v16 }
 0x52e   :  { %v5375_v4 = vpop.eup %5374  ;;  %v5063_v54 = vpop.f32.mrf.mxu1  ;;  %2170 = vadd.xlane.f32.xlu0 %v2169_v21  ;;  %5386 = verf.f32 %v2010_v15  ;;  %v7093_v53 = vadd.f32 %v7032_v35, %v1869_v7  ;;  %v2013_v36 = vmul.f32 0.70710677, %v7084_v37 }
 0x52f   :  { %v2068_v1 = vadd.f32 1.0, %v5375_v4  ;;  %v2101_v31 = vmul.f32 %v2069_v56, %v1973_v42  ;;  %v2178_v5 = vsel %vm2168_vm2, %v2139_v47, 0.0  ;;  %v2138_v33 = vmul.f32 %v7057_v63, %v2098_v8 }
 0x530   :  { %v1879_v46 = vpop.f32.mrf.mxu1  ;;  %v5377_v17 = vpop.eup %5376  ;;  %v2012_v13 = vmul.f32 0.70710677, %v7093_v53  ;;  %v7112_v16 = vadd.f32 %v5063_v54, %v7032_v35  ;;  %v1976_v47 = vmul.f32 0.5, %v7061_v62 }
 0x531   :  { %v2100_v38 = vmul.f32 %v2068_v1, %v1972_v61  ;;  %v2071_v29 = vadd.f32 1.0, %v5377_v17  ;;  %v2175_v50 = vsel %vm2168_vm2, %v2138_v33, 0.0  ;;  %v2141_v34 = vmul.f32 %v7057_v63, %v2101_v31 }
 0x532   :  { %v5066_v41 = vpop.f32.mrf.mxu1  ;;  %2179 = vadd.xlane.f32.xlu0 %v2178_v5  ;;  %v5379_v52 = vpop.eup %5378  ;;  %v7118_v57 = vadd.f32 %v7032_v35, %v1879_v46  ;;  %v2015_v42 = vmul.f32 0.70710677, %v7112_v16 }
 0x533   :  { %v7081_v32 = vadd.f32 %v5066_v41, %v7032_v35  ;;  %v2070_v27 = vadd.f32 1.0, %v5379_v52  ;;  %v2103_v23 = vmul.f32 %v2071_v29, %v1975_v24  ;;  %v2184_v44 = vsel %vm2168_vm2, %v2141_v34, 0.0 }
 0x534   :  { %v1889_v22 = vpop.f32.mrf.mxu1  ;;  %v5381_v58 = vpop.eup %5380  ;;  %v2140_v51 = vmul.f32 %v7057_v63, %v2100_v38  ;;  %v2014_v1 = vmul.f32 0.70710677, %v7118_v57  ;;  %v1978_v52 = vmul.f32 0.5, %v7072_v12 }
 0x535   :  { %v2017_v2 = vmul.f32 0.70710677, %v7081_v32  ;;  %v7088_v20 = vadd.f32 %v7032_v35, %v1889_v22  ;;  %v2073_v6 = vadd.f32 1.0, %v5381_v58  ;;  %v2102_v10 = vmul.f32 %v2070_v27, %v1974_v49 }
 0x536   :  { %v5069_v60 = vpop.f32.mrf.mxu1  ;;  %2176 = vadd.xlane.f32.xlu0 %v2175_v50  ;;  %v2181_v9 = vsel %vm2168_vm2, %v2140_v51, 0.0  ;;  %v2143_v4 = vmul.f32 %v7057_v63, %v2103_v23  ;;  %v1979_v22 = vmul.f32 0.5, %v7064_v28  ;;  %v1985_v29 = vmul.f32 0.5, %v7081_v32 }
 0x537   :  { %5388 = verf.f32 %v2017_v2  ;;  %v7096_v11 = vadd.f32 %v5069_v60, %v7032_v35  ;;  %v2016_v48 = vmul.f32 0.70710677, %v7088_v20  ;;  %v5383_v7 = vpop.eup %5382  ;;  %v2105_v54 = vmul.f32 %v2073_v6, %v1977_v14 }
 0x538   :  { %v1899_v59 = vpop.f32.mrf.mxu1  ;;  %v2142_v31 = vmul.f32 %v7057_v63, %v2102_v10  ;;  %v2072_v41 = vadd.f32 1.0, %v5383_v7  ;;  %v2190_v61 = vsel %vm2168_vm2, %v2143_v4, 0.0  ;;  %v7148_v28 = vmul.f32 0.5, %v7088_v20 }
 0x539   :  { %v2019_v45 = vmul.f32 0.70710677, %v7096_v11  ;;  %v7103_v25 = vadd.f32 %v7032_v35, %v1899_v59  ;;  %v5385_v8 = vpop.eup %5384  ;;  %v2145_v34 = vmul.f32 %v7057_v63, %v2105_v54 }
 0x53a   :  { %v5072_v19 = vpop.f32.mrf.mxu1  ;;  %2185 = vadd.xlane.f32.xlu0 %v2184_v44  ;;  %v2075_v33 = vadd.f32 1.0, %v5385_v8  ;;  %v2187_v49 = vsel %vm2168_vm2, %v2142_v31, 0.0 }
 0x53b   :  { %5390 = verf.f32 %v2019_v45  ;;  %v2018_v18 = vmul.f32 0.70710677, %v7103_v25  ;;  %v7115_v55 = vadd.f32 %v5072_v19, %v7032_v35  ;;  %v5387_v5 = vpop.eup %5386  ;;  %v1987_v45 = vmul.f32 0.5, %v7096_v11 }
 0x53c   :  { %5392 = verf.f32 %v2013_v36  ;;  %v1909_v40 = vpop.f32.mrf.mxu1  ;;  %v2104_v36 = vmul.f32 %v2072_v41, %v1976_v47  ;;  %v2107_v59 = vmul.f32 %v2075_v33, %v1979_v22  ;;  %v2074_v58 = vadd.f32 1.0, %v5387_v5 }
 0x53d   :  { %5394 = verf.f32 %v2018_v18  ;;  %v7121_v0 = vadd.f32 %v7032_v35, %v1909_v40  ;;  %v2021_v39 = vmul.f32 0.70710677, %v7115_v55  ;;  %v1986_v20 = vmul.f32 0.5, %v7103_v25 }
 0x53e   :  { %5396 = verf.f32 %v2016_v48  ;;  %v5075_v3 = vpop.f32.mrf.mxu1  ;;  %2182 = vadd.xlane.f32.xlu0 %v2181_v9  ;;  %v2196_v14 = vsel %vm2168_vm2, %v2145_v34, 0.0  ;;  %v2106_v10 = vmul.f32 %v2074_v58, %v1978_v52  ;;  %v2147_v9 = vmul.f32 %v7057_v63, %v2107_v59 }
 0x53f   :  { %5398 = verf.f32 %v2012_v13  ;;  %v2020_v56 = vmul.f32 0.70710677, %v7121_v0  ;;  %v7128_v21 = vadd.f32 %v5075_v3, %v7032_v35  ;;  %v1989_v47 = vmul.f32 0.5, %v7115_v55 }
 0x540   :  { %5400 = verf.f32 %v2021_v39  ;;  %v1919_v46 = vpop.f32.mrf.mxu1  ;;  %v2144_v39 = vmul.f32 %v7057_v63, %v2104_v36 }
 0x541   :  { %5402 = verf.f32 %v2020_v56  ;;  %v2023_v15 = vmul.f32 0.70710677, %v7128_v21  ;;  %v7136_v17 = vadd.f32 %v7032_v35, %v1919_v46 }
 0x542   :  { %v5078_v62 = vpop.f32.mrf.mxu1  ;;  %2191 = vadd.xlane.f32.xlu0 %v2190_v61  ;;  %v2193_v22 = vsel %vm2168_vm2, %v2144_v39, 0.0 }
 0x543   :  { %5404 = verf.f32 %v2023_v15  ;;  %v7142_v38 = vadd.f32 %v5078_v62, %v7032_v35  ;;  %v2022_v50 = vmul.f32 0.70710677, %v7136_v17 }
 0x544   :  { %v5389_v2 = vpop.eup %5388  ;;  %5406 = verf.f32 %v2015_v42  ;;  %v1929_v60 = vpop.f32.mrf.mxu1 }
 0x545   :  { %5408 = verf.f32 %v2014_v1  ;;  %v2081_v24 = vadd.f32 1.0, %v5389_v2  ;;  %v7151_v12 = vadd.f32 %v7032_v35, %v1929_v60  ;;  %v2025_v23 = vmul.f32 0.70710677, %v7142_v38 }
 0x546   :  { %v5081_v27 = vpop.f32.mrf.mxu1  ;;  %2188 = vadd.xlane.f32.xlu0 %v2187_v49  ;;  %5410 = verf.f32 %v2022_v50 }
 0x547   :  { %v2113_v32 = vmul.f32 %v2081_v24, %v1985_v29  ;;  %v2024_v48 = vmul.f32 0.70710677, %v7151_v12  ;;  %v7159_v19 = vadd.f32 %v5081_v27, %v7032_v35 }
 0x548   :  { %v5391_v44 = vpop.eup %5390  ;;  %v1939_v51 = vpop.f32.mrf.mxu1 }
 0x549   :  { %v5393_v13 = vpop.eup %5392  ;;  %v2083_v18 = vadd.f32 1.0, %v5391_v44  ;;  %5412 = verf.f32 %v2024_v48  ;;  %v7163_v11 = vadd.f32 %v7032_v35, %v1939_v51  ;;  %v2153_v6 = vmul.f32 %v7057_v63, %v2113_v32 }
 0x54a   :  { %v5395_v40 = vpop.eup %5394  ;;  %v2027_v7 = vmul.f32 0.70710677, %v7159_v19  ;;  %v5084_v25 = vpop.f32.mrf.mxu1  ;;  %5414 = verf.f32 %v2025_v23  ;;  %2197 = vadd.xlane.f32.xlu0 %v2196_v14  ;;  %v2077_v2 = vadd.f32 1.0, %v5393_v13  ;;  %v1988_v32 = vmul.f32 0.5, %v7121_v0 }
 0x54b   :  { %v5397_v3 = vpop.eup %5396  ;;  %v2115_v4 = vmul.f32 %v2083_v18, %v1987_v45  ;;  %v2082_v8 = vadd.f32 1.0, %v5395_v40  ;;  %v2026_v56 = vmul.f32 0.70710677, %v7163_v11  ;;  %v7172_v42 = vadd.f32 %v5084_v25, %v7032_v35 }
 0x54c   :  { %v5399_v54 = vpop.eup %5398  ;;  %5416 = verf.f32 %v2027_v7  ;;  %v2220_v46 = vsel %vm2168_vm2, %v2153_v6, 0.0  ;;  %v1949_v1 = vpop.f32.mrf.mxu1  ;;  %v2080_v61 = vadd.f32 1.0, %v5397_v3  ;;  %v2202_v45 = vsel %vm2168_vm2, %v2147_v9, 0.0 }
 0x54d   :  { %v5401_v15 = vpop.eup %5400  ;;  %v2114_v31 = vmul.f32 %v2082_v8, %v1986_v20  ;;  %5418 = verf.f32 %v2026_v56  ;;  %2221 = vadd.xlane.f32.xlu1 %v2220_v46  ;;  %v7176_v5 = vadd.f32 %v7032_v35, %v1949_v1  ;;  %v2155_v41 = vmul.f32 %v7057_v63, %v2115_v4 }
 0x54e   :  { %v5403_v33 = vpop.eup %5402  ;;  %v2085_v62 = vadd.f32 1.0, %v5401_v15  ;;  %v2029_v55 = vmul.f32 0.70710677, %v7172_v42  ;;  %v5087_v52 = vpop.f32.mrf.mxu1  ;;  %2194 = vadd.xlane.f32.xlu0 %v2193_v22  ;;  %v2076_v27 = vadd.f32 1.0, %v5399_v54  ;;  %v2112_v48 = vmul.f32 %v2080_v61, %v7148_v28 }
 0x54f   :  { %v2084_v29 = vadd.f32 1.0, %v5403_v33  ;;  %v2028_v50 = vmul.f32 0.70710677, %v7176_v5  ;;  %v7183_v60 = vadd.f32 %v5087_v52, %v7032_v35  ;;  %v2226_v36 = vsel %vm2168_vm2, %v2155_v41, 0.0 }
 0x550   :  { %v5405_v34 = vpop.eup %5404  ;;  %v2117_v24 = vmul.f32 %v2085_v62, %v1989_v47  ;;  %5420 = verf.f32 %v2029_v55  ;;  %v1959_v59 = vpop.f32.mrf.mxu1  ;;  %v2154_v58 = vmul.f32 %v7057_v63, %v2114_v31  ;;  %v2146_v51 = vmul.f32 %v7057_v63, %v2106_v10 }
 0x551   :  { %v5407_v49 = vpop.eup %5406  ;;  %5422 = verf.f32 %v2028_v50  ;;  %2227 = vadd.xlane.f32.xlu1 %v2226_v36  ;;  %v2031_v44 = vmul.f32 0.70710677, %v7183_v60  ;;  %v7192_v20 = vadd.f32 %v7032_v35, %v1959_v59  ;;  %v1981_v14 = vmul.f32 0.5, %v7084_v37 }
 0x552   :  { %v5409_v23 = vpop.eup %5408  ;;  %v1980_v13 = vmul.f32 0.5, %v7093_v53  ;;  %v2116_v18 = vmul.f32 %v2084_v29, %v1988_v32  ;;  %v2087_v0 = vadd.f32 1.0, %v5405_v34  ;;  %2203 = vadd.xlane.f32.xlu0 %v2202_v45  ;;  %v2223_v40 = vsel %vm2168_vm2, %v2154_v58, 0.0 }
 0x553   :  { %5424 = verf.f32 %v2031_v44  ;;  %v2030_v6 = vmul.f32 0.70710677, %v7192_v20  ;;  %v2157_v28 = vmul.f32 %v7057_v63, %v2117_v24  ;;  %v5411_v7 = vpop.eup %5410  ;;  %v2109_v25 = vmul.f32 %v2077_v2, %v1981_v14 }
 0x554   :  { %v1983_v35 = vmul.f32 0.5, %v7112_v16  ;;  %v1991_v10 = vmul.f32 0.5, %v7128_v21  ;;  %v2108_v39 = vmul.f32 %v2076_v27, %v1980_v13  ;;  %v2199_v53 = vsel %vm2168_vm2, %v2146_v51, 0.0 }
 0x555   :  { %2224 = vadd.xlane.f32.xlu1 %v2223_v40  ;;  %5426 = verf.f32 %v2030_v6  ;;  %v2152_v9 = vmul.f32 %v7057_v63, %v2112_v48  ;;  %v2079_v3 = vadd.f32 1.0, %v5407_v49  ;;  %v1982_v4 = vmul.f32 0.5, %v7118_v57 }
 0x556   :  { %v5413_v37 = vpop.eup %5412  ;;  %v1992_v8 = vmul.f32 0.5, %v7151_v12  ;;  %2200 = vadd.xlane.f32.xlu0 %v2199_v53  ;;  %v2119_v47 = vmul.f32 %v2087_v0, %v1991_v10  ;;  %v2086_v16 = vadd.f32 1.0, %v5411_v7  ;;  %v2232_v21 = vsel %vm2168_vm2, %v2157_v28, 0.0 }
 0x557   :  { %v2088_v56 = vadd.f32 1.0, %v5413_v37  ;;  %v5415_v54 = vpop.eup %5414  ;;  %v2156_v46 = vmul.f32 %v7057_v63, %v2116_v18  ;;  %v2078_v15 = vadd.f32 1.0, %v5409_v23  ;;  %v1990_v31 = vmul.f32 0.5, %v7136_v17 }
 0x558   :  { %v2149_v33 = vmul.f32 %v7057_v63, %v2109_v25  ;;  %v1995_v12 = vmul.f32 0.5, %v7159_v19  ;;  %v2217_v62 = vsel %vm2168_vm2, %v2152_v9, 0.0  ;;  %v2148_v55 = vmul.f32 %v7057_v63, %v2108_v39 }
 0x559   :  { %v5417_v1 = vpop.eup %5416  ;;  %v2120_v41 = vmul.f32 %v2088_v56, %v1992_v8  ;;  %2233 = vadd.xlane.f32.xlu1 %v2232_v21  ;;  %v2089_v22 = vadd.f32 1.0, %v5415_v54  ;;  %v1994_v52 = vmul.f32 0.5, %v7163_v11  ;;  %v2118_v17 = vmul.f32 %v2086_v16, %v1990_v31 }
 0x55a   :  { %v5419_v57 = vpop.eup %5418  ;;  %v2091_v61 = vadd.f32 1.0, %v5417_v1  ;;  %2218 = vadd.xlane.f32.xlu0 %v2217_v62  ;;  %v2229_v34 = vsel %vm2168_vm2, %v2156_v46, 0.0  ;;  %v2159_v24 = vmul.f32 %v7057_v63, %v2119_v47  ;;  %v2110_v19 = vmul.f32 %v2078_v15, %v1982_v4 }
 0x55b   :  { %v2090_v2 = vadd.f32 1.0, %v5419_v57  ;;  %v2160_v29 = vmul.f32 %v7057_v63, %v2120_v41  ;;  %v1993_v59 = vmul.f32 0.5, %v7142_v38  ;;  %v1997_v11 = vmul.f32 0.5, %v7172_v42 }
 0x55c   :  { %v2123_v50 = vmul.f32 %v2091_v61, %v1995_v12  ;;  %v2205_v45 = vsel %vm2168_vm2, %v2148_v55, 0.0  ;;  %v1996_v44 = vmul.f32 0.5, %v7176_v5  ;;  %v2238_v13 = vsel %vm2168_vm2, %v2159_v24, 0.0 }
 0x55d   :  { %v5421_v36 = vpop.eup %5420  ;;  %v2122_v58 = vmul.f32 %v2090_v2, %v1994_v52  ;;  %2230 = vadd.xlane.f32.xlu1 %v2229_v34  ;;  %v2241_v49 = vsel %vm2168_vm2, %v2160_v29, 0.0  ;;  %v2121_v48 = vmul.f32 %v2089_v22, %v1993_v59  ;;  %v2158_v18 = vmul.f32 %v7057_v63, %v2118_v17 }
 0x55e   :  { %v5423_v27 = vpop.eup %5422  ;;  %v2093_v32 = vadd.f32 1.0, %v5421_v36  ;;  %v2163_v23 = vmul.f32 %v7057_v63, %v2123_v50  ;;  %2206 = vadd.xlane.f32.xlu0 %v2205_v45  ;;  %v2111_v6 = vmul.f32 %v2079_v3, %v1983_v35  ;;  %v2208_v28 = vsel %vm2168_vm2, %v2149_v33, 0.0 }
 0x55f   :  { %v2092_v51 = vadd.f32 1.0, %v5423_v27  ;;  %v2162_v14 = vmul.f32 %v7057_v63, %v2122_v58  ;;  %v1999_v5 = vmul.f32 0.5, %v7183_v60  ;;  %v2150_v10 = vmul.f32 %v7057_v63, %v2110_v19 }
 0x560   :  { %v2125_v38 = vmul.f32 %v2093_v32, %v1997_v11  ;;  %v2250_v0 = vsel %vm2168_vm2, %v2163_v23, 0.0  ;;  %v5425_v42 = vpop.eup %5424  ;;  %v1998_v53 = vmul.f32 0.5, %v7192_v20  ;;  %v2161_v9 = vmul.f32 %v7057_v63, %v2121_v48 }
 0x561   :  { %v2124_v40 = vmul.f32 %v2092_v51, %v1996_v44  ;;  %2239 = vadd.xlane.f32.xlu1 %v2238_v13  ;;  %v2247_v7 = vsel %vm2168_vm2, %v2162_v14, 0.0  ;;  %v2095_v25 = vadd.f32 1.0, %v5425_v42  ;;  %v2235_v8 = vsel %vm2168_vm2, %v2158_v18, 0.0 }
 0x562   :  { %v2165_v37 = vmul.f32 %v7057_v63, %v2125_v38  ;;  %v5427_v39 = vpop.eup %5426  ;;  %2209 = vadd.xlane.f32.xlu0 %v2208_v28  ;;  %v2211_v47 = vsel %vm2168_vm2, %v2150_v10, 0.0  ;;  %v2151_v16 = vmul.f32 %v7057_v63, %v2111_v6  ;;  %v2244_v21 = vsel %vm2168_vm2, %v2161_v9, 0.0 }
 0x563   :  { %v2164_v35 = vmul.f32 %v7057_v63, %v2124_v40  ;;  %v2127_v3 = vmul.f32 %v2095_v25, %v1999_v5  ;;  %v2094_v4 = vadd.f32 1.0, %v5427_v39  ;;  %v7261_v19 = vand.u32 127, %v1101_v30 }
 0x564   :  { %v2256_v56 = vsel %vm2168_vm2, %v2165_v37, 0.0  ;;  %v2214_v15 = vsel %vm2168_vm2, %v2151_v16, 0.0 }
 0x565   :  { %2236 = vadd.xlane.f32.xlu1 %v2235_v8  ;;  %v2253_v60 = vsel %vm2168_vm2, %v2164_v35, 0.0  ;;  %v2126_v54 = vmul.f32 %v2094_v4, %v1998_v53  ;;  %v2167_v20 = vmul.f32 %v7057_v63, %v2127_v3  ;;  %8816 = vst [vmem:[#allocation15_spill] sm:$0xff] %v7261_v19  ;;  %v2336_v27 = vadd.s32 4294967288, %v7261_v19 }
 0x566   :  { %2212 = vadd.xlane.f32.xlu0 %v2211_v47  ;;  %v2343_v32 = vadd.s32 4294967280, %v7261_v19  ;;  %v7274_v23 = vsub.s32 %v7261_v19, %v6294_v26  ;;  %v2350_v30 = vadd.s32 4294967272, %v7261_v19  ;;  %v2364_v44 = vadd.s32 4294967256, %v7261_v19 }
 0x567   :  { %v2166_v46 = vmul.f32 %v7057_v63, %v2126_v54  ;;  %v2262_v1 = vsel %vm2168_vm2, %v2167_v20, 0.0  ;;  %v2357_v51 = vadd.s32 4294967264, %v7261_v19  ;;  %v7283_v14 = vsub.s32 %v2336_v27, %v6294_v26 }
 0x568   :  { %v7291_v18 = vsub.s32 %v2343_v32, %v6294_v26  ;;  %v7305_v28 = vsub.s32 %v2350_v30, %v6294_v26  ;;  %v7310_v5 = vsub.s32 %v2364_v44, %v6294_v26  ;;  %v2378_v10 = vadd.s32 4294967240, %v7261_v19 }
 0x569   :  { %2245 = vadd.xlane.f32.xlu1 %v2244_v21  ;;  %v2259_v31 = vsel %vm2168_vm2, %v2166_v46, 0.0  ;;  %8817 = vst [vmem:[#allocation16_spill] sm:$0xff] %v7283_v14  ;;  %v7313_v25 = vsub.s32 %v2357_v51, %v6294_v26  ;;  %v2371_v39 = vadd.s32 4294967248, %v7261_v19  ;;  %v2392_v20 = vadd.s32 4294967224, %v7261_v19 }
 0x56a   :  { %2215 = vadd.xlane.f32.xlu0 %v2214_v15  ;;  %8818 = vst [vmem:[#allocation17_spill] sm:$0xff] %v7291_v18  ;;  %8819 = vst [vmem:[#allocation18_spill] sm:$0xff] %v7310_v5  ;;  %v7341_v16 = vsub.s32 %v2378_v10, %v6294_v26  ;;  %v2385_v15 = vadd.s32 4294967232, %v7261_v19  ;;  %v2406_v32 = vadd.s32 4294967208, %v7261_v19  ;;  %vm2439_vm2 = vcmask 1048512  }
 0x56b   :  { %v7375_v27 = vsub.s32 %v2392_v20, %v6294_v26  ;;  %v2420_v20 = vadd.s32 4294967192, %v7261_v19 }
 0x56c   :  { %8820 = vst [vmem:[#allocation19_spill] sm:$0xff] %v7341_v16 }
 0x56d   :  { %2242 = vadd.xlane.f32.xlu1 %v2241_v49  ;;  %v7265_v49 = vstv %s4778_s14  ;;  %8822 = vst [vmem:[#allocation21_spill] sm:$0xff] %v7375_v27 }
 0x571   :  { %2251 = vadd.xlane.f32.xlu1 %v2250_v0 }
 0x575   :  { %2248 = vadd.xlane.f32.xlu1 %v2247_v7 }
 0x579   :  { %2257 = vadd.xlane.f32.xlu1 %v2256_v56 }
 0x57d   :  { %2254 = vadd.xlane.f32.xlu1 %v2253_v60 }
 0x581   :  { %2260 = vadd.xlane.f32.xlu1 %v2259_v31 }
 0x585   :  { %2263 = vadd.xlane.f32.xlu1 %v2262_v1  ;;  %v7347_v1 = vsub.s32 %v2371_v39, %v6294_v26 }
 0x587   :  { %8821 = vst [vmem:[#allocation20_spill] sm:$0xff] %v7347_v1 }
 0x5b5   :  { %v2174_v55 = vpop.xlane.xlu1 %2173 }
 0x5b6   :  { %v7302_v40 = vadd.f32 %v7265_v49, %v2174_v55 }
 0x5b7   :  { %v2171_v41 = vpop.xlane.xlu0 %2170 }
 0x5b8   :  { %v7286_v38 = vadd.f32 %v7265_v49, %v2171_v41  ;;  %v2340_v54 = vrot.slane %v7302_v40, %v7283_v14 }
 0x5ba   :  { %v2335_v37 = vrot.slane %v7286_v38, %v7274_v23 }
 0x5bb   :  { %v2180_v33 = vpop.xlane.xlu0 %2179 }
 0x5bc   :  { %v7338_v47 = vadd.f32 %v7265_v49, %v2180_v33  ;;  %v2342_v46 = vsel %vm2341_vm3, %v2340_v54, %v2335_v37  ;;  %v2413_v54 = vadd.s32 4294967200, %v7261_v19 }
 0x5bf   :  { %v2177_v57 = vpop.xlane.xlu0 %2176 }
 0x5c0   :  { %v7294_v0 = vadd.f32 %v7265_v49, %v2177_v57 }
 0x5c2   :  { %v2347_v35 = vrot.slane %v7294_v0, %v7291_v18 }
 0x5c3   :  { %v7246_v12 = vpop.xlane.xlu0 %2185 }
 0x5c4   :  { %v2349_v41 = vsel %vm2348_vm4, %v2347_v35, %v2342_v46 }
 0x5c7   :  { %v2183_v63 = vpop.xlane.xlu0 %2182 }
 0x5c8   :  { %v7326_v3 = vadd.f32 %v7265_v49, %v2183_v63 }
 0x5ca   :  { %v2361_v33 = vrot.slane %v7326_v3, %v7313_v25 }
 0x5cb   :  { %v7248_v61 = vpop.xlane.xlu0 %2191 }
 0x5cf   :  { %v7250_v62 = vpop.xlane.xlu0 %2188 }
 0x5d3   :  { %v7252_v22 = vpop.xlane.xlu0 %2197 }
 0x5d6   :  { %v2222_v52 = vpop.xlane.xlu1 %2221 }
 0x5d7   :  { %v7254_v2 = vpop.xlane.xlu0 %2194  ;;  %v7278_v48 = vadd.f32 %v7265_v49, %v2222_v52  ;;  %v2354_v52 = vrot.slane %v7338_v47, %v7305_v28 }
 0x5d8   :  { %v7394_v37 = vadd.f32 %v7265_v49, %v7254_v2 }
 0x5d9   :  { %v2448_v7 = vrot.slane %v7278_v48, %v7283_v14  ;;  %v2356_v30 = vsel %vm2355_vm5, %v2354_v52, %v2349_v41 }
 0x5da   :  { %v2228_v29 = vpop.xlane.xlu1 %2227  ;;  %v2363_v44 = vsel %vm2362_vm6, %v2361_v33, %v2356_v30  ;;  %v7437_v30 = vadd.f32 %v7265_v49, %v7252_v22 }
 0x5db   :  { %v7256_v17 = vpop.xlane.xlu0 %2203  ;;  %v7320_v53 = vadd.f32 %v7265_v49, %v2228_v29  ;;  %v7364_v29 = vadd.f32 %v7265_v49, %v7250_v62  ;;  %v7380_v62 = vsub.s32 %v2385_v15, %v6294_v26 }
 0x5dd   :  { %v2458_v31 = vrot.slane %v7320_v53, %v7305_v28  ;;  %8823 = vst [vmem:[#allocation22_spill] sm:$0xff] %v7380_v62  ;;  %v2375_v10 = vrot.slane %v7364_v29, %v7347_v1 }
 0x5de   :  { %v2225_v50 = vpop.xlane.xlu1 %2224 }
 0x5df   :  { %v7258_v24 = vpop.xlane.xlu0 %2200  ;;  %v7297_v42 = vadd.f32 %v7265_v49, %v2225_v50 }
 0x5e1   :  { %v2453_v4 = vrot.slane %v7297_v42, %v7291_v18 }
 0x5e2   :  { %v2234_v34 = vpop.xlane.xlu1 %2233 }
 0x5e3   :  { %v2219_v59 = vpop.xlane.xlu0 %2218  ;;  %v7367_v50 = vadd.f32 %v7265_v49, %v2234_v34  ;;  %v2399_v34 = vadd.s32 4294967216, %v7261_v19 }
 0x5e4   :  { %v7269_v11 = vadd.f32 %v7265_v49, %v2219_v59  ;;  %v7372_v59 = vadd.f32 %v7265_v49, %v7246_v12 }
 0x5e5   :  { %v2468_v39 = vrot.slane %v7367_v50, %v7310_v5  ;;  %v7412_v2 = vsub.s32 %v2399_v34, %v6294_v26  ;;  %v7441_v34 = vadd.f32 %v7265_v49, %v7258_v24 }
 0x5e6   :  { %v2231_v36 = vpop.xlane.xlu1 %2230  ;;  %v2444_v13 = vrot.slane %v7269_v11, %v7274_v23  ;;  %v2368_v35 = vrot.slane %v7372_v59, %v7310_v5 }
 0x5e7   :  { %v7331_v8 = vadd.f32 %v7265_v49, %v2231_v36  ;;  %v7333_v56 = vpop.xlane.xlu0 %2206  ;;  %8825 = vst [vmem:[#allocation24_spill] sm:$0xff] %v7412_v2 }
 0x5e8   :  { %v2449_v9 = vsel %vm2341_vm3, %v2448_v7, %v2444_v13 }
 0x5e9   :  { %v2454_v21 = vsel %vm2348_vm4, %v2453_v4, %v2449_v9  ;;  %v2463_v57 = vrot.slane %v7331_v8, %v7313_v25  ;;  %v7406_v4 = vadd.f32 %v7265_v49, %v7248_v61 }
 0x5ea   :  { %v7263_v58 = vpop.xlane.xlu1 %2239  ;;  %v2459_v36 = vsel %vm2355_vm5, %v2458_v31, %v2454_v21  ;;  %v2370_v21 = vsel %vm2369_vm7, %v2368_v35, %v2363_v44  ;;  %v2427_v44 = vadd.s32 4294967184, %v7261_v19 }
 0x5eb   :  { %v2464_v12 = vsel %vm2362_vm6, %v2463_v57, %v2459_v36  ;;  %v7400_v9 = vadd.f32 %v7265_v49, %v7263_v58  ;;  %v2377_v33 = vsel %vm8794_vm8, %v2375_v10, %v2370_v21  ;;  %v2389_v57 = vrot.slane %v7394_v37, %v7380_v62 }
 0x5ec   :  { %v2469_v58 = vsel %vm2369_vm7, %v2468_v39, %v2464_v12  ;;  %v7445_v12 = vsub.s32 %v2413_v54, %v6294_v26  ;;  %v7451_v10 = vsub.s32 %v2420_v20, %v6294_v26  ;;  %v2396_v20 = vrot.slane %v7437_v30, %v7375_v27 }
 0x5ed   :  { %v2478_v52 = vrot.slane %v7400_v9, %v7341_v16 }
 0x5ee   :  { %v2237_v45 = vpop.xlane.xlu1 %2236  ;;  %8826 = vst [vmem:[#allocation25_spill] sm:$0xff] %v7445_v12  ;;  %8827 = vst [vmem:[#allocation26_spill] sm:$0xff] %v7451_v10 }
 0x5ef   :  { %v7358_v63 = vadd.f32 %v7265_v49, %v2237_v45  ;;  %v2210_v45 = vpop.xlane.xlu0 %2209 }
 0x5f1   :  { %v2473_v51 = vrot.slane %v7358_v63, %v7347_v1 }
 0x5f2   :  { %v7299_v6 = vpop.xlane.xlu1 %2245 }
 0x5f3   :  { %v2474_v46 = vsel %vm8794_vm8, %v2473_v51, %v2469_v58  ;;  %v2213_v15 = vpop.xlane.xlu0 %2212  ;;  %v7431_v36 = vadd.f32 %v7265_v49, %v7299_v6  ;;  %v2434_v6 = vadd.s32 4294967176, %v7261_v19 }
 0x5f4   :  { %v2479_v51 = vsel %vm8741_vm9, %v2478_v52, %v2474_v46  ;;  %v2403_v46 = vrot.slane %v7441_v34, %v7412_v2  ;;  %v7481_v52 = vadd.f32 %v7265_v49, %v2210_v45 }
 0x5f5   :  { %v2488_v54 = vrot.slane %v7431_v36, %v7375_v27 }
 0x5f6   :  { %v2243_v60 = vpop.xlane.xlu1 %2242 }
 0x5f7   :  { %v7388_v13 = vadd.f32 %v7265_v49, %v2243_v60  ;;  %v7409_v60 = vsub.s32 %v2406_v32, %v6294_v26  ;;  %v2382_v32 = vrot.slane %v7406_v4, %v7341_v16 }
 0x5f9   :  { %8824 = vst [vmem:[#allocation23_spill] sm:$0xff] %v7409_v60  ;;  %v2483_v61 = vrot.slane %v7388_v13, %v7380_v62 }
 0x5fa   :  { %v2252_v55 = vpop.xlane.xlu1 %2251 }
 0x5fb   :  { %v2484_v22 = vsel %vm8740_vm10, %v2483_v61, %v2479_v51  ;;  %v7460_v58 = vadd.f32 %v7265_v49, %v2252_v55  ;;  %v7471_v61 = vadd.f32 %v7265_v49, %v7333_v56  ;;  %v7478_v55 = vadd.f32 %v7265_v49, %v7256_v17 }
 0x5fc   :  { %v2489_v51 = vsel %vm2397_vm11, %v2488_v54, %v2484_v22  ;;  %v7489_v56 = vadd.f32 %v7265_v49, %v2213_v15  ;;  %v2424_v54 = vrot.slane %v7481_v52, %v7451_v10 }
 0x5fd   :  { %v2498_v45 = vrot.slane %v7460_v58, %v7409_v60 }
 0x5fe   :  { %v2249_v7 = vpop.xlane.xlu1 %2248 }
 0x5ff   :  { %v7422_v31 = vadd.f32 %v7265_v49, %v2249_v7  ;;  %v2384_v7 = vsel %vm8741_vm9, %v2382_v32, %v2377_v33  ;;  %v7474_v33 = vsub.s32 %v2427_v44, %v6294_v26  ;;  %v7484_v32 = vsub.s32 %v2434_v6, %v6294_v26 }
 0x600   :  { %v2391_v35 = vsel %vm8740_vm10, %v2389_v57, %v2384_v7  ;;  %v2216_v57 = vpop.xlane.xlu0 %2215 }
 0x601   :  { %v2493_v24 = vrot.slane %v7422_v31, %v7412_v2  ;;  %8828 = vst [vmem:[#allocation27_spill] sm:$0xff] %v7474_v33  ;;  %8829 = vst [vmem:[#allocation28_spill] sm:$0xff] %v7484_v32  ;;  %v2398_v7 = vsel %vm2397_vm11, %v2396_v20, %v2391_v35  ;;  %v7495_v19 = vadd.f32 %v7265_v49, %v2216_v57 }
 0x602   :  { %v2258_v41 = vpop.xlane.xlu1 %2257  ;;  %v2405_v15 = vsel %vm2404_vm12, %v2403_v46, %v2398_v7  ;;  %v2410_v35 = vrot.slane %v7478_v55, %v7409_v60  ;;  %v2431_v20 = vrot.slane %v7489_v56, %v7474_v33 }
 0x603   :  { %v2494_v44 = vsel %vm2404_vm12, %v2493_v24, %v2489_v51  ;;  %v7500_v6 = vadd.f32 %v7265_v49, %v2258_v41  ;;  %v2417_v24 = vrot.slane %v7471_v61, %v7445_v12 }
 0x604   :  { %v2499_v41 = vsel %vm8721_vm13, %v2498_v45, %v2494_v44  ;;  %v2412_v7 = vsel %vm8721_vm13, %v2410_v35, %v2405_v15  ;;  %vm2520_vm13 = vcmask 1041409  }
 0x605   :  { %v2419_v45 = vsel %vm2418_vm14, %v2417_v24, %v2412_v7 }
 0x606   :  { %v2255_v39 = vpop.xlane.xlu1 %2254 }
 0x607   :  { %v7463_v21 = vadd.f32 %v7265_v49, %v2255_v39 }
 0x609   :  { %v2503_v39 = vrot.slane %v7463_v21, %v7445_v12  ;;  %v2508_v12 = vrot.slane %v7500_v6, %v7451_v10 }
 0x60a   :  { %v2261_v17 = vpop.xlane.xlu1 %2260 }
 0x60b   :  { %v7503_v22 = vadd.f32 %v7265_v49, %v2261_v17  ;;  %v2504_v57 = vsel %vm2418_vm14, %v2503_v39, %v2499_v41  ;;  %v2438_v17 = vrot.slane %v7495_v19, %v7484_v32  ;;  %v2426_v39 = vsel %vm2425_vm15, %v2424_v54, %v2419_v45 }
 0x60c   :  { %v2433_v15 = vsel %vm2432_vm1, %v2431_v20, %v2426_v39  ;;  %v5658_v54 = vmov 0   ;;  %v7549_v45 = vsub.s32 1, %v6294_v26 }
 0x60d   :  { %v2513_v46 = vrot.slane %v7503_v22, %v7474_v33  ;;  %v2509_v33 = vsel %vm2425_vm15, %v2508_v12, %v2504_v57  ;;  %v2440_v10 = vsel %vm2439_vm2, %v2438_v17, %v2433_v15  ;;  %5103 = vset.pattern.permute.xlu0 %v5658_v54  ;;  %5102 = vset.pattern.permute.xlu1 %v5658_v54 }
 0x60e   :  { %v2264_v51 = vpop.xlane.xlu1 %2263  ;;  %8830 = vst [vmem:[#allocation29_spill] sm:$0xff] %v7549_v45 }
 0x60f   :  { %v7524_v44 = vadd.f32 %v7265_v49, %v2264_v51  ;;  %v2514_v35 = vsel %vm2432_vm1, %v2513_v46, %v2509_v33 }
 0x611   :  { %v2518_v41 = vrot.slane %v7524_v44, %v7484_v32 }
 0x613   :  { %v2519_v49 = vsel %vm2439_vm2, %v2518_v41, %v2514_v35 }
 0x614   :  { %v2521_v51 = vsel %vm2520_vm13, %v2519_v49, %v2440_v10 }
 0x615   :  { %v2523_v24 = vsel %vm8761_vm0, %v2521_v51, -inf }
 0x616   :  { %2524 = vmax.xlane.f32.xlu0 %v2523_v24 }
 0x69f   :  { %v2525_v7 = vpop.xlane.xlu0 %2524 }
 0x6a0   :  { %v7538_v12 = vrot.slane %v2525_v7, %v6324_v43 }
 0x6a2   :  { %v2538_v20 = vsub.f32 %v7302_v40, %v7538_v12  ;;  %v2537_v33 = vsub.f32 %v7286_v38, %v7538_v12  ;;  %v2547_v57 = vsub.f32 %v7441_v34, %v7538_v12  ;;  %v2539_v10 = vsub.f32 %v7294_v0, %v7538_v12 }
 0x6a3   :  { %v2549_v41 = vsub.f32 %v7471_v61, %v7538_v12  ;;  %v2540_v38 = vsub.f32 %v7338_v47, %v7538_v12  ;;  %v7556_v34 = vrot.slane %v2525_v7, %v7549_v45  ;;  %v2551_v15 = vsub.f32 %v7489_v56, %v7538_v12 }
 0x6a4   :  { %v2571_v46 = vmul.f32 1.442695, %v2538_v20  ;;  %v2569_v17 = vmul.f32 1.442695, %v2537_v33  ;;  %v2589_v39 = vmul.f32 1.442695, %v2547_v57  ;;  %v2541_v35 = vsub.f32 %v7326_v3, %v7538_v12 }
 0x6a5   :  { %v2573_v40 = vmul.f32 1.442695, %v2539_v10  ;;  %v2593_v0 = vmul.f32 1.442695, %v2549_v41  ;;  %v2575_v26 = vmul.f32 1.442695, %v2540_v38  ;;  %v2553_v49 = vsub.f32 %v7269_v11, %v7556_v34 }
 0x6a6   :  { %5428 = vpow2.f32 %v2571_v46  ;;  %v2597_v61 = vmul.f32 1.442695, %v2551_v15  ;;  %v2577_v47 = vmul.f32 1.442695, %v2541_v35  ;;  %v2542_v51 = vsub.f32 %v7372_v59, %v7538_v12 }
 0x6a7   :  { %5430 = vpow2.f32 %v2569_v17  ;;  %v2601_v24 = vmul.f32 1.442695, %v2553_v49  ;;  %v2555_v56 = vsub.f32 %v7297_v42, %v7556_v34  ;;  %v2543_v3 = vsub.f32 %v7364_v29, %v7538_v12 }
 0x6a8   :  { %5432 = vpow2.f32 %v2589_v39  ;;  %v2579_v7 = vmul.f32 1.442695, %v2542_v51  ;;  %v2557_v59 = vsub.f32 %v7331_v8, %v7556_v34  ;;  %v2544_v57 = vsub.f32 %v7406_v4, %v7538_v12 }
 0x6a9   :  { %5434 = vpow2.f32 %v2573_v40  ;;  %v2605_v11 = vmul.f32 1.442695, %v2555_v56  ;;  %v2581_v42 = vmul.f32 1.442695, %v2543_v3  ;;  %v2559_v46 = vsub.f32 %v7358_v63, %v7556_v34 }
 0x6aa   :  { %5436 = vpow2.f32 %v2593_v0  ;;  %v2609_v29 = vmul.f32 1.442695, %v2557_v59  ;;  %v2583_v8 = vmul.f32 1.442695, %v2544_v57  ;;  %v2545_v39 = vsub.f32 %v7394_v37, %v7538_v12 }
 0x6ab   :  { %5438 = vpow2.f32 %v2575_v26  ;;  %v2613_v4 = vmul.f32 1.442695, %v2559_v46  ;;  %v2561_v40 = vsub.f32 %v7388_v13, %v7556_v34  ;;  %v2546_v0 = vsub.f32 %v7437_v30, %v7538_v12 }
 0x6ac   :  { %5440 = vpow2.f32 %v2597_v61  ;;  %v2585_v63 = vmul.f32 1.442695, %v2545_v39  ;;  %v2563_v26 = vsub.f32 %v7422_v31, %v7556_v34  ;;  %v2548_v61 = vsub.f32 %v7478_v55, %v7538_v12 }
 0x6ad   :  { %5442 = vpow2.f32 %v2577_v47  ;;  %v2617_v37 = vmul.f32 1.442695, %v2561_v40  ;;  %v2587_v13 = vmul.f32 1.442695, %v2546_v0  ;;  %v2565_v47 = vsub.f32 %v7463_v21, %v7556_v34 }
 0x6ae   :  { %5444 = vpow2.f32 %v2601_v24  ;;  %v2621_v30 = vmul.f32 1.442695, %v2563_v26  ;;  %v2591_v31 = vmul.f32 1.442695, %v2548_v61  ;;  %v2550_v24 = vsub.f32 %v7481_v52, %v7538_v12 }
 0x6af   :  { %5446 = vpow2.f32 %v2579_v7  ;;  %v2625_v55 = vmul.f32 1.442695, %v2565_v47  ;;  %v2567_v7 = vsub.f32 %v7503_v22, %v7556_v34  ;;  %v2554_v22 = vsub.f32 %v7278_v48, %v7556_v34 }
 0x6b0   :  { %5448 = vpow2.f32 %v2605_v11  ;;  %v2595_v21 = vmul.f32 1.442695, %v2550_v24  ;;  %v2552_v11 = vsub.f32 %v7495_v19, %v7538_v12  ;;  %v2556_v46 = vsub.f32 %v7320_v53, %v7556_v34 }
 0x6b1   :  { %5450 = vpow2.f32 %v2581_v42  ;;  %v2629_v52 = vmul.f32 1.442695, %v2567_v7  ;;  %v2603_v12 = vmul.f32 1.442695, %v2554_v22  ;;  %v2560_v0 = vsub.f32 %v7400_v9, %v7556_v34 }
 0x6b2   :  { %5452 = vpow2.f32 %v2609_v29  ;;  %v2599_v57 = vmul.f32 1.442695, %v2552_v11  ;;  %v2607_v39 = vmul.f32 1.442695, %v2556_v46  ;;  %v2568_v7 = vsub.f32 %v7524_v44, %v7556_v34 }
 0x6b3   :  { %v7568_v54 = vpop.eup %5428  ;;  %5454 = vpow2.f32 %v2583_v8  ;;  %v2615_v26 = vmul.f32 1.442695, %v2560_v0 }
 0x6b4   :  { %v7572_v20 = vpop.eup %5430  ;;  %2669 = vperm.xlu0 %5103, %v7568_v54   ;;  %5456 = vpow2.f32 %v2613_v4  ;;  %v2558_v4 = vsub.f32 %v7367_v50, %v7556_v34 }
 0x6b5   :  { %2666 = vperm.xlu1 %5102, %v7572_v20   ;;  %v7578_v33 = vpop.eup %5432  ;;  %5458 = vpow2.f32 %v2585_v63 }
 0x6b6   :  { %8831 = vst [vmem:[#allocation30_spill] sm:$0xff] %v7578_v33  ;;  %v7582_v10 = vpop.eup %5434  ;;  %5460 = vpow2.f32 %v2617_v37  ;;  %v2611_v63 = vmul.f32 1.442695, %v2558_v4 }
 0x6b7   :  { %v7588_v17 = vpop.eup %5436  ;;  %5462 = vpow2.f32 %v2587_v13  ;;  %v2562_v13 = vsub.f32 %v7431_v36, %v7556_v34  ;;  %v2566_v36 = vsub.f32 %v7500_v6, %v7556_v34 }
 0x6b8   :  { %2696 = vperm.xlu0 %5103, %v7578_v33   ;;  %8832 = vst [vmem:[#allocation31_spill] sm:$0xff] %v7588_v17  ;;  %v7592_v41 = vpop.eup %5438  ;;  %5464 = vpow2.f32 %v2621_v30  ;;  %v2564_v30 = vsub.f32 %v7460_v58, %v7556_v34  ;;  %v2631_v58 = vmul.f32 1.442695, %v2568_v7 }
 0x6b9   :  { %2672 = vperm.xlu1 %5102, %v7582_v10   ;;  %v7598_v38 = vpop.eup %5440  ;;  %5466 = vpow2.f32 %v2591_v31  ;;  %v2619_v9 = vmul.f32 1.442695, %v2562_v13 }
 0x6ba   :  { %v7602_v15 = vpop.eup %5442  ;;  %5468 = vpow2.f32 %v2625_v55  ;;  %v2623_v31 = vmul.f32 1.442695, %v2564_v30  ;;  %v2627_v55 = vmul.f32 1.442695, %v2566_v36 }
 0x6bb   :  { %v7608_v35 = vpop.eup %5444  ;;  %5470 = vpow2.f32 %v2595_v21 }
 0x6bc   :  { %2702 = vperm.xlu0 %5103, %v7588_v17   ;;  %v7612_v49 = vpop.eup %5446  ;;  %5472 = vpow2.f32 %v2629_v52 }
 0x6bd   :  { %2675 = vperm.xlu1 %5102, %v7592_v41   ;;  %v7618_v51 = vpop.eup %5448  ;;  %5474 = vpow2.f32 %v2599_v57 }
 0x6be   :  { %v7622_v56 = vpop.eup %5450  ;;  %5476 = vpow2.f32 %v2603_v12 }
 0x6bf   :  { %v7628_v3 = vpop.eup %5452  ;;  %5478 = vpow2.f32 %v2607_v39 }
 0x6c0   :  { %2708 = vperm.xlu0 %5103, %v7598_v38   ;;  %v7632_v59 = vpop.eup %5454  ;;  %5480 = vpow2.f32 %v2611_v63 }
 0x6c1   :  { %2678 = vperm.xlu1 %5102, %v7602_v15   ;;  %v7636_v42 = vpop.eup %5456  ;;  %5482 = vpow2.f32 %v2615_v26 }
 0x6c2   :  { %v7640_v29 = vpop.eup %5458  ;;  %5484 = vpow2.f32 %v2619_v9 }
 0x6c3   :  { %v7644_v19 = vpop.eup %5460  ;;  %5486 = vpow2.f32 %v2623_v31 }
 0x6c4   :  { %2714 = vperm.xlu0 %5103, %v7608_v35   ;;  %v7648_v8 = vpop.eup %5462  ;;  %5488 = vpow2.f32 %v2627_v55 }
 0x6c5   :  { %2681 = vperm.xlu1 %5102, %v7612_v49   ;;  %8833 = vst [vmem:[#allocation32_spill] sm:$0xff] %v7648_v8  ;;  %v7652_v48 = vpop.eup %5464  ;;  %5490 = vpow2.f32 %v2631_v58 }
 0x6c6   :  { %v7656_v40 = vpop.eup %5466 }
 0x6c7   :  { %8834 = vst [vmem:[#allocation33_spill] sm:$0xff] %v7656_v40  ;;  %v7660_v53 = vpop.eup %5468 }
 0x6c8   :  { %2720 = vperm.xlu0 %5103, %v7618_v51   ;;  %8835 = vst [vmem:[#allocation34_spill] sm:$0xff] %v7660_v53  ;;  %v7664_v37 = vpop.eup %5470 }
 0x6c9   :  { %2684 = vperm.xlu1 %5102, %v7622_v56   ;;  %8836 = vst [vmem:[#allocation35_spill] sm:$0xff] %v7664_v37  ;;  %v7668_v50 = vpop.eup %5472 }
 0x6ca   :  { %8837 = vst [vmem:[#allocation36_spill] sm:$0xff] %v7668_v50  ;;  %v7672_v61 = vpop.eup %5474 }
 0x6cb   :  { %8838 = vst [vmem:[#allocation37_spill] sm:$0xff] %v7672_v61  ;;  %v7678_v47 = vpop.eup %5476 }
 0x6cc   :  { %2726 = vperm.xlu0 %5103, %v7628_v3   ;;  %8839 = vst [vmem:[#allocation38_spill] sm:$0xff] %v7678_v47  ;;  %v7683_v24 = vpop.eup %5478 }
 0x6cd   :  { %2687 = vperm.xlu1 %5102, %v7632_v59   ;;  %8840 = vst [vmem:[#allocation39_spill] sm:$0xff] %v7683_v24  ;;  %v7688_v21 = vpop.eup %5480 }
 0x6ce   :  { %8841 = vst [vmem:[#allocation40_spill] sm:$0xff] %v7688_v21  ;;  %v7691_v11 = vpop.eup %5482 }
 0x6cf   :  { %8842 = vst [vmem:[#allocation41_spill] sm:$0xff] %v7691_v11  ;;  %v7694_v6 = vpop.eup %5484 }
 0x6d0   :  { %2732 = vperm.xlu0 %5103, %v7636_v42   ;;  %8843 = vst [vmem:[#allocation42_spill] sm:$0xff] %v7694_v6  ;;  %v7697_v52 = vpop.eup %5486 }
 0x6d1   :  { %2690 = vperm.xlu1 %5102, %v7640_v29   ;;  %8844 = vst [vmem:[#allocation43_spill] sm:$0xff] %v7697_v52  ;;  %v7700_v44 = vpop.eup %5488 }
 0x6d2   :  { %8845 = vst [vmem:[#allocation44_spill] sm:$0xff] %v7700_v44  ;;  %v7703_v34 = vpop.eup %5490 }
 0x6d3   :  { %8846 = vst [vmem:[#allocation45_spill] sm:$0xff] %v7703_v34 }
 0x6d4   :  { %2738 = vperm.xlu0 %5103, %v7644_v19  }
 0x6d5   :  { %2693 = vperm.xlu1 %5102, %v7648_v8  }
 0x6d8   :  { %2744 = vperm.xlu0 %5103, %v7652_v48  }
 0x6d9   :  { %2699 = vperm.xlu1 %5102, %v7656_v40  }
 0x6dc   :  { %2750 = vperm.xlu0 %5103, %v7660_v53  }
 0x6dd   :  { %2705 = vperm.xlu1 %5102, %v7664_v37  }
 0x6e0   :  { %2756 = vperm.xlu0 %5103, %v7668_v50  }
 0x6e1   :  { %2711 = vperm.xlu1 %5102, %v7672_v61  }
 0x6e5   :  { %2717 = vperm.xlu1 %5102, %v7678_v47  }
 0x6e9   :  { %2723 = vperm.xlu1 %5102, %v7683_v24  }
 0x6ed   :  { %2729 = vperm.xlu1 %5102, %v7688_v21  }
 0x6f1   :  { %2735 = vperm.xlu1 %5102, %v7691_v11  }
 0x6f5   :  { %2741 = vperm.xlu1 %5102, %v7694_v6  }
 0x6f9   :  { %2747 = vperm.xlu1 %5102, %v7697_v52  }
 0x6fd   :  { %2753 = vperm.xlu1 %5102, %v7700_v44  }
 0x701   :  { %2759 = vperm.xlu1 %5102, %v7703_v34  }
 0x72f   :  { %v2670_v12 = vpop.permute.xlu0 %2669 }
 0x730   :  { %v2667_v57 = vpop.permute.xlu1 %2666  ;;  %v2768_v40 = vrot.slane %v2670_v12, %v7283_v14 }
 0x731   :  { %v2764_v33 = vrot.slane %v2667_v57, %v7274_v23 }
 0x733   :  { %v7706_v4 = vpop.permute.xlu0 %2696 }
 0x734   :  { %v2673_v22 = vpop.permute.xlu1 %2672 }
 0x737   :  { %v7708_v0 = vpop.permute.xlu0 %2702 }
 0x738   :  { %v2676_v46 = vpop.permute.xlu1 %2675 }
 0x73b   :  { %v7710_v9 = vpop.permute.xlu0 %2708 }
 0x73c   :  { %v2679_v39 = vpop.permute.xlu1 %2678 }
 0x73f   :  { %v2715_v31 = vpop.permute.xlu0 %2714 }
 0x740   :  { %v2682_v63 = vpop.permute.xlu1 %2681  ;;  %v2843_v6 = vrot.slane %v2715_v31, %v7274_v23  ;;  %v2773_v31 = vrot.slane %v2673_v22, %v7291_v18 }
 0x741   :  { %v2788_v57 = vrot.slane %v2682_v63, %v7310_v5 }
 0x743   :  { %v2721_v7 = vpop.permute.xlu0 %2720 }
 0x744   :  { %v2685_v26 = vpop.permute.xlu1 %2684  ;;  %v2852_v47 = vrot.slane %v2721_v7, %v7291_v18 }
 0x747   :  { %v2727_v34 = vpop.permute.xlu0 %2726 }
 0x748   :  { %v2688_v13 = vpop.permute.xlu1 %2687 }
 0x74b   :  { %v2733_v11 = vpop.permute.xlu0 %2732 }
 0x74c   :  { %v2691_v30 = vpop.permute.xlu1 %2690 }
 0x74f   :  { %v2739_v50 = vpop.permute.xlu0 %2738 }
 0x750   :  { %v2694_v36 = vpop.permute.xlu1 %2693 }
 0x754   :  { %v2700_v55 = vpop.permute.xlu1 %2699 }
 0x758   :  { %v7712_v58 = vpop.permute.xlu1 %2705 }
 0x75c   :  { %v7714_v44 = vpop.permute.xlu1 %2711 }
 0x760   :  { %v2718_v52 = vpop.permute.xlu1 %2717 }
 0x761   :  { %v2847_v21 = vrot.slane %v2718_v52, %v7283_v14  ;;  %v2862_v52 = vrot.slane %v2727_v34, %v7313_v25  ;;  %v2872_v34 = vrot.slane %v2733_v11, %v7347_v1 }
 0x763   :  { %v2848_v24 = vsel %vm2341_vm3, %v2847_v21, %v2843_v6  ;;  %v2778_v21 = vrot.slane %v2676_v46, %v7305_v28 }
 0x764   :  { %v2724_v61 = vpop.permute.xlu1 %2723  ;;  %v2853_v17 = vsel %vm2348_vm4, %v2852_v47, %v2848_v24  ;;  %v2769_v24 = vsel %vm2341_vm3, %v2768_v40, %v2764_v33  ;;  %v2803_v40 = vrot.slane %v2691_v30, %v7380_v62 }
 0x765   :  { %v2857_v37 = vrot.slane %v2724_v61, %v7305_v28  ;;  %v2783_v61 = vrot.slane %v2679_v39, %v7313_v25  ;;  %v2745_v39 = vpop.permute.xlu0 %2744 }
 0x767   :  { %v2858_v8 = vsel %vm2355_vm5, %v2857_v37, %v2853_v17  ;;  %v2774_v17 = vsel %vm2348_vm4, %v2773_v31, %v2769_v24  ;;  %v2793_v37 = vrot.slane %v2685_v26, %v7347_v1  ;;  %v2808_v26 = vrot.slane %v2694_v36, %v7375_v27 }
 0x768   :  { %v2730_v53 = vpop.permute.xlu1 %2729  ;;  %v2863_v47 = vsel %vm2362_vm6, %v2862_v52, %v2858_v8  ;;  %v2779_v46 = vsel %vm2355_vm5, %v2778_v21, %v2774_v17  ;;  %v2882_v52 = vrot.slane %v2739_v50, %v7380_v62  ;;  %v2818_v24 = vrot.slane %v2700_v55, %v7409_v60 }
 0x769   :  { %v2867_v6 = vrot.slane %v2730_v53, %v7310_v5  ;;  %v2798_v53 = vrot.slane %v2688_v13, %v7341_v16  ;;  %v2784_v33 = vsel %vm2362_vm6, %v2783_v61, %v2779_v46  ;;  %v2751_v36 = vpop.permute.xlu0 %2750  ;;  %v2892_v50 = vrot.slane %v2745_v39, %v7412_v2 }
 0x76a   :  { %v2789_v7 = vsel %vm2369_vm7, %v2788_v57, %v2784_v33  ;;  %v8850_v33 = vld [vmem:[#allocation25_spill] sm:$0xff] }
 0x76b   :  { %v2868_v12 = vsel %vm2369_vm7, %v2867_v6, %v2863_v47  ;;  %v2794_v31 = vsel %vm8794_vm8, %v2793_v37, %v2789_v7 }
 0x76c   :  { %v2736_v22 = vpop.permute.xlu1 %2735  ;;  %v2873_v63 = vsel %vm8794_vm8, %v2872_v34, %v2868_v12  ;;  %v2799_v21 = vsel %vm8741_vm9, %v2798_v53, %v2794_v31  ;;  %v2813_v12 = vrot.slane %v7706_v4, %v7412_v2  ;;  %v8848_v53 = vld [vmem:[#allocation26_spill] sm:$0xff]  ;;  %v2902_v4 = vrot.slane %v2751_v36, %v8850_v33 }
 0x76d   :  { %v2877_v8 = vrot.slane %v2736_v22, %v7341_v16  ;;  %v2804_v61 = vsel %vm8740_vm10, %v2803_v40, %v2799_v21  ;;  %v2828_v55 = vrot.slane %v7712_v58, %v8848_v53  ;;  %v2823_v40 = vrot.slane %v7708_v0, %v8850_v33 }
 0x76e   :  { %v2809_v47 = vsel %vm2397_vm11, %v2808_v26, %v2804_v61  ;;  %v2838_v58 = vrot.slane %v7714_v44, %v7484_v32 }
 0x76f   :  { %v2878_v11 = vsel %vm8741_vm9, %v2877_v8, %v2873_v63  ;;  %v2814_v34 = vsel %vm2404_vm12, %v2813_v12, %v2809_v47  ;;  %v2757_v63 = vpop.permute.xlu0 %2756 }
 0x770   :  { %v2742_v13 = vpop.permute.xlu1 %2741  ;;  %v2883_v30 = vsel %vm8740_vm10, %v2882_v52, %v2878_v11  ;;  %vm8847_vm10 = vcmask 786112  }
 0x771   :  { %v2887_v6 = vrot.slane %v2742_v13, %v7375_v27  ;;  %v2819_v46 = vsel %vm8847_vm10, %v2818_v24, %v2814_v34  ;;  %vm8849_vm9 = vmmov %vm8847_vm10  ;;  %v8851_v13 = vld [vmem:[#allocation27_spill] sm:$0xff]  ;;  %vm8888_vm10 = vcmask 589312  }
 0x772   :  { %v2824_v26 = vsel %vm2418_vm14, %v2823_v40, %v2819_v46  ;;  %v2833_v0 = vrot.slane %v7710_v9, %v8851_v13  ;;  %v2912_v21 = vrot.slane %v2757_v63, %v8851_v13  ;;  %v8860_v40 = vld [vmem:[#allocation32_spill] sm:$0xff]  ;;  %v8866_v63 = vld [vmem:[#allocation33_spill] sm:$0xff] }
 0x773   :  { %v2888_v57 = vsel %vm2397_vm11, %v2887_v6, %v2883_v30  ;;  %v2829_v31 = vsel %vm2425_vm15, %v2828_v55, %v2824_v26  ;;  %v8868_v26 = vld [vmem:[#allocation31_spill] sm:$0xff] }
 0x774   :  { %v2748_v17 = vpop.permute.xlu1 %2747  ;;  %v2893_v22 = vsel %vm2404_vm12, %v2892_v50, %v2888_v57  ;;  %v2834_v30 = vsel %vm2432_vm1, %v2833_v0, %v2829_v31  ;;  %v8870_v31 = vld [vmem:[#allocation35_spill] sm:$0xff] }
 0x775   :  { %v2897_v37 = vrot.slane %v2748_v17, %v7409_v60  ;;  %v2839_v24 = vsel %vm2439_vm2, %v2838_v58, %v2834_v30 }
 0x777   :  { %v2898_v8 = vsel %vm8849_vm9, %v2897_v37, %v2893_v22  ;;  %vm8887_vm9 = vcmask 523712  }
 0x778   :  { %v2754_v39 = vpop.permute.xlu1 %2753  ;;  %v2903_v11 = vsel %vm2418_vm14, %v2902_v4, %v2898_v8  ;;  %v8858_v8 = vld [vmem:[#allocation34_spill] sm:$0xff]  ;;  %v8862_v4 = vld [vmem:[#allocation36_spill] sm:$0xff] }
 0x779   :  { %v2907_v7 = vrot.slane %v2754_v39, %v8848_v53  ;;  %v8864_v39 = vld [vmem:[#allocation30_spill] sm:$0xff] }
 0x77b   :  { %v2908_v52 = vsel %vm2425_vm15, %v2907_v7, %v2903_v11 }
 0x77c   :  { %v2760_v6 = vpop.permute.xlu1 %2759  ;;  %v2913_v47 = vsel %vm2432_vm1, %v2912_v21, %v2908_v52  ;;  %v8872_v52 = vld [vmem:[#allocation37_spill] sm:$0xff]  ;;  %v8874_v21 = vld [vmem:[#allocation38_spill] sm:$0xff] }
 0x77d   :  { %v2917_v61 = vrot.slane %v2760_v6, %v7484_v32 }
 0x77f   :  { %v2918_v36 = vsel %vm2439_vm2, %v2917_v61, %v2913_v47  ;;  %v8875_v61 = vld [vmem:[#allocation39_spill] sm:$0xff]  ;;  %v8876_v47 = vld [vmem:[#allocation40_spill] sm:$0xff] }
 0x780   :  { %v2919_v44 = vsel %vm2520_vm13, %v2918_v36, %v2839_v24  ;;  %v8877_v36 = vld [vmem:[#allocation41_spill] sm:$0xff] }
 0x781   :  { %v2921_v57 = vsel %vm8761_vm0, %v2919_v44, 0.0  ;;  %vm8889_vm0 = vmmov %vm8887_vm9 }
 0x782   :  { %2922 = vadd.xlane.f32.xlu0 %v2921_v57  ;;  %v8879_v57 = vld [vmem:[#allocation42_spill] sm:$0xff] }
 0x80b   :  { %v2923_v12 = vpop.xlane.xlu0 %2922 }
 0x80c   :  { %v2928_v9 = vrot.slane %v2923_v12, %v6324_v43  ;;  %v2932_v50 = vrot.slane %v2923_v12, %v7549_v45 }
 0x80e   :  { %5492 = vrcp.f32 %v2928_v9  ;;  %v8881_v9 = vld [vmem:[#allocation43_spill] sm:$0xff] }
 0x80f   :  { %5494 = vrcp.f32 %v2932_v50 }
 0x81b   :  { %v5493_v17 = vpop.eup %5492 }
 0x81c   :  { %v7788_v37 = vmul.f32 %v5493_v17, %v7640_v29  ;;  %v7791_v34 = vmul.f32 %v5493_v17, %v7572_v20  ;;  %v7796_v22 = vmul.f32 %v5493_v17, %v7598_v38  ;;  %v7799_v46 = vmul.f32 %v5493_v17, %v7568_v54  ;;  %v5495_v55 = vpop.eup %5494 }
 0x81d   :  { %v7804_v29 = vmul.f32 %v5495_v55, %v7608_v35  ;;  %v7807_v20 = vmul.f32 %v5493_v17, %v7582_v10  ;;  %v7812_v38 = vmul.f32 %v5495_v55, %v7618_v51  ;;  %v7815_v54 = vmul.f32 %v5493_v17, %v7592_v41 }
 0x81e   :  { %8852 = vst [vmem:[#allocation46_spill] sm:$0xff] %v7788_v37  ;;  %3026 = vperm.xlu0 %5103, %v7788_v37   ;;  %3002 = vperm.xlu1 %5102, %v7791_v34   ;;  %8853 = vst [vmem:[#allocation47_spill] sm:$0xff] %v7796_v22  ;;  %v7820_v35 = vmul.f32 %v5495_v55, %v7628_v3  ;;  %v7823_v10 = vmul.f32 %v5493_v17, %v7602_v15 }
 0x81f   :  { %v7828_v51 = vmul.f32 %v5495_v55, %v7636_v42  ;;  %v7831_v41 = vmul.f32 %v5493_v17, %v7612_v49  ;;  %v7836_v3 = vmul.f32 %v5495_v55, %v7644_v19  ;;  %v7839_v15 = vmul.f32 %v5493_v17, %v7622_v56 }
 0x820   :  { %8854 = vst [vmem:[#allocation48_spill] sm:$0xff] %v7820_v35  ;;  %v7844_v42 = vmul.f32 %v5495_v55, %v7652_v48  ;;  %v7847_v49 = vmul.f32 %v5493_v17, %v7632_v59  ;;  %v7852_v19 = vmul.f32 %v5495_v55, %v8858_v8  ;;  %v7855_v56 = vmul.f32 %v5493_v17, %v8860_v40  ;;  %v8885_v40 = vld [vmem:[#allocation45_spill] sm:$0xff] }
 0x821   :  { %8855 = vst [vmem:[#allocation49_spill] sm:$0xff] %v7828_v51  ;;  %8856 = vst [vmem:[#allocation50_spill] sm:$0xff] %v7836_v3  ;;  %v7860_v48 = vmul.f32 %v5495_v55, %v8862_v4  ;;  %v7863_v59 = vmul.f32 %v5493_v17, %v8864_v39  ;;  %v7868_v7 = vmul.f32 %v5493_v17, %v8866_v63 }
 0x822   :  { %3044 = vperm.xlu0 %5103, %v7796_v22   ;;  %3005 = vperm.xlu1 %5102, %v7799_v46   ;;  %8857 = vst [vmem:[#allocation51_spill] sm:$0xff] %v7844_v42  ;;  %8859 = vst [vmem:[#allocation34_spill] sm:$0xff] %v7852_v19  ;;  %v7872_v11 = vmul.f32 %v5493_v17, %v8868_v26  ;;  %v7876_v58 = vmul.f32 %v5493_v17, %v8870_v31 }
 0x823   :  { %8861 = vst [vmem:[#allocation32_spill] sm:$0xff] %v7855_v56  ;;  %8863 = vst [vmem:[#allocation36_spill] sm:$0xff] %v7860_v48  ;;  %v7880_v0 = vmul.f32 %v5493_v17, %v8872_v52  ;;  %v7884_v6 = vmul.f32 %v5495_v55, %v8874_v21  ;;  %v7888_v30 = vmul.f32 %v5495_v55, %v8875_v61  ;;  %v8883_v17 = vld [vmem:[#allocation44_spill] sm:$0xff] }
 0x824   :  { %8865 = vst [vmem:[#allocation30_spill] sm:$0xff] %v7863_v59  ;;  %8867 = vst [vmem:[#allocation33_spill] sm:$0xff] %v7868_v7  ;;  %v7892_v24 = vmul.f32 %v5495_v55, %v8876_v47  ;;  %v7896_v44 = vmul.f32 %v5495_v55, %v8877_v36  ;;  %v7900_v12 = vmul.f32 %v5495_v55, %v8879_v57 }
 0x825   :  { %8869 = vst [vmem:[#allocation31_spill] sm:$0xff] %v7872_v11  ;;  %8871 = vst [vmem:[#allocation35_spill] sm:$0xff] %v7876_v58  ;;  %v7904_v50 = vmul.f32 %v5495_v55, %v8881_v9  ;;  %v7908_v8 = vmul.f32 %v5495_v55, %v8883_v17  ;;  %v7912_v4 = vmul.f32 %v5495_v55, %v8885_v40 }
 0x826   :  { %3050 = vperm.xlu0 %5103, %v7804_v29   ;;  %3008 = vperm.xlu1 %5102, %v7807_v20   ;;  %8873 = vst [vmem:[#allocation37_spill] sm:$0xff] %v7880_v0  ;;  %8878 = vst [vmem:[#allocation38_spill] sm:$0xff] %v7896_v44 }
 0x827   :  { %8880 = vst [vmem:[#allocation39_spill] sm:$0xff] %v7900_v12  ;;  %8882 = vst [vmem:[#allocation40_spill] sm:$0xff] %v7904_v50 }
 0x828   :  { %8884 = vst [vmem:[#allocation41_spill] sm:$0xff] %v7908_v8  ;;  %8886 = vst [vmem:[#allocation42_spill] sm:$0xff] %v7912_v4 }
 0x82a   :  { %3056 = vperm.xlu0 %5103, %v7812_v38   ;;  %3011 = vperm.xlu1 %5102, %v7815_v54  }
 0x82e   :  { %3062 = vperm.xlu0 %5103, %v7820_v35   ;;  %3014 = vperm.xlu1 %5102, %v7823_v10  }
 0x832   :  { %3068 = vperm.xlu0 %5103, %v7828_v51   ;;  %3017 = vperm.xlu1 %5102, %v7831_v41  }
 0x836   :  { %3074 = vperm.xlu0 %5103, %v7836_v3   ;;  %3020 = vperm.xlu1 %5102, %v7839_v15  }
 0x83a   :  { %3080 = vperm.xlu0 %5103, %v7844_v42   ;;  %3023 = vperm.xlu1 %5102, %v7847_v49  }
 0x83e   :  { %3086 = vperm.xlu0 %5103, %v7852_v19   ;;  %3029 = vperm.xlu1 %5102, %v7855_v56  }
 0x842   :  { %3092 = vperm.xlu0 %5103, %v7860_v48   ;;  %3032 = vperm.xlu1 %5102, %v7863_v59  }
 0x846   :  { %3035 = vperm.xlu1 %5102, %v7868_v7  }
 0x84a   :  { %3038 = vperm.xlu1 %5102, %v7872_v11  }
 0x84e   :  { %3041 = vperm.xlu1 %5102, %v7876_v58  }
 0x852   :  { %3047 = vperm.xlu1 %5102, %v7880_v0  }
 0x856   :  { %3053 = vperm.xlu1 %5102, %v7884_v6  }
 0x85a   :  { %3059 = vperm.xlu1 %5102, %v7888_v30  }
 0x85e   :  { %3065 = vperm.xlu1 %5102, %v7892_v24  }
 0x862   :  { %3071 = vperm.xlu1 %5102, %v7896_v44  }
 0x866   :  { %3077 = vperm.xlu1 %5102, %v7900_v12  }
 0x86a   :  { %3083 = vperm.xlu1 %5102, %v7904_v50  }
 0x86e   :  { %3089 = vperm.xlu1 %5102, %v7908_v8  }
 0x872   :  { %3095 = vperm.xlu1 %5102, %v7912_v4  }
 0x899   :  { %v3003_v39 = vpop.permute.xlu1 %3002  ;;  %v7915_v47 = vpop.permute.xlu0 %3026 }
 0x89d   :  { %v3006_v63 = vpop.permute.xlu1 %3005  ;;  %v7919_v9 = vpop.permute.xlu0 %3044 }
 0x8a1   :  { %v3009_v26 = vpop.permute.xlu1 %3008  ;;  %v3051_v55 = vpop.permute.xlu0 %3050 }
 0x8a2   :  { %v3179_v19 = vrot.slane %v3051_v55, %v7274_v23  ;;  %v3104_v55 = vrot.slane %v3006_v63, %v7283_v14 }
 0x8a5   :  { %v3012_v31 = vpop.permute.xlu1 %3011  ;;  %v3057_v0 = vpop.permute.xlu0 %3056 }
 0x8a6   :  { %v3188_v42 = vrot.slane %v3057_v0, %v7291_v18  ;;  %v3100_v0 = vrot.slane %v3003_v39, %v7274_v23 }
 0x8a9   :  { %v3015_v52 = vpop.permute.xlu1 %3014  ;;  %v3063_v22 = vpop.permute.xlu0 %3062 }
 0x8aa   :  { %v3198_v51 = vrot.slane %v3063_v22, %v7313_v25 }
 0x8ad   :  { %v3018_v21 = vpop.permute.xlu1 %3017  ;;  %v3069_v11 = vpop.permute.xlu0 %3068 }
 0x8b1   :  { %v3021_v61 = vpop.permute.xlu1 %3020  ;;  %v3075_v3 = vpop.permute.xlu0 %3074 }
 0x8b5   :  { %v3024_v36 = vpop.permute.xlu1 %3023 }
 0x8b9   :  { %v7917_v57 = vpop.permute.xlu1 %3029 }
 0x8bd   :  { %v7921_v17 = vpop.permute.xlu1 %3032 }
 0x8c1   :  { %v7923_v40 = vpop.permute.xlu1 %3035 }
 0x8c5   :  { %v7925_v4 = vpop.permute.xlu1 %3038 }
 0x8c9   :  { %v7927_v48 = vpop.permute.xlu1 %3041 }
 0x8cd   :  { %v7929_v8 = vpop.permute.xlu1 %3047 }
 0x8d1   :  { %v3054_v58 = vpop.permute.xlu1 %3053 }
 0x8d2   :  { %v3183_v50 = vrot.slane %v3054_v58, %v7283_v14  ;;  %v3109_v58 = vrot.slane %v3009_v26, %v7291_v18  ;;  %v3134_v26 = vrot.slane %v3024_v36, %v7341_v16  ;;  %v3144_v36 = vrot.slane %v7917_v57, %v7375_v27 }
 0x8d3   :  { %v3159_v57 = vrot.slane %v7925_v4, %v8850_v33 }
 0x8d4   :  { %v3184_v7 = vsel %vm2341_vm3, %v3183_v50, %v3179_v19  ;;  %v3124_v50 = vrot.slane %v3018_v21, %v7310_v5 }
 0x8d5   :  { %v3060_v59 = vpop.permute.xlu1 %3059  ;;  %v3189_v56 = vsel %vm2348_vm4, %v3188_v42, %v3184_v7  ;;  %v3119_v7 = vrot.slane %v3015_v52, %v7313_v25  ;;  %v3218_v52 = vrot.slane %v3075_v3, %v7380_v62  ;;  %v3139_v3 = vrot.slane %v7915_v47, %v7380_v62 }
 0x8d6   :  { %v3193_v12 = vrot.slane %v3060_v59, %v7305_v28  ;;  %v3114_v59 = vrot.slane %v3012_v31, %v7305_v28 }
 0x8d8   :  { %v3194_v37 = vsel %vm2355_vm5, %v3193_v12, %v3189_v56  ;;  %v3208_v56 = vrot.slane %v3069_v11, %v7347_v1  ;;  %v3105_v12 = vsel %vm2341_vm3, %v3104_v55, %v3100_v0 }
 0x8d9   :  { %v3066_v44 = vpop.permute.xlu1 %3065  ;;  %v3199_v19 = vsel %vm2362_vm6, %v3198_v51, %v3194_v37  ;;  %v3110_v37 = vsel %vm2348_vm4, %v3109_v58, %v3105_v12  ;;  %v3129_v51 = vrot.slane %v3021_v61, %v7347_v1  ;;  %v3154_v12 = vrot.slane %v7923_v40, %v7409_v60 }
 0x8da   :  { %v3203_v35 = vrot.slane %v3066_v44, %v7310_v5  ;;  %v3081_v44 = vpop.permute.xlu0 %3080 }
 0x8dc   :  { %v3204_v42 = vsel %vm2369_vm7, %v3203_v35, %v3199_v19  ;;  %v3115_v35 = vsel %vm2355_vm5, %v3114_v59, %v3110_v37 }
 0x8dd   :  { %v3072_v22 = vpop.permute.xlu1 %3071  ;;  %v3209_v39 = vsel %vm8794_vm8, %v3208_v56, %v3204_v42  ;;  %v3120_v31 = vsel %vm2362_vm6, %v3119_v7, %v3115_v35  ;;  %v3228_v7 = vrot.slane %v3081_v44, %v7412_v2  ;;  %v3149_v56 = vrot.slane %v7921_v17, %v7412_v2 }
 0x8de   :  { %v3213_v63 = vrot.slane %v3072_v22, %v7341_v16  ;;  %v3125_v55 = vsel %vm2369_vm7, %v3124_v50, %v3120_v31  ;;  %v3087_v59 = vpop.permute.xlu0 %3086  ;;  %v3164_v44 = vrot.slane %v7927_v48, %v8848_v53  ;;  %v3174_v48 = vrot.slane %v7929_v8, %v7484_v32 }
 0x8df   :  { %v3130_v58 = vsel %vm8794_vm8, %v3129_v51, %v3125_v55  ;;  %v3238_v51 = vrot.slane %v3087_v59, %v8850_v33  ;;  %v3169_v55 = vrot.slane %v7919_v9, %v8851_v13  ;;  %v3259_v9 = vstv %s3258_s2 }
 0x8e0   :  { %v3214_v11 = vsel %vm8887_vm9, %v3213_v63, %v3209_v39  ;;  %v3135_v0 = vsel %vm8889_vm0, %v3134_v26, %v3130_v58  ;;  %vm8890_vm0 = vmmov %vm8888_vm10  ;;  %vm8891_vm9 = vcmask 786112  }
 0x8e1   :  { %v3078_v21 = vpop.permute.xlu1 %3077  ;;  %v3219_v61 = vsel %vm8888_vm10, %v3218_v52, %v3214_v11  ;;  %v3140_v63 = vsel %vm8890_vm0, %v3139_v3, %v3135_v0  ;;  %vm8892_vm10 = vmmov %vm8891_vm9  ;;  %v3260_v3 = vmul.f32 %v3259_v9, %v3259_v9 }
 0x8e2   :  { %v3223_v19 = vrot.slane %v3078_v21, %v7375_v27  ;;  %v3145_v47 = vsel %vm2397_vm11, %v3144_v36, %v3140_v63  ;;  %v3093_v35 = vpop.permute.xlu0 %3092 }
 0x8e3   :  { %v3150_v40 = vsel %vm2404_vm12, %v3149_v56, %v3145_v47  ;;  %5496 = vrcp.f32 %v3260_v3 }
 0x8e4   :  { %v3224_v42 = vsel %vm2397_vm11, %v3223_v19, %v3219_v61  ;;  %v3155_v26 = vsel %vm8892_vm10, %v3154_v12, %v3150_v40  ;;  %v3248_v19 = vrot.slane %v3093_v35, %v8851_v13 }
 0x8e5   :  { %v3084_v22 = vpop.permute.xlu1 %3083  ;;  %v3229_v37 = vsel %vm2404_vm12, %v3228_v7, %v3224_v42  ;;  %v3160_v4 = vsel %vm2418_vm14, %v3159_v57, %v3155_v26 }
 0x8e6   :  { %v3233_v50 = vrot.slane %v3084_v22, %v7409_v60  ;;  %v3165_v52 = vsel %vm2425_vm15, %v3164_v44, %v3160_v4 }
 0x8e7   :  { %v3170_v0 = vsel %vm2432_vm1, %v3169_v55, %v3165_v52 }
 0x8e8   :  { %v3234_v17 = vsel %vm8891_vm9, %v3233_v50, %v3229_v37  ;;  %v3175_v36 = vsel %vm2439_vm2, %v3174_v48, %v3170_v0 }
 0x8e9   :  { %v3090_v39 = vpop.permute.xlu1 %3089  ;;  %v3239_v31 = vsel %vm2418_vm14, %v3238_v51, %v3234_v17  ;;  %v8893_v51 = vld [vmem:[#allocation15_spill] sm:$0xff] }
 0x8ea   :  { %v3243_v11 = vrot.slane %v3090_v39, %v8848_v53  ;;  %vm3275_vm0 = vcmp.ge.s32.totalorder %v8893_v51, 1  ;;  %vm3283_vm9 = vcmp.le.s32.totalorder %v8893_v51, 126  ;;  %vm3287_vm10 = vcmp.le.s32.totalorder %v8893_v51, 125 }
 0x8ec   :  { %v3244_v21 = vsel %vm2425_vm15, %v3243_v11, %v3239_v31 }
 0x8ed   :  { %v3096_v58 = vpop.permute.xlu1 %3095  ;;  %v3249_v59 = vsel %vm2432_vm1, %v3248_v19, %v3244_v21 }
 0x8ee   :  { %v3253_v61 = vrot.slane %v3096_v58, %v7484_v32 }
 0x8f0   :  { %v3254_v42 = vsel %vm2439_vm2, %v3253_v61, %v3249_v59  ;;  %v5497_v7 = vpop.eup %5496 }
 0x8f1   :  { %v3255_v8 = vsel %vm2520_vm13, %v3254_v42, %v3175_v36  ;;  %v3262_v56 = vmul.f32 -0.5, %v5497_v7 }
 0x8f2   :  { %3280 = vrot.lane.b32.xlu1 %v3255_v8, %s5659_s4  ;;  %3257 = vst [vmem:[#allocation9] sm:$0x3] %v3255_v8  ;;  %3276 = vrot.lane.b32.xlu0 %v3255_v8, %s5660_s26 }
 0x8f3   :  { %v3263_v22 = vmul.f32 1.442695, %v3262_v56 }
 0x8f5   :  { %5498 = vpow2.f32 %v3263_v22 }
 0x8f6   :  { %3288 = vrot.lane.b32.xlu1 %v3255_v8, %s5661_s27  ;;  %3284 = vrot.lane.b32.xlu0 %v3255_v8, %s5662_s28 }
 0x902   :  { %v5499_v12 = vpop.eup %5498 }
 0x903   :  { %v3265_v50 = vmul.f32 %v5499_v12, %v5499_v12  ;;  %v3267_v57 = vmul.f32 2.0, %v5499_v12 }
 0x905   :  { %v3266_v63 = vmul.f32 %v3265_v50, %v3265_v50  ;;  %v3268_v37 = vadd.f32 1.0, %v3267_v57 }
 0x907   :  { %v3269_v47 = vmul.f32 2.0, %v3266_v63 }
 0x909   :  { %v3270_v44 = vadd.f32 %v3269_v47, %v3268_v37 }
 0x90b   :  { %5500 = vrcp.f32 %v3270_v44 }
 0x918   :  { %v8004_v40 = vpop.eup %5500 }
 0x919   :  { %v3273_v39 = vmul.f32 %v8004_v40, %v5499_v12  ;;  %v3274_v61 = vmul.f32 %v8004_v40, %v3266_v63  ;;  %v3294_v60 = vmul.f32 %v8004_v40, %v7815_v54  ;;  %v3293_v2 = vmul.f32 %v8004_v40, %v7807_v20 }
 0x91a   :  { %v3297_v20 = vmul.f32 %v8004_v40, %v7839_v15 }
 0x964   :  { %v3277_v17 = vpop.permute.xlu0 %3276  ;;  %v3281_v21 = vpop.permute.xlu1 %3280 }
 0x965   :  { %v3278_v26 = vsel %vm3275_vm0, %v3277_v17, 0.0  ;;  %vm3279_vm0 = vcmp.ge.s32.totalorder %v8893_v51, 2 }
 0x966   :  { %v3282_v58 = vsel %vm3279_vm0, %v3281_v21, 0.0  ;;  %vm8926_vm0 = vcmask 589312  }
 0x968   :  { %v3285_v35 = vpop.permute.xlu0 %3284  ;;  %v3289_v55 = vpop.permute.xlu1 %3288 }
 0x969   :  { %v3286_v11 = vsel %vm3283_vm9, %v3285_v35, 0.0  ;;  %v3290_v19 = vsel %vm3287_vm10, %v3289_v55, 0.0  ;;  %vm8923_vm9 = vcmask 523712  }
 0x96a   :  { %v3323_v4 = vadd.f32 %v3286_v11, %v3278_v26  ;;  %v3524_v0 = vadd.f32 %v3290_v19, %v3282_v58  ;;  %vm8924_vm10 = vmmov %vm8923_vm9 }
 0x96c   :  { %v3324_v31 = vmul.f32 %v3323_v4, %v3273_v39  ;;  %v3525_v59 = vmul.f32 %v3524_v0, %v3274_v61 }
 0x96e   :  { %v3329_v52 = vrot.slane %v3324_v31, %v6324_v43  ;;  %v3396_v48 = vrot.slane %v3324_v31, %v7549_v45  ;;  %v3530_v36 = vrot.slane %v3525_v59, %v6324_v43  ;;  %v3597_v42 = vrot.slane %v3525_v59, %v7549_v45 }
 0x96f   :  { %v3292_v45 = vmul.f32 %v8004_v40, %v7799_v46  ;;  %v3291_v43 = vmul.f32 %v8004_v40, %v7791_v34  ;;  %v3296_v34 = vmul.f32 %v8004_v40, %v7831_v41  ;;  %v3295_v46 = vmul.f32 %v8004_v40, %v7823_v10 }
 0x970   :  { %3335 = vbcast.lane.b32.xlu1 %v3329_v52, 264  ;;  %3331 = vbcast.lane.b32.xlu0 %v3329_v52, 256 }
 0x974   :  { %3343 = vbcast.lane.b32.xlu1 %v3329_v52, 280  ;;  %3339 = vbcast.lane.b32.xlu0 %v3329_v52, 272 }
 0x978   :  { %3351 = vbcast.lane.b32.xlu1 %v3329_v52, 296  ;;  %3347 = vbcast.lane.b32.xlu0 %v3329_v52, 288 }
 0x97c   :  { %3359 = vbcast.lane.b32.xlu1 %v3329_v52, 312  ;;  %3355 = vbcast.lane.b32.xlu0 %v3329_v52, 304 }
 0x980   :  { %3367 = vbcast.lane.b32.xlu1 %v3329_v52, 328  ;;  %3363 = vbcast.lane.b32.xlu0 %v3329_v52, 320 }
 0x984   :  { %3375 = vbcast.lane.b32.xlu1 %v3329_v52, 344  ;;  %3371 = vbcast.lane.b32.xlu0 %v3329_v52, 336 }
 0x988   :  { %3383 = vbcast.lane.b32.xlu1 %v3329_v52, 360  ;;  %3379 = vbcast.lane.b32.xlu0 %v3329_v52, 352 }
 0x98c   :  { %3391 = vbcast.lane.b32.xlu1 %v3329_v52, 376  ;;  %3387 = vbcast.lane.b32.xlu0 %v3329_v52, 368 }
 0x990   :  { %3402 = vbcast.lane.b32.xlu1 %v3396_v48, 264  ;;  %3398 = vbcast.lane.b32.xlu0 %v3396_v48, 256 }
 0x994   :  { %3410 = vbcast.lane.b32.xlu1 %v3396_v48, 280  ;;  %3406 = vbcast.lane.b32.xlu0 %v3396_v48, 272 }
 0x998   :  { %3418 = vbcast.lane.b32.xlu1 %v3396_v48, 296  ;;  %3414 = vbcast.lane.b32.xlu0 %v3396_v48, 288 }
 0x99c   :  { %3426 = vbcast.lane.b32.xlu1 %v3396_v48, 312  ;;  %3422 = vbcast.lane.b32.xlu0 %v3396_v48, 304 }
 0x9a0   :  { %3434 = vbcast.lane.b32.xlu1 %v3396_v48, 328  ;;  %3430 = vbcast.lane.b32.xlu0 %v3396_v48, 320 }
 0x9a4   :  { %3442 = vbcast.lane.b32.xlu1 %v3396_v48, 344  ;;  %3438 = vbcast.lane.b32.xlu0 %v3396_v48, 336 }
 0x9a8   :  { %3450 = vbcast.lane.b32.xlu1 %v3396_v48, 360  ;;  %3446 = vbcast.lane.b32.xlu0 %v3396_v48, 352 }
 0x9ac   :  { %3458 = vbcast.lane.b32.xlu1 %v3396_v48, 376  ;;  %3454 = vbcast.lane.b32.xlu0 %v3396_v48, 368 }
 0x9b0   :  { %3536 = vbcast.lane.b32.xlu1 %v3530_v36, 264  ;;  %3532 = vbcast.lane.b32.xlu0 %v3530_v36, 256 }
 0x9b4   :  { %3544 = vbcast.lane.b32.xlu1 %v3530_v36, 280  ;;  %3540 = vbcast.lane.b32.xlu0 %v3530_v36, 272 }
 0x9b8   :  { %3552 = vbcast.lane.b32.xlu1 %v3530_v36, 296  ;;  %3548 = vbcast.lane.b32.xlu0 %v3530_v36, 288 }
 0x9bc   :  { %3560 = vbcast.lane.b32.xlu1 %v3530_v36, 312  ;;  %3556 = vbcast.lane.b32.xlu0 %v3530_v36, 304 }
 0x9c0   :  { %3568 = vbcast.lane.b32.xlu1 %v3530_v36, 328  ;;  %3564 = vbcast.lane.b32.xlu0 %v3530_v36, 320 }
 0x9c4   :  { %3576 = vbcast.lane.b32.xlu1 %v3530_v36, 344  ;;  %3572 = vbcast.lane.b32.xlu0 %v3530_v36, 336 }
 0x9c8   :  { %3584 = vbcast.lane.b32.xlu1 %v3530_v36, 360  ;;  %3580 = vbcast.lane.b32.xlu0 %v3530_v36, 352 }
 0x9cc   :  { %3592 = vbcast.lane.b32.xlu1 %v3530_v36, 376  ;;  %3588 = vbcast.lane.b32.xlu0 %v3530_v36, 368 }
 0x9d0   :  { %3603 = vbcast.lane.b32.xlu1 %v3597_v42, 264  ;;  %3599 = vbcast.lane.b32.xlu0 %v3597_v42, 256 }
 0x9d4   :  { %3611 = vbcast.lane.b32.xlu1 %v3597_v42, 280  ;;  %3607 = vbcast.lane.b32.xlu0 %v3597_v42, 272 }
 0x9d8   :  { %3619 = vbcast.lane.b32.xlu1 %v3597_v42, 296  ;;  %3615 = vbcast.lane.b32.xlu0 %v3597_v42, 288 }
 0x9dc   :  { %3627 = vbcast.lane.b32.xlu1 %v3597_v42, 312  ;;  %3623 = vbcast.lane.b32.xlu0 %v3597_v42, 304 }
 0x9e0   :  { %3635 = vbcast.lane.b32.xlu1 %v3597_v42, 328  ;;  %3631 = vbcast.lane.b32.xlu0 %v3597_v42, 320 }
 0x9e2   :  { %v3336_v8 = vpop.permute.xlu1 %3335  ;;  %v3332_v9 = vpop.permute.xlu0 %3331 }
 0x9e3   :  { %v3493_v32 = vadd.f32 %v3336_v8, %v3292_v45  ;;  %v3492_v13 = vadd.f32 %v3332_v9, %v3291_v43 }
 0x9e4   :  { %3643 = vbcast.lane.b32.xlu1 %v3597_v42, 344  ;;  %3639 = vbcast.lane.b32.xlu0 %v3597_v42, 336 }
 0x9e6   :  { %v3344_v3 = vpop.permute.xlu1 %3343  ;;  %v3340_v7 = vpop.permute.xlu0 %3339 }
 0x9e7   :  { %v3495_v16 = vadd.f32 %v3344_v3, %v3294_v60  ;;  %v3494_v1 = vadd.f32 %v3340_v7, %v3293_v2 }
 0x9e8   :  { %3651 = vbcast.lane.b32.xlu1 %v3597_v42, 360  ;;  %3647 = vbcast.lane.b32.xlu0 %v3597_v42, 352 }
 0x9ea   :  { %v3352_v56 = vpop.permute.xlu1 %3351  ;;  %v3348_v22 = vpop.permute.xlu0 %3347 }
 0x9ec   :  { %3659 = vbcast.lane.b32.xlu1 %v3597_v42, 376  ;;  %3655 = vbcast.lane.b32.xlu0 %v3597_v42, 368 }
 0x9ee   :  { %v3360_v12 = vpop.permute.xlu1 %3359  ;;  %v3356_v50 = vpop.permute.xlu0 %3355 }
 0x9ef   :  { %v3498_v10 = vadd.f32 %v3356_v50, %v3297_v20  ;;  %v3309_v20 = vmul.f32 %v8004_v40, %v7812_v38 }
 0x9f2   :  { %v8014_v63 = vpop.permute.xlu1 %3367  ;;  %v8016_v57 = vpop.permute.xlu0 %3363 }
 0x9f6   :  { %v8018_v37 = vpop.permute.xlu1 %3375  ;;  %v8020_v47 = vpop.permute.xlu0 %3371 }
 0x9fa   :  { %v8022_v44 = vpop.permute.xlu1 %3383  ;;  %v8024_v17 = vpop.permute.xlu0 %3379 }
 0x9fe   :  { %v8026_v51 = vpop.permute.xlu1 %3391  ;;  %v8028_v39 = vpop.permute.xlu0 %3387 }
 0xa02   :  { %v8030_v35 = vpop.permute.xlu1 %3402  ;;  %v8032_v26 = vpop.permute.xlu0 %3398 }
 0xa06   :  { %v8034_v11 = vpop.permute.xlu1 %3410  ;;  %v8036_v4 = vpop.permute.xlu0 %3406 }
 0xa0a   :  { %v8038_v31 = vpop.permute.xlu1 %3418  ;;  %v8040_v52 = vpop.permute.xlu0 %3414 }
 0xa0e   :  { %v8042_v48 = vpop.permute.xlu1 %3426  ;;  %v8044_v21 = vpop.permute.xlu0 %3422 }
 0xa12   :  { %v8046_v55 = vpop.permute.xlu1 %3434  ;;  %v8048_v19 = vpop.permute.xlu0 %3430 }
 0xa16   :  { %v8050_v58 = vpop.permute.xlu1 %3442  ;;  %v8052_v61 = vpop.permute.xlu0 %3438 }
 0xa1a   :  { %v8054_v0 = vpop.permute.xlu1 %3450  ;;  %v8056_v59 = vpop.permute.xlu0 %3446 }
 0xa1e   :  { %v8058_v36 = vpop.permute.xlu1 %3458  ;;  %v8060_v42 = vpop.permute.xlu0 %3454 }
 0xa22   :  { %v3537_v53 = vpop.permute.xlu1 %3536  ;;  %v3533_v33 = vpop.permute.xlu0 %3532 }
 0xa23   :  { %v8070_v27 = vadd.f32 %v3537_v53, %v3493_v32  ;;  %v8072_v62 = vadd.f32 %v3533_v33, %v3492_v13  ;;  %v3497_v53 = vadd.f32 %v3352_v56, %v3296_v34  ;;  %v3496_v33 = vadd.f32 %v3348_v22, %v3295_v46 }
 0xa24   :  { %v3298_v13 = vmul.f32 %v8004_v40, %v7847_v49  ;;  %v3308_v34 = vmul.f32 %v8004_v40, %v7884_v6  ;;  %v3307_v46 = vmul.f32 %v8004_v40, %v7804_v29  ;;  %v3510_v29 = vadd.f32 %v8036_v4, %v3309_v20 }
 0xa25   :  { %3761 = vperm.xlu1 %5102, %v8070_v27   ;;  %3758 = vperm.xlu0 %5103, %v8072_v62  }
 0xa26   :  { %v3545_v45 = vpop.permute.xlu1 %3544  ;;  %v3541_v43 = vpop.permute.xlu0 %3540 }
 0xa27   :  { %v8080_v54 = vadd.f32 %v3545_v45, %v3495_v16  ;;  %v8082_v32 = vadd.f32 %v3541_v43, %v3494_v1  ;;  %v3499_v1 = vadd.f32 %v3360_v12, %v3298_v13  ;;  %v3310_v13 = vmul.f32 %v8004_v40, %v7888_v30 }
 0xa28   :  { %v3312_v30 = vmul.f32 %v8004_v40, %v7892_v24 }
 0xa29   :  { %3767 = vperm.xlu1 %5102, %v8080_v54   ;;  %3764 = vperm.xlu0 %5103, %v8082_v32   ;;  %v3511_v6 = vadd.f32 %v8034_v11, %v3310_v13 }
 0xa2a   :  { %v3553_v60 = vpop.permute.xlu1 %3552  ;;  %v3549_v2 = vpop.permute.xlu0 %3548  ;;  %v3513_v11 = vadd.f32 %v8038_v31, %v3312_v30  ;;  %v8898_v30 = vld [vmem:[#allocation50_spill] sm:$0xff] }
 0xa2b   :  { %v8090_v41 = vadd.f32 %v3553_v60, %v3497_v53  ;;  %v8092_v16 = vadd.f32 %v3549_v2, %v3496_v33  ;;  %v3509_v53 = vadd.f32 %v8030_v35, %v3308_v34  ;;  %v3508_v33 = vadd.f32 %v8032_v26, %v3307_v46 }
 0xa2d   :  { %3773 = vperm.xlu1 %5102, %v8090_v41   ;;  %3770 = vperm.xlu0 %5103, %v8092_v16  }
 0xa2e   :  { %v3561_v8 = vpop.permute.xlu1 %3560  ;;  %v3557_v9 = vpop.permute.xlu0 %3556 }
 0xa2f   :  { %v8096_v3 = vadd.f32 %v3561_v8, %v3499_v1  ;;  %v8098_v7 = vadd.f32 %v3557_v9, %v3498_v10  ;;  %v8894_v8 = vld [vmem:[#allocation48_spill] sm:$0xff] }
 0xa30   :  { %v3311_v38 = vmul.f32 %v8004_v40, %v8894_v8  ;;  %v3315_v8 = vmul.f32 %v8004_v40, %v8898_v30 }
 0xa31   :  { %3779 = vperm.xlu1 %5102, %v8096_v3   ;;  %3776 = vperm.xlu0 %5103, %v8098_v7  }
 0xa32   :  { %v8102_v15 = vpop.permute.xlu1 %3568  ;;  %v3565_v49 = vpop.permute.xlu0 %3564  ;;  %v3512_v4 = vadd.f32 %v8040_v52, %v3311_v38 }
 0xa36   :  { %v8104_v56 = vpop.permute.xlu1 %3576  ;;  %v8106_v22 = vpop.permute.xlu0 %3572 }
 0xa3a   :  { %v8108_v12 = vpop.permute.xlu1 %3584  ;;  %v8110_v50 = vpop.permute.xlu0 %3580 }
 0xa3e   :  { %v8112_v45 = vpop.permute.xlu1 %3592  ;;  %v8114_v43 = vpop.permute.xlu0 %3588 }
 0xa42   :  { %v3604_v60 = vpop.permute.xlu1 %3603  ;;  %v3600_v2 = vpop.permute.xlu0 %3599 }
 0xa43   :  { %v8126_v1 = vadd.f32 %v3604_v60, %v3509_v53  ;;  %v8128_v10 = vadd.f32 %v3600_v2, %v3508_v33  ;;  %v8895_v33 = vld [vmem:[#allocation38_spill] sm:$0xff]  ;;  %v8896_v60 = vld [vmem:[#allocation49_spill] sm:$0xff] }
 0xa44   :  { %v3314_v24 = vmul.f32 %v8004_v40, %v8895_v33  ;;  %v3313_v2 = vmul.f32 %v8004_v40, %v8896_v60  ;;  %v8900_v33 = vld [vmem:[#allocation39_spill] sm:$0xff] }
 0xa45   :  { %3809 = vperm.xlu1 %5102, %v8126_v1   ;;  %3806 = vperm.xlu0 %5103, %v8128_v10  }
 0xa46   :  { %v3612_v35 = vpop.permute.xlu1 %3611  ;;  %v3608_v26 = vpop.permute.xlu0 %3607  ;;  %v3515_v31 = vadd.f32 %v8042_v48, %v3314_v24  ;;  %v3514_v52 = vadd.f32 %v8044_v21, %v3313_v2  ;;  %v3516_v21 = vadd.f32 %v8048_v19, %v3315_v8  ;;  %v3316_v24 = vmul.f32 %v8004_v40, %v8900_v33  ;;  %v8903_v8 = vld [vmem:[#allocation33_spill] sm:$0xff]  ;;  %v8905_v33 = vld [vmem:[#allocation31_spill] sm:$0xff] }
 0xa47   :  { %v8138_v9 = vadd.f32 %v3612_v35, %v3511_v6  ;;  %v8140_v34 = vadd.f32 %v3608_v26, %v3510_v29  ;;  %v8897_v35 = vld [vmem:[#allocation46_spill] sm:$0xff] }
 0xa48   :  { %v3299_v26 = vmul.f32 %v8004_v40, %v8897_v35  ;;  %v3517_v19 = vadd.f32 %v8046_v55, %v3316_v24  ;;  %v3303_v24 = vmul.f32 %v8004_v40, %v8905_v33 }
 0xa49   :  { %3815 = vperm.xlu1 %5102, %v8138_v9   ;;  %3812 = vperm.xlu0 %5103, %v8140_v34  }
 0xa4a   :  { %v3620_v46 = vpop.permute.xlu1 %3619  ;;  %v3616_v53 = vpop.permute.xlu0 %3615  ;;  %v3500_v48 = vadd.f32 %v8016_v57, %v3299_v26 }
 0xa4b   :  { %v8150_v13 = vadd.f32 %v3620_v46, %v3513_v11  ;;  %v8152_v20 = vadd.f32 %v3616_v53, %v3512_v4  ;;  %v8899_v46 = vld [vmem:[#allocation32_spill] sm:$0xff] }
 0xa4c   :  { %v3300_v53 = vmul.f32 %v8004_v40, %v8899_v46  ;;  %v8174_v60 = vadd.f32 %v3565_v49, %v3500_v48  ;;  %v3302_v48 = vmul.f32 %v8004_v40, %v8903_v8  ;;  %v8911_v8 = vld [vmem:[#allocation47_spill] sm:$0xff] }
 0xa4d   :  { %3821 = vperm.xlu1 %5102, %v8150_v13   ;;  %3818 = vperm.xlu0 %5103, %v8152_v20  }
 0xa4e   :  { %v3628_v6 = vpop.permute.xlu1 %3627  ;;  %v3624_v29 = vpop.permute.xlu0 %3623  ;;  %v3501_v57 = vadd.f32 %v8014_v63, %v3300_v53 }
 0xa4f   :  { %v8162_v38 = vadd.f32 %v3628_v6, %v3515_v31  ;;  %v8164_v11 = vadd.f32 %v3624_v29, %v3514_v52  ;;  %v8901_v52 = vld [vmem:[#allocation30_spill] sm:$0xff]  ;;  %v8902_v29 = vld [vmem:[#allocation51_spill] sm:$0xff] }
 0xa50   :  { %v3301_v6 = vmul.f32 %v8004_v40, %v8901_v52  ;;  %v3317_v35 = vmul.f32 %v8004_v40, %v8902_v29  ;;  %v8187_v49 = vadd.f32 %v8102_v15, %v3501_v57 }
 0xa51   :  { %3827 = vperm.xlu1 %5102, %v8162_v38   ;;  %3824 = vperm.xlu0 %5103, %v8164_v11  }
 0xa52   :  { %v3632_v4 = vpop.permute.xlu0 %3631  ;;  %v3636_v31 = vpop.permute.xlu1 %3635  ;;  %v3502_v63 = vadd.f32 %v8020_v47, %v3301_v6  ;;  %v3518_v55 = vadd.f32 %v8052_v61, %v3317_v35  ;;  %v3503_v47 = vadd.f32 %v8018_v37, %v3302_v48  ;;  %v3504_v37 = vadd.f32 %v8024_v17, %v3303_v24  ;;  %v8908_v6 = vld [vmem:[#allocation35_spill] sm:$0xff]  ;;  %v8909_v35 = vld [vmem:[#allocation41_spill] sm:$0xff]  ;;  %v8915_v24 = vld [vmem:[#allocation42_spill] sm:$0xff] }
 0xa53   :  { %v8176_v2 = vadd.f32 %v3632_v4, %v3516_v21  ;;  %v8189_v26 = vadd.f32 %v3636_v31, %v3517_v19  ;;  %v8904_v21 = vld [vmem:[#allocation40_spill] sm:$0xff]  ;;  %v8906_v31 = vld [vmem:[#allocation34_spill] sm:$0xff]  ;;  %v3304_v29 = vmul.f32 %v8004_v40, %v8908_v6  ;;  %v3305_v48 = vmul.f32 %v8004_v40, %v8911_v8 }
 0xa54   :  { %v3318_v4 = vmul.f32 %v8004_v40, %v8904_v21  ;;  %v8200_v15 = vadd.f32 %v8106_v22, %v3502_v63  ;;  %v3319_v57 = vmul.f32 %v8004_v40, %v8906_v31  ;;  %v8213_v22 = vadd.f32 %v8104_v56, %v3503_v47  ;;  %v8912_v21 = vld [vmem:[#allocation36_spill] sm:$0xff] }
 0xa55   :  { %3830 = vperm.xlu1 %5102, %v8176_v2   ;;  %3782 = vperm.xlu0 %5103, %v8174_v60   ;;  %v8226_v56 = vadd.f32 %v8110_v50, %v3504_v37  ;;  %v3505_v17 = vadd.f32 %v8022_v44, %v3304_v29  ;;  %v3506_v44 = vadd.f32 %v8028_v39, %v3305_v48 }
 0xa56   :  { %v3640_v30 = vpop.permute.xlu0 %3639  ;;  %v3644_v53 = vpop.permute.xlu1 %3643  ;;  %v3519_v61 = vadd.f32 %v8050_v58, %v3318_v4  ;;  %8907 = vst [vmem:[#allocation43_spill] sm:$0xff] %v8213_v22  ;;  %v3520_v58 = vadd.f32 %v8056_v59, %v3319_v57  ;;  %v3321_v4 = vmul.f32 %v8004_v40, %v8912_v21  ;;  %v3322_v31 = vmul.f32 %v8004_v40, %v8915_v24 }
 0xa57   :  { %v8202_v46 = vadd.f32 %v3640_v30, %v3518_v55  ;;  %v3320_v30 = vmul.f32 %v8004_v40, %v8909_v35  ;;  %8910 = vst [vmem:[#allocation44_spill] sm:$0xff] %v8226_v56  ;;  %v8239_v50 = vadd.f32 %v8108_v12, %v3505_v17  ;;  %v8252_v12 = vadd.f32 %v8114_v43, %v3506_v44 }
 0xa58   :  { %v8215_v19 = vadd.f32 %v3644_v53, %v3519_v61  ;;  %v8914_v61 = vld [vmem:[#allocation37_spill] sm:$0xff] }
 0xa59   :  { %3833 = vperm.xlu1 %5102, %v8189_v26   ;;  %3785 = vperm.xlu0 %5103, %v8187_v49   ;;  %v3521_v59 = vadd.f32 %v8054_v0, %v3320_v30  ;;  %8913 = vst [vmem:[#allocation45_spill] sm:$0xff] %v8239_v50  ;;  %v3522_v0 = vadd.f32 %v8060_v42, %v3321_v4  ;;  %8916 = vst [vmem:[#allocation15_spill] sm:$0xff] %v8252_v12 }
 0xa5a   :  { %v3648_v52 = vpop.permute.xlu0 %3647  ;;  %v3652_v55 = vpop.permute.xlu1 %3651  ;;  %v3306_v33 = vmul.f32 %v8004_v40, %v8914_v61  ;;  %v3523_v42 = vadd.f32 %v8058_v36, %v3322_v31 }
 0xa5b   :  { %v8228_v63 = vadd.f32 %v3648_v52, %v3520_v58  ;;  %v8241_v53 = vadd.f32 %v3652_v55, %v3521_v59 }
 0xa5c   :  { %v3507_v39 = vadd.f32 %v8026_v51, %v3306_v33 }
 0xa5d   :  { %3836 = vperm.xlu1 %5102, %v8202_v46   ;;  %3788 = vperm.xlu0 %5103, %v8200_v15  }
 0xa5e   :  { %v3656_v47 = vpop.permute.xlu0 %3655  ;;  %v3660_v52 = vpop.permute.xlu1 %3659  ;;  %v8261_v37 = vadd.f32 %v8112_v45, %v3507_v39 }
 0xa5f   :  { %v8254_v57 = vadd.f32 %v3656_v47, %v3522_v0  ;;  %v8263_v58 = vadd.f32 %v3660_v52, %v3523_v42 }
 0xa60   :  { %8917 = vst [vmem:[#allocation48_spill] sm:$0xff] %v8261_v37 }
 0xa61   :  { %3839 = vperm.xlu1 %5102, %v8215_v19   ;;  %3791 = vperm.xlu0 %5103, %v8213_v22  }
 0xa65   :  { %3842 = vperm.xlu1 %5102, %v8228_v63   ;;  %3794 = vperm.xlu0 %5103, %v8226_v56  }
 0xa69   :  { %3845 = vperm.xlu1 %5102, %v8241_v53   ;;  %3797 = vperm.xlu0 %5103, %v8239_v50  }
 0xa6d   :  { %3848 = vperm.xlu1 %5102, %v8254_v57   ;;  %3800 = vperm.xlu0 %5103, %v8252_v12  }
 0xa71   :  { %3851 = vperm.xlu1 %5102, %v8263_v58   ;;  %3803 = vperm.xlu0 %5103, %v8261_v37  }
 0xaa0   :  { %v3762_v40 = vpop.permute.xlu1 %3761  ;;  %v3759_v43 = vpop.permute.xlu0 %3758 }
 0xaa1   :  { %v3860_v33 = vrot.slane %v3762_v40, %v7283_v14  ;;  %v3856_v24 = vrot.slane %v3759_v43, %v7274_v23 }
 0xaa3   :  { %v3861_v50 = vsel %vm2341_vm3, %v3860_v33, %v3856_v24 }
 0xaa4   :  { %v3768_v6 = vpop.permute.xlu1 %3767  ;;  %v3765_v29 = vpop.permute.xlu0 %3764 }
 0xaa5   :  { %v3865_v39 = vrot.slane %v3765_v29, %v7291_v18  ;;  %v3870_v56 = vrot.slane %v3768_v6, %v7305_v28 }
 0xaa7   :  { %v3866_v43 = vsel %vm2348_vm4, %v3865_v39, %v3861_v50  ;;  %v8919_v39 = vld [vmem:[#allocation19_spill] sm:$0xff] }
 0xaa8   :  { %v3774_v51 = vpop.permute.xlu1 %3773  ;;  %v3771_v35 = vpop.permute.xlu0 %3770  ;;  %v3871_v33 = vsel %vm2355_vm5, %v3870_v56, %v3866_v43 }
 0xaac   :  { %v3780_v36 = vpop.permute.xlu1 %3779  ;;  %v3777_v30 = vpop.permute.xlu0 %3776 }
 0xac0   :  { %v3810_v55 = vpop.permute.xlu1 %3809  ;;  %v3807_v17 = vpop.permute.xlu0 %3806 }
 0xac1   :  { %v3939_v31 = vrot.slane %v3810_v55, %v7283_v14  ;;  %v3935_v52 = vrot.slane %v3807_v17, %v7274_v23  ;;  %v3875_v55 = vrot.slane %v3771_v35, %v7313_v25 }
 0xac3   :  { %v3940_v22 = vsel %vm2341_vm3, %v3939_v31, %v3935_v52  ;;  %v8918_v31 = vld [vmem:[#allocation20_spill] sm:$0xff] }
 0xac4   :  { %v3816_v59 = vpop.permute.xlu1 %3815  ;;  %v3813_v8 = vpop.permute.xlu0 %3812  ;;  %v3885_v50 = vrot.slane %v3777_v30, %v8918_v31 }
 0xac5   :  { %v3944_v42 = vrot.slane %v3813_v8, %v7291_v18  ;;  %v3949_v40 = vrot.slane %v3816_v59, %v7305_v28  ;;  %v3880_v18 = vrot.slane %v3774_v51, %v7310_v5  ;;  %v3876_v59 = vsel %vm2362_vm6, %v3875_v55, %v3871_v33  ;;  %v8920_v55 = vld [vmem:[#allocation22_spill] sm:$0xff]  ;;  %v8921_v33 = vld [vmem:[#allocation21_spill] sm:$0xff] }
 0xac7   :  { %v3945_v17 = vsel %vm2348_vm4, %v3944_v42, %v3940_v22  ;;  %v3890_v42 = vrot.slane %v3780_v36, %v8919_v39  ;;  %v3881_v51 = vsel %vm2369_vm7, %v3880_v18, %v3876_v59 }
 0xac8   :  { %v3822_v45 = vpop.permute.xlu1 %3821  ;;  %v3819_v48 = vpop.permute.xlu0 %3818  ;;  %v3950_v24 = vsel %vm2355_vm5, %v3949_v40, %v3945_v17  ;;  %v3886_v40 = vsel %vm8794_vm8, %v3885_v50, %v3881_v51  ;;  %v8925_v50 = vld [vmem:[#allocation23_spill] sm:$0xff]  ;;  %v8928_v51 = vld [vmem:[#allocation25_spill] sm:$0xff] }
 0xac9   :  { %v3954_v29 = vrot.slane %v3819_v48, %v7313_v25  ;;  %v3959_v6 = vrot.slane %v3822_v45, %v7310_v5  ;;  %v8922_v5 = vld [vmem:[#allocation24_spill] sm:$0xff]  ;;  %v3891_v59 = vsel %vm8924_vm10, %v3890_v42, %v3886_v40  ;;  %vm8934_vm10 = vcmask 1041408  }
 0xacb   :  { %v3955_v35 = vsel %vm2362_vm6, %v3954_v29, %v3950_v24 }
 0xacc   :  { %v3828_v21 = vpop.permute.xlu1 %3827  ;;  %v3825_v4 = vpop.permute.xlu0 %3824  ;;  %v3960_v45 = vsel %vm2369_vm7, %v3959_v6, %v3955_v35 }
 0xacd   :  { %v3964_v22 = vrot.slane %v3825_v4, %v8918_v31  ;;  %v3969_v56 = vrot.slane %v3828_v21, %v8919_v39 }
 0xacf   :  { %v3965_v43 = vsel %vm8794_vm8, %v3964_v22, %v3960_v45  ;;  %vm8927_vm8 = vmmov %vm8926_vm0 }
 0xad0   :  { %v3831_v47 = vpop.permute.xlu1 %3830  ;;  %v3783_v44 = vpop.permute.xlu0 %3782  ;;  %v3970_v6 = vsel %vm8923_vm9, %v3969_v56, %v3965_v43  ;;  %v8929_v43 = vld [vmem:[#allocation26_spill] sm:$0xff] }
 0xad1   :  { %v3974_v30 = vrot.slane %v3831_v47, %v8920_v55  ;;  %v3895_v17 = vrot.slane %v3783_v44, %v8920_v55 }
 0xad3   :  { %v3975_v44 = vsel %vm8926_vm0, %v3974_v30, %v3970_v6  ;;  %v3896_v22 = vsel %vm8927_vm8, %v3895_v17, %v3891_v59  ;;  %v8930_v30 = vld [vmem:[#allocation27_spill] sm:$0xff]  ;;  %vm8931_vm8 = vcmask 786112   ;;  %vm8960_vm0 = vcmask 458112  }
 0xad4   :  { %v3834_v0 = vpop.permute.xlu1 %3833  ;;  %v3786_v61 = vpop.permute.xlu0 %3785  ;;  %vm8932_vm9 = vmmov %vm8931_vm8 }
 0xad5   :  { %v3979_v24 = vrot.slane %v3834_v0, %v8921_v33  ;;  %v3900_v36 = vrot.slane %v3786_v61, %v8921_v33 }
 0xad7   :  { %v3901_v56 = vsel %vm2397_vm11, %v3900_v36, %v3896_v22 }
 0xad8   :  { %v3837_v37 = vpop.permute.xlu1 %3836  ;;  %v3789_v12 = vpop.permute.xlu0 %3788 }
 0xad9   :  { %v3984_v18 = vrot.slane %v3837_v37, %v8922_v5  ;;  %v3905_v21 = vrot.slane %v3789_v12, %v8922_v5  ;;  %v3980_v12 = vsel %vm2397_vm11, %v3979_v24, %v3975_v44  ;;  %v8933_v44 = vld [vmem:[#allocation28_spill] sm:$0xff] }
 0xadb   :  { %v3906_v40 = vsel %vm2404_vm12, %v3905_v21, %v3901_v56  ;;  %v8935_v56 = vld [vmem:[#allocation14_spill] sm:$0xff] }
 0xadc   :  { %v3840_v14 = vpop.permute.xlu1 %3839  ;;  %v3792_v8 = vpop.permute.xlu0 %3791 }
 0xadd   :  { %v3989_v35 = vrot.slane %v3840_v14, %v8925_v50  ;;  %v3910_v47 = vrot.slane %v3792_v8, %v8925_v50  ;;  %v3985_v8 = vsel %vm2404_vm12, %v3984_v18, %v3980_v12 }
 0xadf   :  { %v3911_v6 = vsel %vm8932_vm9, %v3910_v47, %v3906_v40  ;;  %vm8962_vm9 = vcmask 589312  }
 0xae0   :  { %v3843_v52 = vpop.permute.xlu1 %3842  ;;  %v3795_v48 = vpop.permute.xlu0 %3794 }
 0xae1   :  { %v3994_v0 = vrot.slane %v3843_v52, %v8928_v51  ;;  %v3915_v61 = vrot.slane %v3795_v48, %v8928_v51  ;;  %v3990_v48 = vsel %vm8931_vm8, %v3989_v35, %v3985_v8  ;;  %vm8961_vm8 = vcmask 523712  }
 0xae3   :  { %v3995_v24 = vsel %vm2418_vm14, %v3994_v0, %v3990_v48  ;;  %v3916_v36 = vsel %vm2418_vm14, %v3915_v61, %v3911_v6 }
 0xae4   :  { %v3846_v29 = vpop.permute.xlu1 %3845  ;;  %v3798_v4 = vpop.permute.xlu0 %3797 }
 0xae5   :  { %v3999_v42 = vrot.slane %v3846_v29, %v8929_v43  ;;  %v3920_v14 = vrot.slane %v3798_v4, %v8929_v43 }
 0xae7   :  { %v4000_v4 = vsel %vm2425_vm15, %v3999_v42, %v3995_v24  ;;  %v3921_v18 = vsel %vm2425_vm15, %v3920_v14, %v3916_v36  ;;  %v8936_v14 = vld [vmem:[#allocation29_spill] sm:$0xff] }
 0xae8   :  { %v3849_v45 = vpop.permute.xlu1 %3848  ;;  %v3801_v37 = vpop.permute.xlu0 %3800 }
 0xae9   :  { %v4004_v17 = vrot.slane %v3849_v45, %v8930_v30  ;;  %v3925_v52 = vrot.slane %v3801_v37, %v8930_v30 }
 0xaeb   :  { %v4005_v45 = vsel %vm2432_vm1, %v4004_v17, %v4000_v4  ;;  %v3926_v35 = vsel %vm2432_vm1, %v3925_v52, %v3921_v18 }
 0xaec   :  { %v3852_v59 = vpop.permute.xlu1 %3851  ;;  %v3804_v29 = vpop.permute.xlu0 %3803 }
 0xaed   :  { %v4009_v21 = vrot.slane %v3852_v59, %v8933_v44  ;;  %v3930_v22 = vrot.slane %v3804_v29, %v8933_v44 }
 0xaef   :  { %v3931_v47 = vsel %vm2439_vm2, %v3930_v22, %v3926_v35  ;;  %v4010_v0 = vsel %vm2439_vm2, %v4009_v21, %v4005_v45 }
 0xaf0   :  { %v4011_v61 = vsel %vm2520_vm13, %v4010_v0, %v3931_v47 }
 0xaf1   :  { %v4013_v37 = vsel %vm8934_vm10, %v4011_v61, -inf  ;;  %vm8963_vm10 = vcmask 786112  }
 0xaf2   :  { %4014 = vmax.xlane.f32.xlu0 %v4013_v37 }
 0xb7b   :  { %v4015_v12 = vpop.xlane.xlu0 %4014 }
 0xb7c   :  { %v8332_v42 = vrot.slane %v4015_v12, %v8935_v56  ;;  %v8335_v8 = vrot.slane %v4015_v12, %v8936_v14 }
 0xb7e   :  { %v4035_v40 = vsub.f32 %v8174_v60, %v8332_v42  ;;  %v4027_v17 = vsub.f32 %v8072_v62, %v8332_v42  ;;  %v4048_v52 = vsub.f32 %v8150_v13, %v8335_v8  ;;  %v4028_v48 = vsub.f32 %v8070_v27, %v8332_v42 }
 0xb7f   :  { %v4050_v59 = vsub.f32 %v8162_v38, %v8335_v8  ;;  %v4029_v60 = vsub.f32 %v8082_v32, %v8332_v42  ;;  %v4052_v13 = vsub.f32 %v8189_v26, %v8335_v8  ;;  %v4030_v27 = vsub.f32 %v8080_v54, %v8332_v42 }
 0xb80   :  { %v4075_v6 = vmul.f32 1.442695, %v4035_v40  ;;  %v4059_v24 = vmul.f32 1.442695, %v4027_v17  ;;  %v4101_v36 = vmul.f32 1.442695, %v4048_v52  ;;  %v4053_v38 = vsub.f32 %v8202_v46, %v8335_v8 }
 0xb81   :  { %v4061_v29 = vmul.f32 1.442695, %v4028_v48  ;;  %v4105_v62 = vmul.f32 1.442695, %v4050_v59  ;;  %v4063_v4 = vmul.f32 1.442695, %v4029_v60  ;;  %v4031_v32 = vsub.f32 %v8092_v16, %v8332_v42 }
 0xb82   :  { %5502 = vpow2.f32 %v4075_v6  ;;  %v4109_v18 = vmul.f32 1.442695, %v4052_v13  ;;  %v4065_v21 = vmul.f32 1.442695, %v4030_v27  ;;  %v4111_v22 = vmul.f32 1.442695, %v4053_v38 }
 0xb83   :  { %5504 = vpow2.f32 %v4059_v24  ;;  %v4054_v26 = vsub.f32 %v8215_v19, %v8335_v8  ;;  %v4067_v35 = vmul.f32 1.442695, %v4031_v32  ;;  %v4032_v54 = vsub.f32 %v8090_v41, %v8332_v42 }
 0xb84   :  { %5506 = vpow2.f32 %v4101_v36  ;;  %v4055_v46 = vsub.f32 %v8228_v63, %v8335_v8  ;;  %v4033_v61 = vsub.f32 %v8098_v7, %v8332_v42  ;;  %v4056_v12 = vsub.f32 %v8241_v53, %v8335_v8 }
 0xb85   :  { %5508 = vpow2.f32 %v4061_v29  ;;  %v4113_v16 = vmul.f32 1.442695, %v4054_v26  ;;  %v4069_v19 = vmul.f32 1.442695, %v4032_v54  ;;  %v4034_v17 = vsub.f32 %v8096_v3, %v8332_v42 }
 0xb86   :  { %5510 = vpow2.f32 %v4105_v62  ;;  %v4115_v41 = vmul.f32 1.442695, %v4055_v46  ;;  %v4071_v63 = vmul.f32 1.442695, %v4033_v61  ;;  %v4117_v7 = vmul.f32 1.442695, %v4056_v12 }
 0xb87   :  { %5512 = vpow2.f32 %v4063_v4  ;;  %v4057_v48 = vsub.f32 %v8254_v57, %v8335_v8  ;;  %v4073_v53 = vmul.f32 1.442695, %v4034_v17  ;;  %v4036_v24 = vsub.f32 %v8187_v49, %v8332_v42 }
 0xb88   :  { %5514 = vpow2.f32 %v4109_v18  ;;  %v4058_v59 = vsub.f32 %v8263_v58, %v8335_v8  ;;  %v4043_v60 = vsub.f32 %v8128_v10, %v8335_v8  ;;  %v4044_v58 = vsub.f32 %v8126_v1, %v8335_v8 }
 0xb89   :  { %5516 = vpow2.f32 %v4065_v21  ;;  %v4119_v3 = vmul.f32 1.442695, %v4057_v48  ;;  %v4077_v57 = vmul.f32 1.442695, %v4036_v24  ;;  %v4045_v38 = vsub.f32 %v8140_v34, %v8335_v8  ;;  %v8943_v48 = vld [vmem:[#allocation43_spill] sm:$0xff] }
 0xb8a   :  { %5518 = vpow2.f32 %v4111_v22  ;;  %v4121_v49 = vmul.f32 1.442695, %v4058_v59  ;;  %v4091_v4 = vmul.f32 1.442695, %v4043_v60  ;;  %v4093_v18 = vmul.f32 1.442695, %v4044_v58 }
 0xb8b   :  { %5520 = vpow2.f32 %v4067_v35  ;;  %v4095_v32 = vmul.f32 1.442695, %v4045_v38  ;;  %v4046_v22 = vsub.f32 %v8138_v9, %v8335_v8  ;;  %v4047_v54 = vsub.f32 %v8152_v20, %v8335_v8  ;;  %v8948_v58 = vld [vmem:[#allocation15_spill] sm:$0xff] }
 0xb8c   :  { %5522 = vpow2.f32 %v4113_v16 }
 0xb8d   :  { %5524 = vpow2.f32 %v4069_v19  ;;  %v4097_v35 = vmul.f32 1.442695, %v4046_v22  ;;  %v4099_v46 = vmul.f32 1.442695, %v4047_v54  ;;  %v4049_v19 = vsub.f32 %v8164_v11, %v8335_v8  ;;  %v8950_v22 = vld [vmem:[#allocation48_spill] sm:$0xff] }
 0xb8e   :  { %5526 = vpow2.f32 %v4115_v41  ;;  %v4051_v41 = vsub.f32 %v8176_v2, %v8335_v8  ;;  %v4037_v11 = vsub.f32 %v8200_v15, %v8332_v42  ;;  %v8944_v8 = vld [vmem:[#allocation44_spill] sm:$0xff] }
 0xb8f   :  { %v8359_v45 = vpop.eup %5502  ;;  %5528 = vpow2.f32 %v4071_v63  ;;  %v4103_v20 = vmul.f32 1.442695, %v4049_v19 }
 0xb90   :  { %8937 = vst [vmem:[#allocation38_spill] sm:$0xff] %v8359_v45  ;;  %v8363_v47 = vpop.eup %5504  ;;  %4180 = vperm.xlu0 %5103, %v8359_v45   ;;  %5530 = vpow2.f32 %v4117_v7  ;;  %v4107_v63 = vmul.f32 1.442695, %v4051_v41  ;;  %v4079_v7 = vmul.f32 1.442695, %v4037_v11 }
 0xb91   :  { %4156 = vperm.xlu1 %5102, %v8363_v47   ;;  %v8369_v0 = vpop.eup %5506  ;;  %5532 = vpow2.f32 %v4073_v53  ;;  %v4038_v53 = vsub.f32 %v8943_v48, %v8332_v42 }
 0xb92   :  { %v8373_v37 = vpop.eup %5508  ;;  %5534 = vpow2.f32 %v4119_v3  ;;  %v4039_v3 = vsub.f32 %v8944_v8, %v8332_v42 }
 0xb93   :  { %v8379_v40 = vpop.eup %5510  ;;  %5536 = vpow2.f32 %v4077_v57  ;;  %v4081_v2 = vmul.f32 1.442695, %v4038_v53  ;;  %v8946_v57 = vld [vmem:[#allocation45_spill] sm:$0xff]  ;;  %v8957_v53 = vld [vmem:[#allocation16_spill] sm:$0xff] }
 0xb94   :  { %4219 = vperm.xlu0 %5103, %v8369_v0   ;;  %v8383_v52 = vpop.eup %5512  ;;  %5538 = vpow2.f32 %v4121_v49  ;;  %v4083_v15 = vmul.f32 1.442695, %v4039_v3  ;;  %v4040_v60 = vsub.f32 %v8946_v57, %v8332_v42 }
 0xb95   :  { %4159 = vperm.xlu1 %5102, %v8373_v37   ;;  %v8389_v6 = vpop.eup %5514  ;;  %5540 = vpow2.f32 %v4091_v4 }
 0xb96   :  { %v8393_v36 = vpop.eup %5516  ;;  %5542 = vpow2.f32 %v4093_v18  ;;  %v4085_v4 = vmul.f32 1.442695, %v4040_v60  ;;  %v4041_v18 = vsub.f32 %v8948_v58, %v8332_v42 }
 0xb97   :  { %v8399_v29 = vpop.eup %5518  ;;  %5544 = vpow2.f32 %v4095_v32 }
 0xb98   :  { %4225 = vperm.xlu0 %5103, %v8379_v40   ;;  %8938 = vst [vmem:[#allocation49_spill] sm:$0xff] %v8399_v29  ;;  %v8403_v62 = vpop.eup %5520  ;;  %5546 = vpow2.f32 %v4097_v35  ;;  %v4087_v32 = vmul.f32 1.442695, %v4041_v18  ;;  %v4042_v35 = vsub.f32 %v8950_v22, %v8332_v42 }
 0xb99   :  { %4162 = vperm.xlu1 %5102, %v8383_v52   ;;  %v8407_v13 = vpop.eup %5522  ;;  %5548 = vpow2.f32 %v4099_v46 }
 0xb9a   :  { %v8411_v27 = vpop.eup %5524  ;;  %5550 = vpow2.f32 %v4103_v20  ;;  %v4089_v46 = vmul.f32 1.442695, %v4042_v35 }
 0xb9b   :  { %v8415_v10 = vpop.eup %5526  ;;  %5552 = vpow2.f32 %v4107_v63 }
 0xb9c   :  { %4231 = vperm.xlu0 %5103, %v8389_v6   ;;  %v8419_v21 = vpop.eup %5528  ;;  %5554 = vpow2.f32 %v4079_v7 }
 0xb9d   :  { %4165 = vperm.xlu1 %5102, %v8393_v36   ;;  %v8423_v1 = vpop.eup %5530  ;;  %5556 = vpow2.f32 %v4081_v2 }
 0xb9e   :  { %v8427_v26 = vpop.eup %5532  ;;  %5558 = vpow2.f32 %v4083_v15 }
 0xb9f   :  { %v8431_v34 = vpop.eup %5534  ;;  %5560 = vpow2.f32 %v4085_v4 }
 0xba0   :  { %4234 = vperm.xlu0 %5103, %v8399_v29   ;;  %v8435_v16 = vpop.eup %5536  ;;  %5562 = vpow2.f32 %v4087_v32 }
 0xba1   :  { %4168 = vperm.xlu1 %5102, %v8403_v62   ;;  %v8439_v9 = vpop.eup %5538  ;;  %5564 = vpow2.f32 %v4089_v46 }
 0xba2   :  { %8939 = vst [vmem:[#allocation46_spill] sm:$0xff] %v8439_v9  ;;  %v8443_v61 = vpop.eup %5540 }
 0xba3   :  { %8940 = vst [vmem:[#allocation50_spill] sm:$0xff] %v8443_v61  ;;  %v8449_v12 = vpop.eup %5542 }
 0xba4   :  { %4237 = vperm.xlu0 %5103, %v8407_v13   ;;  %8941 = vst [vmem:[#allocation32_spill] sm:$0xff] %v8449_v12  ;;  %v8454_v17 = vpop.eup %5544 }
 0xba5   :  { %4171 = vperm.xlu1 %5102, %v8411_v27   ;;  %8942 = vst [vmem:[#allocation39_spill] sm:$0xff] %v8454_v17  ;;  %v8459_v24 = vpop.eup %5546 }
 0xba6   :  { %v8464_v59 = vpop.eup %5548 }
 0xba7   :  { %8945 = vst [vmem:[#allocation30_spill] sm:$0xff] %v8464_v59  ;;  %v8469_v49 = vpop.eup %5550 }
 0xba8   :  { %4240 = vperm.xlu0 %5103, %v8415_v10   ;;  %8947 = vst [vmem:[#allocation51_spill] sm:$0xff] %v8469_v49  ;;  %v8474_v38 = vpop.eup %5552 }
 0xba9   :  { %4174 = vperm.xlu1 %5102, %v8419_v21   ;;  %8949 = vst [vmem:[#allocation33_spill] sm:$0xff] %v8474_v38  ;;  %v8479_v54 = vpop.eup %5554 }
 0xbaa   :  { %8951 = vst [vmem:[#allocation40_spill] sm:$0xff] %v8479_v54  ;;  %v8482_v19 = vpop.eup %5556 }
 0xbab   :  { %8952 = vst [vmem:[#allocation31_spill] sm:$0xff] %v8482_v19  ;;  %v8485_v20 = vpop.eup %5558 }
 0xbac   :  { %4243 = vperm.xlu0 %5103, %v8423_v1   ;;  %8953 = vst [vmem:[#allocation34_spill] sm:$0xff] %v8485_v20  ;;  %v8488_v41 = vpop.eup %5560 }
 0xbad   :  { %4177 = vperm.xlu1 %5102, %v8427_v26   ;;  %8954 = vst [vmem:[#allocation35_spill] sm:$0xff] %v8488_v41  ;;  %v8491_v42 = vpop.eup %5562 }
 0xbae   :  { %8955 = vst [vmem:[#allocation41_spill] sm:$0xff] %v8491_v42  ;;  %v8494_v63 = vpop.eup %5564 }
 0xbaf   :  { %8956 = vst [vmem:[#allocation47_spill] sm:$0xff] %v8494_v63 }
 0xbb0   :  { %4246 = vperm.xlu0 %5103, %v8431_v34  }
 0xbb1   :  { %4183 = vperm.xlu1 %5102, %v8435_v16  }
 0xbb4   :  { %4249 = vperm.xlu0 %5103, %v8439_v9  }
 0xbb5   :  { %4204 = vperm.xlu1 %5102, %v8443_v61  }
 0xbb9   :  { %4207 = vperm.xlu1 %5102, %v8449_v12  }
 0xbbd   :  { %4210 = vperm.xlu1 %5102, %v8454_v17  }
 0xbc1   :  { %4213 = vperm.xlu1 %5102, %v8459_v24  }
 0xbc5   :  { %4216 = vperm.xlu1 %5102, %v8464_v59  }
 0xbc9   :  { %4222 = vperm.xlu1 %5102, %v8469_v49  }
 0xbcd   :  { %4228 = vperm.xlu1 %5102, %v8474_v38  }
 0xbd1   :  { %4186 = vperm.xlu1 %5102, %v8479_v54  }
 0xbd5   :  { %4189 = vperm.xlu1 %5102, %v8482_v19  }
 0xbd9   :  { %4192 = vperm.xlu1 %5102, %v8485_v20  }
 0xbdd   :  { %4195 = vperm.xlu1 %5102, %v8488_v41  }
 0xbe1   :  { %4198 = vperm.xlu1 %5102, %v8491_v42  }
 0xbe5   :  { %4201 = vperm.xlu1 %5102, %v8494_v63  }
 0xc0b   :  { %v8500_v58 = vpop.permute.xlu0 %4180 }
 0xc0c   :  { %v4157_v11 = vpop.permute.xlu1 %4156 }
 0xc0d   :  { %v4254_v48 = vrot.slane %v4157_v11, %v7274_v23 }
 0xc0f   :  { %v4220_v22 = vpop.permute.xlu0 %4219 }
 0xc10   :  { %v4160_v7 = vpop.permute.xlu1 %4159 }
 0xc11   :  { %v4258_v2 = vrot.slane %v4160_v7, %v8957_v53 }
 0xc13   :  { %v4259_v8 = vsel %vm2341_vm3, %v4258_v2, %v4254_v48  ;;  %v4226_v46 = vpop.permute.xlu0 %4225  ;;  %v8958_v2 = vld [vmem:[#allocation17_spill] sm:$0xff] }
 0xc14   :  { %v4163_v3 = vpop.permute.xlu1 %4162 }
 0xc17   :  { %v4232_v11 = vpop.permute.xlu0 %4231 }
 0xc18   :  { %v4166_v15 = vpop.permute.xlu1 %4165 }
 0xc1b   :  { %v4235_v48 = vpop.permute.xlu0 %4234 }
 0xc1c   :  { %v4169_v57 = vpop.permute.xlu1 %4168 }
 0xc1f   :  { %v4238_v54 = vpop.permute.xlu0 %4237 }
 0xc20   :  { %v4172_v60 = vpop.permute.xlu1 %4171 }
 0xc24   :  { %v4175_v4 = vpop.permute.xlu1 %4174 }
 0xc28   :  { %v4178_v18 = vpop.permute.xlu1 %4177 }
 0xc2c   :  { %v8502_v32 = vpop.permute.xlu1 %4183 }
 0xc30   :  { %v4205_v35 = vpop.permute.xlu1 %4204 }
 0xc31   :  { %v4333_v38 = vrot.slane %v4205_v35, %v7274_v23 }
 0xc34   :  { %v4208_v63 = vpop.permute.xlu1 %4207 }
 0xc35   :  { %v4337_v7 = vrot.slane %v4208_v63, %v8957_v53 }
 0xc37   :  { %v4338_v17 = vsel %vm2341_vm3, %v4337_v7, %v4333_v38  ;;  %v4367_v38 = vrot.slane %v4226_v46, %v8919_v39 }
 0xc38   :  { %v4211_v42 = vpop.permute.xlu1 %4210 }
 0xc39   :  { %v4342_v20 = vrot.slane %v4211_v42, %v8958_v2  ;;  %v8959_v42 = vld [vmem:[#allocation18_spill] sm:$0xff] }
 0xc3a   :  { %v4357_v9 = vrot.slane %v4220_v22, %v8959_v42  ;;  %v4268_v22 = vrot.slane %v4166_v15, %v7305_v28  ;;  %v4278_v7 = vrot.slane %v4172_v60, %v8959_v42  ;;  %v4387_v15 = vrot.slane %v4238_v54, %v8925_v50 }
 0xc3b   :  { %v4343_v12 = vsel %vm2348_vm4, %v4342_v20, %v4338_v17  ;;  %v4241_v17 = vpop.permute.xlu0 %4240  ;;  %v4293_v54 = vrot.slane %v8500_v58, %v8920_v55 }
 0xc3c   :  { %v4214_v41 = vpop.permute.xlu1 %4213  ;;  %v4392_v60 = vrot.slane %v4241_v17, %v8928_v51 }
 0xc3d   :  { %v4347_v49 = vrot.slane %v4214_v41, %v7305_v28 }
 0xc3f   :  { %v4348_v19 = vsel %vm2355_vm5, %v4347_v49, %v4343_v12  ;;  %v4244_v46 = vpop.permute.xlu0 %4243 }
 0xc40   :  { %v4217_v29 = vpop.permute.xlu1 %4216 }
 0xc41   :  { %v4352_v59 = vrot.slane %v4217_v29, %v7313_v25 }
 0xc43   :  { %v4353_v63 = vsel %vm2362_vm6, %v4352_v59, %v4348_v19  ;;  %v4377_v59 = vrot.slane %v4232_v11, %v8921_v33 }
 0xc44   :  { %v4223_v61 = vpop.permute.xlu1 %4222  ;;  %v4358_v35 = vsel %vm2369_vm7, %v4357_v9, %v4353_v63 }
 0xc45   :  { %v4362_v53 = vrot.slane %v4223_v61, %v8918_v31  ;;  %v4263_v61 = vrot.slane %v4163_v3, %v8958_v2 }
 0xc47   :  { %v4363_v41 = vsel %vm8960_vm0, %v4362_v53, %v4358_v35  ;;  %v4382_v53 = vrot.slane %v4235_v48, %v8922_v5  ;;  %v4264_v63 = vsel %vm2348_vm4, %v4263_v61, %v4259_v8  ;;  %v4283_v35 = vrot.slane %v4175_v4, %v8918_v31  ;;  %v4247_v4 = vpop.permute.xlu0 %4246 }
 0xc48   :  { %v4229_v45 = vpop.permute.xlu1 %4228  ;;  %v4368_v12 = vsel %vm8961_vm8, %v4367_v38, %v4363_v41  ;;  %v4269_v3 = vsel %vm2355_vm5, %v4268_v22, %v4264_v63  ;;  %v4397_v22 = vrot.slane %v4244_v46, %v8929_v43  ;;  %v4402_v58 = vrot.slane %v4247_v4, %v8930_v30 }
 0xc49   :  { %v4372_v29 = vrot.slane %v4229_v45, %v8920_v55  ;;  %v4273_v45 = vrot.slane %v4169_v57, %v7313_v25 }
 0xc4b   :  { %v4373_v49 = vsel %vm8962_vm9, %v4372_v29, %v4368_v12  ;;  %v4288_v29 = vrot.slane %v4178_v18, %v8919_v39  ;;  %v4274_v48 = vsel %vm2362_vm6, %v4273_v45, %v4269_v3 }
 0xc4c   :  { %v4187_v20 = vpop.permute.xlu1 %4186  ;;  %v4378_v9 = vsel %vm2397_vm11, %v4377_v59, %v4373_v49  ;;  %v4279_v57 = vsel %vm2369_vm7, %v4278_v7, %v4274_v48  ;;  %v4298_v59 = vrot.slane %v8502_v32, %v8921_v33 }
 0xc4d   :  { %v4383_v11 = vsel %vm2404_vm12, %v4382_v53, %v4378_v9  ;;  %v4284_v8 = vsel %vm8960_vm0, %v4283_v35, %v4279_v57  ;;  %v4303_v18 = vrot.slane %v4187_v20, %v8922_v5  ;;  %v4250_v20 = vpop.permute.xlu0 %4249  ;;  %vm8964_vm0 = vcmask 1041408  }
 0xc4e   :  { %v4388_v38 = vsel %vm8963_vm10, %v4387_v15, %v4383_v11  ;;  %v4289_v49 = vsel %vm8961_vm8, %v4288_v29, %v4284_v8  ;;  %v4407_v15 = vrot.slane %v4250_v20, %v8933_v44  ;;  %v8971_v20 = vld [vmem:[#allocation39_spill] sm:$0xff] }
 0xc4f   :  { %v4393_v61 = vsel %vm2418_vm14, %v4392_v60, %v4388_v38  ;;  %v4294_v9 = vsel %vm8962_vm9, %v4293_v54, %v4289_v49 }
 0xc50   :  { %v4190_v19 = vpop.permute.xlu1 %4189  ;;  %v4299_v7 = vsel %vm2397_vm11, %v4298_v59, %v4294_v9  ;;  %v4398_v63 = vsel %vm2425_vm15, %v4397_v22, %v4393_v61 }
 0xc51   :  { %v4308_v17 = vrot.slane %v4190_v19, %v8925_v50  ;;  %v4304_v35 = vsel %vm2404_vm12, %v4303_v18, %v4299_v7  ;;  %v8967_v7 = vld [vmem:[#allocation40_spill] sm:$0xff] }
 0xc53   :  { %v4309_v19 = vsel %vm8963_vm10, %v4308_v17, %v4304_v35 }
 0xc54   :  { %v4193_v41 = vpop.permute.xlu1 %4192 }
 0xc55   :  { %v4313_v53 = vrot.slane %v4193_v41, %v8928_v51  ;;  %v4403_v41 = vsel %vm2432_vm1, %v4402_v58, %v4398_v63 }
 0xc56   :  { %v4408_v60 = vsel %vm2439_vm2, %v4407_v15, %v4403_v41  ;;  %v8974_v41 = vld [vmem:[#allocation33_spill] sm:$0xff] }
 0xc57   :  { %v4314_v11 = vsel %vm2418_vm14, %v4313_v53, %v4309_v19  ;;  %v8965_v53 = vld [vmem:[#allocation38_spill] sm:$0xff] }
 0xc58   :  { %v4196_v12 = vpop.permute.xlu1 %4195 }
 0xc59   :  { %v4318_v32 = vrot.slane %v4196_v12, %v8929_v43 }
 0xc5b   :  { %v4319_v29 = vsel %vm2425_vm15, %v4318_v32, %v4314_v11  ;;  %v8973_v11 = vld [vmem:[#allocation51_spill] sm:$0xff] }
 0xc5c   :  { %v4199_v45 = vpop.permute.xlu1 %4198 }
 0xc5d   :  { %v4323_v46 = vrot.slane %v4199_v45, %v8930_v30 }
 0xc5f   :  { %v4324_v57 = vsel %vm2432_vm1, %v4323_v46, %v4319_v29  ;;  %v8972_v46 = vld [vmem:[#allocation30_spill] sm:$0xff]  ;;  %v8975_v29 = vld [vmem:[#allocation49_spill] sm:$0xff] }
 0xc60   :  { %v4202_v3 = vpop.permute.xlu1 %4201 }
 0xc61   :  { %v4328_v48 = vrot.slane %v4202_v3, %v8933_v44 }
 0xc63   :  { %v4329_v38 = vsel %vm2439_vm2, %v4328_v48, %v4324_v57  ;;  %v8976_v57 = vld [vmem:[#allocation34_spill] sm:$0xff] }
 0xc64   :  { %v4409_v8 = vsel %vm2520_vm13, %v4408_v60, %v4329_v38  ;;  %v8977_v60 = vld [vmem:[#allocation35_spill] sm:$0xff] }
 0xc65   :  { %v4411_v4 = vsel %vm8964_vm0, %v4409_v8, 0.0 }
 0xc66   :  { %4412 = vadd.xlane.f32.xlu1 %v4411_v4  ;;  %v8978_v4 = vld [vmem:[#allocation41_spill] sm:$0xff] }
 0xcef   :  { %v4413_v12 = vpop.xlane.xlu1 %4412 }
 0xcf0   :  { %v4418_v49 = vrot.slane %v4413_v12, %v8935_v56  ;;  %v4422_v59 = vrot.slane %v4413_v12, %v8936_v14 }
 0xcf2   :  { %5566 = vrcp.f32 %v4418_v49  ;;  %v8979_v49 = vld [vmem:[#allocation47_spill] sm:$0xff] }
 0xcf3   :  { %5568 = vrcp.f32 %v4422_v59 }
 0xcff   :  { %v8569_v54 = vpop.eup %5566 }
 0xd00   :  { %v4435_v18 = vmul.f32 %v8569_v54, %v8435_v16  ;;  %v4426_v61 = vmul.f32 %v8569_v54, %v8363_v47  ;;  %v5569_v22 = vpop.eup %5568  ;;  %v4427_v56 = vmul.f32 %v8569_v54, %v8373_v37  ;;  %v4428_v9 = vmul.f32 %v8569_v54, %v8383_v52 }
 0xd01   :  { %v4446_v17 = vmul.f32 %v5569_v22, %v8459_v24  ;;  %v4448_v14 = vmul.f32 %v5569_v22, %v8369_v0  ;;  %v4450_v16 = vmul.f32 %v5569_v22, %v8379_v40  ;;  %v4429_v47 = vmul.f32 %v8569_v54, %v8393_v36 }
 0xd02   :  { %4519 = vperm.xlu1 %5102, %v4435_v18   ;;  %4492 = vperm.xlu0 %5103, %v4426_v61   ;;  %v4452_v24 = vmul.f32 %v5569_v22, %v8389_v6  ;;  %v4430_v37 = vmul.f32 %v8569_v54, %v8403_v62  ;;  %v4454_v0 = vmul.f32 %v5569_v22, %v8407_v13 }
 0xd03   :  { %v4431_v52 = vmul.f32 %v8569_v54, %v8411_v27  ;;  %v4455_v40 = vmul.f32 %v5569_v22, %v8415_v10  ;;  %v4432_v36 = vmul.f32 %v8569_v54, %v8419_v21  ;;  %v4456_v6 = vmul.f32 %v5569_v22, %v8423_v1  ;;  %v8966_v10 = vld [vmem:[#allocation46_spill] sm:$0xff]  ;;  %v8968_v1 = vld [vmem:[#allocation31_spill] sm:$0xff] }
 0xd04   :  { %v4433_v62 = vmul.f32 %v8569_v54, %v8427_v26  ;;  %v4457_v13 = vmul.f32 %v5569_v22, %v8431_v34  ;;  %v4434_v27 = vmul.f32 %v8569_v54, %v8965_v53  ;;  %v4458_v45 = vmul.f32 %v5569_v22, %v8966_v10  ;;  %v8969_v26 = vld [vmem:[#allocation50_spill] sm:$0xff]  ;;  %v8970_v34 = vld [vmem:[#allocation32_spill] sm:$0xff] }
 0xd05   :  { %v4436_v21 = vmul.f32 %v8569_v54, %v8967_v7  ;;  %v4437_v32 = vmul.f32 %v8569_v54, %v8968_v1  ;;  %v4443_v63 = vmul.f32 %v5569_v22, %v8969_v26  ;;  %v4444_v58 = vmul.f32 %v5569_v22, %v8970_v34 }
 0xd06   :  { %4549 = vperm.xlu1 %5102, %v4446_v17   ;;  %4495 = vperm.xlu0 %5103, %v4427_v56   ;;  %v4445_v35 = vmul.f32 %v5569_v22, %v8971_v20  ;;  %v4447_v19 = vmul.f32 %v5569_v22, %v8972_v46  ;;  %v4449_v3 = vmul.f32 %v5569_v22, %v8973_v11 }
 0xd07   :  { %v4451_v15 = vmul.f32 %v5569_v22, %v8974_v41  ;;  %v4453_v48 = vmul.f32 %v5569_v22, %v8975_v29  ;;  %v4438_v38 = vmul.f32 %v8569_v54, %v8976_v57  ;;  %v4439_v8 = vmul.f32 %v8569_v54, %v8977_v60 }
 0xd08   :  { %v4440_v12 = vmul.f32 %v8569_v54, %v8978_v4  ;;  %v4441_v59 = vmul.f32 %v8569_v54, %v8979_v49 }
 0xd0a   :  { %4555 = vperm.xlu1 %5102, %v4448_v14   ;;  %4498 = vperm.xlu0 %5103, %v4428_v9  }
 0xd0e   :  { %4561 = vperm.xlu1 %5102, %v4450_v16   ;;  %4501 = vperm.xlu0 %5103, %v4429_v47  }
 0xd12   :  { %4567 = vperm.xlu1 %5102, %v4452_v24   ;;  %4504 = vperm.xlu0 %5103, %v4430_v37  }
 0xd16   :  { %4573 = vperm.xlu1 %5102, %v4454_v0   ;;  %4507 = vperm.xlu0 %5103, %v4431_v52  }
 0xd1a   :  { %4576 = vperm.xlu1 %5102, %v4455_v40   ;;  %4510 = vperm.xlu0 %5103, %v4432_v36  }
 0xd1e   :  { %4579 = vperm.xlu1 %5102, %v4456_v6   ;;  %4513 = vperm.xlu0 %5103, %v4433_v62  }
 0xd22   :  { %4582 = vperm.xlu1 %5102, %v4457_v13   ;;  %4516 = vperm.xlu0 %5103, %v4434_v27  }
 0xd26   :  { %4585 = vperm.xlu1 %5102, %v4458_v45   ;;  %4522 = vperm.xlu0 %5103, %v4436_v21  }
 0xd2a   :  { %4525 = vperm.xlu0 %5103, %v4437_v32  }
 0xd2e   :  { %4540 = vperm.xlu0 %5103, %v4443_v63  }
 0xd32   :  { %4543 = vperm.xlu0 %5103, %v4444_v58  }
 0xd36   :  { %4546 = vperm.xlu0 %5103, %v4445_v35  }
 0xd3a   :  { %4552 = vperm.xlu0 %5103, %v4447_v19  }
 0xd3e   :  { %4558 = vperm.xlu0 %5103, %v4449_v3  }
 0xd42   :  { %4564 = vperm.xlu0 %5103, %v4451_v15  }
 0xd46   :  { %4570 = vperm.xlu0 %5103, %v4453_v48  }
 0xd4a   :  { %4528 = vperm.xlu0 %5103, %v4438_v38  }
 0xd4e   :  { %4531 = vperm.xlu0 %5103, %v4439_v8  }
 0xd52   :  { %4534 = vperm.xlu0 %5103, %v4440_v12  }
 0xd56   :  { %4537 = vperm.xlu0 %5103, %v4441_v59  }
 0xd57   :  { %5633 = shalt.err (!%p5630_p5)
}
 0xd58   :  { %4757 = dma.vmem_to_hbm [thread:$0]  %s4755_s29, 32, %s8713_s16, [#allocation4]   ;;  %v8980_v54 = vld [vmem:[#allocation16_spill] sm:$0xff]  ;;  %vm8983_vm0 = vmmov %vm8961_vm8 }
 0xd7d   :  { %v4493_v18 = vpop.permute.xlu0 %4492  ;;  %v8625_v37 = vpop.permute.xlu1 %4519 }
 0xd7e   :  { %v4590_v22 = vrot.slane %v4493_v18, %v7274_v23 }
 0xd81   :  { %v4496_v61 = vpop.permute.xlu0 %4495  ;;  %v4550_v40 = vpop.permute.xlu1 %4549 }
 0xd82   :  { %v4594_v17 = vrot.slane %v4496_v61, %v8980_v54  ;;  %v4683_v34 = vrot.slane %v4550_v40, %v7305_v28 }
 0xd84   :  { %v4595_v56 = vsel %vm2341_vm3, %v4594_v17, %v4590_v22 }
 0xd85   :  { %v4499_v14 = vpop.permute.xlu0 %4498  ;;  %v4556_v6 = vpop.permute.xlu1 %4555 }
 0xd86   :  { %v4693_v11 = vrot.slane %v4556_v6, %v8959_v42  ;;  %v4599_v60 = vrot.slane %v4499_v14, %v8958_v2 }
 0xd88   :  { %v4600_v17 = vsel %vm2348_vm4, %v4599_v60, %v4595_v56 }
 0xd89   :  { %v4502_v9 = vpop.permute.xlu0 %4501  ;;  %v4562_v53 = vpop.permute.xlu1 %4561 }
 0xd8a   :  { %v4703_v48 = vrot.slane %v4562_v53, %v8919_v39  ;;  %v4604_v12 = vrot.slane %v4502_v9, %v7305_v28 }
 0xd8c   :  { %v4605_v28 = vsel %vm2355_vm5, %v4604_v12, %v4600_v17 }
 0xd8d   :  { %v4505_v16 = vpop.permute.xlu0 %4504  ;;  %v4568_v45 = vpop.permute.xlu1 %4567 }
 0xd8e   :  { %v4713_v49 = vrot.slane %v4568_v45, %v8921_v33  ;;  %v4609_v18 = vrot.slane %v4505_v16, %v7313_v25 }
 0xd91   :  { %v4508_v47 = vpop.permute.xlu0 %4507  ;;  %v4574_v20 = vpop.permute.xlu1 %4573 }
 0xd92   :  { %v4614_v22 = vrot.slane %v4508_v47, %v8959_v42  ;;  %v4723_v9 = vrot.slane %v4574_v20, %v8925_v50 }
 0xd95   :  { %v4511_v24 = vpop.permute.xlu0 %4510  ;;  %v4577_v41 = vpop.permute.xlu1 %4576 }
 0xd96   :  { %v4728_v56 = vrot.slane %v4577_v41, %v8928_v51 }
 0xd99   :  { %v4514_v0 = vpop.permute.xlu0 %4513  ;;  %v4580_v61 = vpop.permute.xlu1 %4579 }
 0xd9a   :  { %v4624_v6 = vrot.slane %v4514_v0, %v8919_v39 }
 0xd9d   :  { %v4517_v52 = vpop.permute.xlu0 %4516 }
 0xd9e   :  { %v4629_v16 = vrot.slane %v4517_v52, %v8920_v55  ;;  %v4733_v52 = vrot.slane %v4580_v61, %v8929_v43 }
 0xda1   :  { %v8627_v36 = vpop.permute.xlu0 %4522 }
 0xda2   :  { %v4639_v39 = vrot.slane %v8627_v36, %v8922_v5 }
 0xda5   :  { %v8629_v62 = vpop.permute.xlu0 %4525 }
 0xda9   :  { %v4541_v13 = vpop.permute.xlu0 %4540 }
 0xdaa   :  { %v4669_v21 = vrot.slane %v4541_v13, %v7274_v23 }
 0xdad   :  { %v4544_v27 = vpop.permute.xlu0 %4543 }
 0xdae   :  { %v4673_v10 = vrot.slane %v4544_v27, %v8980_v54 }
 0xdb0   :  { %v4674_v32 = vsel %vm2341_vm3, %v4673_v10, %v4669_v21  ;;  %vm8981_vm3 = vcmask 458112   ;;  %v4644_v10 = vrot.slane %v8629_v62, %v8925_v50 }
 0xdb1   :  { %v4547_v7 = vpop.permute.xlu0 %4546 }
 0xdb2   :  { %v4678_v1 = vrot.slane %v4547_v7, %v8958_v2  ;;  %v4619_v2 = vrot.slane %v4511_v24, %v8918_v31  ;;  %v4583_v24 = vpop.permute.xlu1 %4582 }
 0xdb4   :  { %v4679_v26 = vsel %vm2348_vm4, %v4678_v1, %v4674_v32  ;;  %vm8982_vm4 = vmmov %vm8981_vm3 }
 0xdb5   :  { %v4553_v63 = vpop.permute.xlu0 %4552  ;;  %v4684_v35 = vsel %vm2355_vm5, %v4683_v34, %v4679_v26  ;;  %vm8984_vm5 = vmmov %vm8962_vm9 }
 0xdb6   :  { %v4688_v58 = vrot.slane %v4553_v63, %v7313_v25  ;;  %v4610_v25 = vsel %vm2362_vm6, %v4609_v18, %v4605_v28  ;;  %v4586_v36 = vpop.permute.xlu1 %4585 }
 0xdb7   :  { %v4615_v42 = vsel %vm2369_vm7, %v4614_v22, %v4610_v25  ;;  %v4743_v63 = vrot.slane %v4586_v36, %v8933_v44 }
 0xdb8   :  { %v4689_v46 = vsel %vm2362_vm6, %v4688_v58, %v4684_v35  ;;  %vm8985_vm6 = vmmov %vm8963_vm10 }
 0xdb9   :  { %v4559_v19 = vpop.permute.xlu0 %4558  ;;  %v4694_v3 = vsel %vm2369_vm7, %v4693_v11, %v4689_v46 }
 0xdba   :  { %v4698_v23 = vrot.slane %v4559_v19, %v8918_v31  ;;  %v4620_v31 = vsel %vm8982_vm4, %v4619_v2, %v4615_v42 }
 0xdbb   :  { %v4625_v53 = vsel %vm8983_vm0, %v4624_v6, %v4620_v31 }
 0xdbc   :  { %v4699_v15 = vsel %vm8981_vm3, %v4698_v23, %v4694_v3  ;;  %v4630_v27 = vsel %vm8984_vm5, %v4629_v16, %v4625_v53 }
 0xdbd   :  { %v4565_v29 = vpop.permute.xlu0 %4564  ;;  %v4704_v38 = vsel %vm8961_vm8, %v4703_v48, %v4699_v15 }
 0xdbe   :  { %v4708_v57 = vrot.slane %v4565_v29, %v8920_v55  ;;  %v4634_v55 = vrot.slane %v8625_v37, %v8921_v33 }
 0xdc0   :  { %v4709_v8 = vsel %vm8962_vm9, %v4708_v57, %v4704_v38  ;;  %v4635_v21 = vsel %vm2397_vm11, %v4634_v55, %v4630_v27 }
 0xdc1   :  { %v4571_v4 = vpop.permute.xlu0 %4570  ;;  %v4714_v54 = vsel %vm2397_vm11, %v4713_v49, %v4709_v8  ;;  %v4640_v26 = vsel %vm2404_vm12, %v4639_v39, %v4635_v21 }
 0xdc2   :  { %v4718_v59 = vrot.slane %v4571_v4, %v8922_v5  ;;  %v4738_v5 = vrot.slane %v4583_v24, %v8930_v30  ;;  %v4645_v37 = vsel %vm8985_vm6, %v4644_v10, %v4640_v26 }
 0xdc4   :  { %v4719_v14 = vsel %vm2404_vm12, %v4718_v59, %v4714_v54 }
 0xdc5   :  { %v4529_v40 = vpop.permute.xlu0 %4528  ;;  %v4724_v47 = vsel %vm8963_vm10, %v4723_v9, %v4719_v14 }
 0xdc6   :  { %v4729_v0 = vsel %vm2418_vm14, %v4728_v56, %v4724_v47  ;;  %v4649_v45 = vrot.slane %v4529_v40, %v8928_v51 }
 0xdc7   :  { %v4734_v1 = vsel %vm2425_vm15, %v4733_v52, %v4729_v0 }
 0xdc8   :  { %v4650_v50 = vsel %vm2418_vm14, %v4649_v45, %v4645_v37  ;;  %v4739_v51 = vsel %vm2432_vm1, %v4738_v5, %v4734_v1 }
 0xdc9   :  { %v4532_v13 = vpop.permute.xlu0 %4531  ;;  %v4744_v20 = vsel %vm2439_vm2, %v4743_v63, %v4739_v51 }
 0xdca   :  { %v4654_v32 = vrot.slane %v4532_v13, %v8929_v43 }
 0xdcc   :  { %v4655_v34 = vsel %vm2425_vm15, %v4654_v32, %v4650_v50 }
 0xdcd   :  { %v4535_v7 = vpop.permute.xlu0 %4534 }
 0xdce   :  { %v4659_v33 = vrot.slane %v4535_v7, %v8930_v30 }
 0xdd0   :  { %v4660_v58 = vsel %vm2432_vm1, %v4659_v33, %v4655_v34 }
 0xdd1   :  { %v4538_v62 = vpop.permute.xlu0 %4537 }
 0xdd2   :  { %v4664_v43 = vrot.slane %v4538_v62, %v8933_v44 }
 0xdd4   :  { %v4665_v35 = vsel %vm2439_vm2, %v4664_v43, %v4660_v58 }
 0xdd5   :  { %v4745_v30 = vsel %vm2520_vm13, %v4744_v20, %v4665_v35 }
 0xdd6   :  { %4747 = vst [vmem:[%s8714_s17] sm:$0x3] %v4745_v30 }
 0xdd7   :  { %5648 = dma.done.wait [#allocation4], 32  }
 0xdd8   :  { %5649 = vsyncadd [#allocation4], 4294967264 }
 0xdd9   :  { %4765 = vsyncpa [#allocation3], 1 }
 0xdda   :  { %4766 = vsyncpa [#allocation7], 1 }
 0xddb   :  { %4767 = vsyncpa [#allocation4], 1 }
 0xddc   :  { %4768 = vsyncpa [#allocation5], 1 }

</bundles_post_ra>
